<compile_context>
chip_gen: v7x
topology: tpu7x:2x2x1
jax: 0.10.0
libtpu: 0.0.40
codegen_flags: <defaults>
</compile_context>

<pallas_src>
import functools

import jax
import jax.numpy as jnp
from jax import lax
from jax.experimental import pallas as pl
from jax.experimental.pallas import tpu as pltpu

K_TAPS = 7  # fixed kernel_size=(1, 7) as in the PyTorch module


def _dilated1d_kernel(x_ref, w_ref, b_ref, o_ref, *, dilation, cin, cout,
                      k_taps, shift_on_sublanes, lane_chunk, row_chunk=8):
    """out[co, a, b] = bias[co] + sum_{k,ci} x[ci, a', b'] * w[(k*cin+ci)*cout+co]

    (a', b') = (a + k*dilation, b) if shift_on_sublanes (node axis on lanes,
    time on sublanes) else (a, b + k*dilation) (time axis on lanes).

    x_ref: VMEM (Cin, X0, X1)      w_ref: SMEM (K*Cin*Cout,)
    o_ref: VMEM (Cout, O0, O1)     b_ref: SMEM (Cout,)
    """
    o0 = o_ref.shape[1]
    o1 = o_ref.shape[2]

    # Static lane-chunk plan; ragged tail handled by a static, smaller chunk.
    lane_plan = [(c0, min(lane_chunk, o1 - c0)) for c0 in range(0, o1, lane_chunk)]

    def do_row_block(r0, rc):
        # One (rc x cl) sub-tile at a time: cout f32 accumulators + the current
        # shifted input chunk stay register-resident (~(cout+1)*cl/128 vregs);
        # each accumulator hits VMEM exactly once (the final store).
        for c0, cl in lane_plan:
            accs = [jnp.full((rc, cl), b_ref[co], dtype=jnp.float32)
                    for co in range(cout)]
            for k in range(k_taps):                  # static unroll: 7 taps
                off = k * dilation
                for ci in range(cin):                # static unroll: channels
                    if shift_on_sublanes:
                        chunk = x_ref[ci, pl.ds(r0 + off, rc), pl.ds(c0, cl)]
                    else:
                        chunk = x_ref[ci, pl.ds(r0, rc), pl.ds(c0 + off, cl)]
                    chunk = chunk.astype(jnp.float32)
                    base = (k * cin + ci) * cout
                    # SMEM scalar weight loads hoisted above the co loop;
                    # Mosaic emits scalar-operand vmuls (no broadcast splats).
                    w_sc = [w_ref[base + co] for co in range(cout)]
                    for co in range(cout):
                        accs[co] = accs[co] + chunk * w_sc[co]
            for co in range(cout):
                o_ref[co, pl.ds(r0, rc), pl.ds(c0, cl)] = accs[co].astype(o_ref.dtype)

    n_full = o0 // row_chunk
    rem = o0 - n_full * row_chunk

    if n_full > 0:
        if shift_on_sublanes or n_full <= 4:
            for r in range(n_full):                  # small static unroll
                do_row_block(r * row_chunk, row_chunk)
        else:
            # Dynamic loop keeps code size independent of the node-tile size.
            def row_body(r, carry):
                do_row_block(pl.multiple_of(r * row_chunk, row_chunk), row_chunk)
                return carry
            lax.fori_loop(0, n_full, row_body, 0)
    if rem > 0:
        do_row_block(n_full * row_chunk, rem)


def _round_up(x, m):
    return ((x + m - 1) // m) * m


def _vmem_budgets():
    """Generation-aware VMEM sizing: v7x has 64 MiB/TC, v5e/v6e 128 MiB."""
    cap = 64 * 1024 * 1024                       # conservative default (v7x)
    try:
        info = pltpu.get_tpu_info()
        cap = int(getattr(info, "vmem_capacity_bytes", cap)) or cap
    except Exception:
        pass
    block_budget = max(4 << 20, min(16 << 20, cap // 8))   # double-buffered x+out
    vmem_limit_cap = (cap * 3) // 4                         # ~48 MiB v7x, ~96 MiB v5e/v6e
    return block_budget, vmem_limit_cap


def _choose_tile(total, unit, per_unit_bytes, budget_bytes, batch,
                 min_steps=4, max_tile=None):
    """Largest tile (multiple of `unit`, dividing `total`, <= max_tile) whose
    double-buffered blocks fit `budget_bytes`; then shrink while the grid
    (batch * total//tile) has fewer than `min_steps` steps (megacore /
    pipeline occupancy), never below `unit`."""
    cands = [t for t in range(unit, total + 1, unit) if total % t == 0]
    if max_tile is not None:
        cands = [t for t in cands if t <= max_tile] or [unit]
    fits = [t for t in cands if 2 * t * per_unit_bytes <= budget_bytes]
    # If even the minimum tile is over budget we still return it; the wrapper
    # raises vmem_limit_bytes to match the real block (no silent bypass).
    tile = max(fits) if fits else min(cands)
    while batch * (total // tile) < min_steps:
        smaller = [c for c in cands if c < tile]
        if not smaller:
            break
        tile = max(smaller)
    return tile


def dilated_1d_pallas(x_nchw, weight, bias, dilation_factor: int = 2):
    """Pallas implementation of dilated_1D.forward.

    Args:
      x_nchw: [B, Cin, N, L]      (PyTorch NCHW layout)
      weight: [Cout, Cin, 1, K]   (PyTorch Conv2d weight layout)
      bias:   [Cout]
    Returns:
      [B, Cout, N, L_out] with L_out = L - dilation_factor*(K-1)
    """
    B, Cin, N, L = x_nchw.shape
    Cout, Cin_w, kh, K = weight.shape
    assert Cin_w == Cin and kh == 1
    L_out = L - dilation_factor * (K - 1)
    assert L_out > 0, "sequence too short for kernel_size=(1,7) at this dilation"

    # Tiny parameters -> flat SMEM arrays: (k*Cin+ci)*Cout+co == weight[co,ci,0,k].
    w_flat = jnp.transpose(weight[:, :, 0, :], (2, 1, 0)).reshape(-1)
    bias = bias.reshape(Cout)

    itemsize = x_nchw.dtype.itemsize
    block_budget, vmem_limit_cap = _vmem_budgets()
    per_node_bytes = (Cin * L + Cout * L_out) * itemsize
    # ~<=40 live vregs: Cout per-chunk accumulators + one shifted input chunk.
    lane_chunk = int(min(512, max(128, 128 * (48 // (Cout + 1)))))

    # Lane-density heuristic: put the longer of (L_out, N) on the lane axis.
    use_node_lanes = (L_out < 128) and (N > L_out)

    if use_node_lanes:
        # [B,Cin,N,L] -> [B,Cin,L,N]; pad node axis to a multiple of 128 so
        # every store is an unmasked, lane-dense vst.
        Np = _round_up(N, 128)
        x_in = jnp.transpose(x_nchw, (0, 1, 3, 2))
        if Np != N:
            x_in = jnp.pad(x_in, ((0, 0), (0, 0), (0, 0), (0, Np - N)))
        row_chunks = -(-L_out // 8)
        max_tile = lane_chunk * max(1, 32 // row_chunks)  # bound static unroll
        TN = _choose_tile(Np, 128, per_node_bytes, block_budget, batch=B,
                          max_tile=max_tile)
        grid = (B, Np // TN)
        x_spec = pl.BlockSpec((pl.Squeezed(), Cin, L, TN),
                              lambda bi, ni: (bi, 0, 0, ni))
        o_spec = pl.BlockSpec((pl.Squeezed(), Cout, L_out, TN),
                              lambda bi, ni: (bi, 0, 0, ni))
        out_shape = jax.ShapeDtypeStruct((B, Cout, L_out, Np), x_nchw.dtype)
        shift_on_sublanes = True
    else:
        # Native NCHW layout (long L_out keeps lanes dense; no transposes).
        Np = _round_up(N, 8)
        x_in = x_nchw
        if Np != N:
            x_in = jnp.pad(x_in, ((0, 0), (0, 0), (0, Np - N), (0, 0)))
        TN = _choose_tile(Np, 8, per_node_bytes, block_budget, batch=B)
        grid = (B, Np // TN)
        x_spec = pl.BlockSpec((pl.Squeezed(), Cin, TN, L),
                              lambda bi, ni: (bi, 0, ni, 0))
        o_spec = pl.BlockSpec((pl.Squeezed(), Cout, TN, L_out),
                              lambda bi, ni: (bi, 0, ni, 0))
        out_shape = jax.ShapeDtypeStruct((B, Cout, Np, L_out), x_nchw.dtype)
        shift_on_sublanes = False
        # TODO(synk): for very long L (min tile over budget) add an L-tile grid
        # axis with an explicit dilation*(K-1)-column halo instead of carrying
        # the full L per block.

    # Keep the limit consistent with the actual double-buffered block need,
    # capped generation-aware (~48 MiB on v7x, ~96 MiB on v5e/v6e).
    block_bytes = TN * per_node_bytes
    vmem_limit = int(min(vmem_limit_cap, max(32 << 20, 2 * block_bytes + (8 << 20))))

    kernel = functools.partial(
        _dilated1d_kernel, dilation=dilation_factor, cin=Cin, cout=Cout,
        k_taps=K, shift_on_sublanes=shift_on_sublanes, lane_chunk=lane_chunk)

    flops = 2 * B * Np * L_out * K * Cin * Cout
    bytes_accessed = (B * Cin * Np * L + w_flat.size + bias.size
                      + B * Cout * Np * L_out) * itemsize

    out = pl.pallas_call(
        kernel,
        out_shape=out_shape,
        grid_spec=pltpu.PrefetchScalarGridSpec(
            num_scalar_prefetch=0,
            grid=grid,                      # both axes write disjoint blocks
            in_specs=[
                x_spec,
                pl.BlockSpec(memory_space=pltpu.MemorySpace.SMEM),  # weights
                pl.BlockSpec(memory_space=pltpu.MemorySpace.SMEM),  # bias
            ],
            out_specs=o_spec,
        ),
        compiler_params=pltpu.CompilerParams(
            dimension_semantics=("parallel", "parallel"),
            vmem_limit_bytes=vmem_limit,
        ),
        cost_estimate=pl.CostEstimate(flops=flops, transcendentals=0,
                                      bytes_accessed=bytes_accessed),
    )(x_in, w_flat, bias)

    if use_node_lanes:
        out = jnp.transpose(out[:, :, :, :N], (0, 1, 3, 2))
    elif Np != N:
        out = out[:, :, :N, :]
    return out


def _reference(x_nchw, weight, bias, dilation_factor: int = 2):
    """Pure-JAX reference (same math, no Pallas) for correctness checking."""
    K = weight.shape[-1]
    L = x_nchw.shape[-1]
    L_out = L - dilation_factor * (K - 1)
    B, Cin, N, _ = x_nchw.shape
    Cout = weight.shape[0]
    out = jnp.zeros((B, Cout, N, L_out), jnp.float32)
    for k in range(K):
        xs = x_nchw[:, :, :, k * dilation_factor:k * dilation_factor + L_out]
        out = out + jnp.einsum("bcnl,oc->bonl", xs, weight[:, :, 0, k])
    return out + bias[None, :, None, None]


if __name__ == "__main__":
    key = jax.random.PRNGKey(0)

    # (B, Cin, Cout, N, L, dilation) — small shapes exercising all code paths:
    configs = [
        (2, 4, 8, 16, 16, 2),    # L_out=4  < 128 -> node-on-lanes (transposed) path
        (2, 4, 8, 8, 256, 2),    # L_out=244 >=128 -> native path, static row chunks
        (2, 4, 8, 128, 144, 2),  # native path with dynamic row-chunk loop (TN=64)
    ]
    for idx, (B, Cin, Cout, N, L, d) in enumerate(configs):
        k_x, k_w, k_b = jax.random.split(jax.random.fold_in(key, idx), 3)
        x = jax.random.normal(k_x, (B, Cin, N, L), dtype=jnp.float32)
        # Deterministic "PyTorch-like" uniform init for Conv2d(cin, cout, (1,7)).
        fan_in = Cin * 1 * K_TAPS
        bound = 1.0 / (fan_in ** 0.5)
        weight = jax.random.uniform(k_w, (Cout, Cin, 1, K_TAPS), jnp.float32,
                                    minval=-bound, maxval=bound)
        bias = jax.random.uniform(k_b, (Cout,), jnp.float32,
                                  minval=-bound, maxval=bound)

        out = dilated_1d_pallas(x, weight, bias, d)
        out = jax.block_until_ready(out)

        ref = _reference(x, weight, bias, d)
        L_out = L - d * (K_TAPS - 1)
        assert out.shape == (B, Cout, N, L_out), (out.shape, (B, Cout, N, L_out))
        assert jnp.allclose(out, ref, atol=1e-5, rtol=1e-5), \
            f"mismatch vs reference in config {idx}"

    print("KERNEL_OK")
</pallas_src>

<mosaic_0001>
module attributes {stable_mosaic.version = 11 : i64} {
  func.func @_dilated1d_kernel(%arg0: i32, %arg1: i32, %arg2: memref<1x4x16x128xf32, #tpu.memory_space<vmem>>, %arg3: memref<224xf32, #tpu.memory_space<smem>>, %arg4: memref<8xf32, #tpu.memory_space<smem>>, %arg5: memref<1x8x4x128xf32, #tpu.memory_space<vmem>>) attributes {dimension_semantics = [#tpu.dimension_semantics<parallel>, #tpu.dimension_semantics<parallel>], iteration_bounds = array<i64: 2, 1>, scalar_prefetch = 0 : i64, scratch_operands = 0 : i64, tpu.core_type = #tpu.core_type<tc>, window_params = [{transform_indices = @transform_0, window_bounds = array<i64: 1, 4, 16, 128>}, {transform_indices = @transform_1, window_bounds = array<i64: 224>}, {transform_indices = @transform_2, window_bounds = array<i64: 8>}, {transform_indices = @transform_3, window_bounds = array<i64: 1, 8, 4, 128>}]} {
    %c0 = arith.constant 0 : index
    %0 = memref.load %arg4[%c0] : memref<8xf32, #tpu.memory_space<smem>>
    %1 = vector.broadcast %0 : f32 to vector<4x128xf32>
    %c1 = arith.constant 1 : index
    %2 = memref.load %arg4[%c1] : memref<8xf32, #tpu.memory_space<smem>>
    %3 = vector.broadcast %2 : f32 to vector<4x128xf32>
    %c2 = arith.constant 2 : index
    %4 = memref.load %arg4[%c2] : memref<8xf32, #tpu.memory_space<smem>>
    %5 = vector.broadcast %4 : f32 to vector<4x128xf32>
    %c3 = arith.constant 3 : index
    %6 = memref.load %arg4[%c3] : memref<8xf32, #tpu.memory_space<smem>>
    %7 = vector.broadcast %6 : f32 to vector<4x128xf32>
    %c4 = arith.constant 4 : index
    %8 = memref.load %arg4[%c4] : memref<8xf32, #tpu.memory_space<smem>>
    %9 = vector.broadcast %8 : f32 to vector<4x128xf32>
    %c5 = arith.constant 5 : index
    %10 = memref.load %arg4[%c5] : memref<8xf32, #tpu.memory_space<smem>>
    %11 = vector.broadcast %10 : f32 to vector<4x128xf32>
    %c6 = arith.constant 6 : index
    %12 = memref.load %arg4[%c6] : memref<8xf32, #tpu.memory_space<smem>>
    %13 = vector.broadcast %12 : f32 to vector<4x128xf32>
    %c7 = arith.constant 7 : index
    %14 = memref.load %arg4[%c7] : memref<8xf32, #tpu.memory_space<smem>>
    %15 = vector.broadcast %14 : f32 to vector<4x128xf32>
    %c0_0 = arith.constant 0 : index
    %c0_1 = arith.constant 0 : index
    %c0_2 = arith.constant 0 : index
    %c0_3 = arith.constant 0 : index
    %16 = vector.load %arg2[%c0_0, %c0_1, %c0_2, %c0_3] : memref<1x4x16x128xf32, #tpu.memory_space<vmem>>, vector<1x1x4x128xf32>
    %17 = vector.shape_cast %16 : vector<1x1x4x128xf32> to vector<4x128xf32>
    %c0_4 = arith.constant 0 : index
    %18 = memref.load %arg3[%c0_4] : memref<224xf32, #tpu.memory_space<smem>>
    %c1_5 = arith.constant 1 : index
    %19 = memref.load %arg3[%c1_5] : memref<224xf32, #tpu.memory_space<smem>>
    %c2_6 = arith.constant 2 : index
    %20 = memref.load %arg3[%c2_6] : memref<224xf32, #tpu.memory_space<smem>>
    %c3_7 = arith.constant 3 : index
    %21 = memref.load %arg3[%c3_7] : memref<224xf32, #tpu.memory_space<smem>>
    %c4_8 = arith.constant 4 : index
    %22 = memref.load %arg3[%c4_8] : memref<224xf32, #tpu.memory_space<smem>>
    %c5_9 = arith.constant 5 : index
    %23 = memref.load %arg3[%c5_9] : memref<224xf32, #tpu.memory_space<smem>>
    %c6_10 = arith.constant 6 : index
    %24 = memref.load %arg3[%c6_10] : memref<224xf32, #tpu.memory_space<smem>>
    %c7_11 = arith.constant 7 : index
    %25 = memref.load %arg3[%c7_11] : memref<224xf32, #tpu.memory_space<smem>>
    %26 = vector.broadcast %18 : f32 to vector<4x128xf32>
    %27 = arith.mulf %17, %26 : vector<4x128xf32>
    %28 = arith.addf %1, %27 : vector<4x128xf32>
    %29 = vector.broadcast %19 : f32 to vector<4x128xf32>
    %30 = arith.mulf %17, %29 : vector<4x128xf32>
    %31 = arith.addf %3, %30 : vector<4x128xf32>
    %32 = vector.broadcast %20 : f32 to vector<4x128xf32>
    %33 = arith.mulf %17, %32 : vector<4x128xf32>
    %34 = arith.addf %5, %33 : vector<4x128xf32>
    %35 = vector.broadcast %21 : f32 to vector<4x128xf32>
    %36 = arith.mulf %17, %35 : vector<4x128xf32>
    %37 = arith.addf %7, %36 : vector<4x128xf32>
    %38 = vector.broadcast %22 : f32 to vector<4x128xf32>
    %39 = arith.mulf %17, %38 : vector<4x128xf32>
    %40 = arith.addf %9, %39 : vector<4x128xf32>
    %41 = vector.broadcast %23 : f32 to vector<4x128xf32>
    %42 = arith.mulf %17, %41 : vector<4x128xf32>
    %43 = arith.addf %11, %42 : vector<4x128xf32>
    %44 = vector.broadcast %24 : f32 to vector<4x128xf32>
    %45 = arith.mulf %17, %44 : vector<4x128xf32>
    %46 = arith.addf %13, %45 : vector<4x128xf32>
    %47 = vector.broadcast %25 : f32 to vector<4x128xf32>
    %48 = arith.mulf %17, %47 : vector<4x128xf32>
    %49 = arith.addf %15, %48 : vector<4x128xf32>
    %c0_12 = arith.constant 0 : index
    %c1_13 = arith.constant 1 : index
    %c0_14 = arith.constant 0 : index
    %c0_15 = arith.constant 0 : index
    %50 = vector.load %arg2[%c0_12, %c1_13, %c0_14, %c0_15] : memref<1x4x16x128xf32, #tpu.memory_space<vmem>>, vector<1x1x4x128xf32>
    %51 = vector.shape_cast %50 : vector<1x1x4x128xf32> to vector<4x128xf32>
    %c8 = arith.constant 8 : index
    %52 = memref.load %arg3[%c8] : memref<224xf32, #tpu.memory_space<smem>>
    %c9 = arith.constant 9 : index
    %53 = memref.load %arg3[%c9] : memref<224xf32, #tpu.memory_space<smem>>
    %c10 = arith.constant 10 : index
    %54 = memref.load %arg3[%c10] : memref<224xf32, #tpu.memory_space<smem>>
    %c11 = arith.constant 11 : index
    %55 = memref.load %arg3[%c11] : memref<224xf32, #tpu.memory_space<smem>>
    %c12 = arith.constant 12 : index
    %56 = memref.load %arg3[%c12] : memref<224xf32, #tpu.memory_space<smem>>
    %c13 = arith.constant 13 : index
    %57 = memref.load %arg3[%c13] : memref<224xf32, #tpu.memory_space<smem>>
    %c14 = arith.constant 14 : index
    %58 = memref.load %arg3[%c14] : memref<224xf32, #tpu.memory_space<smem>>
    %c15 = arith.constant 15 : index
    %59 = memref.load %arg3[%c15] : memref<224xf32, #tpu.memory_space<smem>>
    %60 = vector.broadcast %52 : f32 to vector<4x128xf32>
    %61 = arith.mulf %51, %60 : vector<4x128xf32>
    %62 = arith.addf %28, %61 : vector<4x128xf32>
    %63 = vector.broadcast %53 : f32 to vector<4x128xf32>
    %64 = arith.mulf %51, %63 : vector<4x128xf32>
    %65 = arith.addf %31, %64 : vector<4x128xf32>
    %66 = vector.broadcast %54 : f32 to vector<4x128xf32>
    %67 = arith.mulf %51, %66 : vector<4x128xf32>
    %68 = arith.addf %34, %67 : vector<4x128xf32>
    %69 = vector.broadcast %55 : f32 to vector<4x128xf32>
    %70 = arith.mulf %51, %69 : vector<4x128xf32>
    %71 = arith.addf %37, %70 : vector<4x128xf32>
    %72 = vector.broadcast %56 : f32 to vector<4x128xf32>
    %73 = arith.mulf %51, %72 : vector<4x128xf32>
    %74 = arith.addf %40, %73 : vector<4x128xf32>
    %75 = vector.broadcast %57 : f32 to vector<4x128xf32>
    %76 = arith.mulf %51, %75 : vector<4x128xf32>
    %77 = arith.addf %43, %76 : vector<4x128xf32>
    %78 = vector.broadcast %58 : f32 to vector<4x128xf32>
    %79 = arith.mulf %51, %78 : vector<4x128xf32>
    %80 = arith.addf %46, %79 : vector<4x128xf32>
    %81 = vector.broadcast %59 : f32 to vector<4x128xf32>
    %82 = arith.mulf %51, %81 : vector<4x128xf32>
    %83 = arith.addf %49, %82 : vector<4x128xf32>
    %c0_16 = arith.constant 0 : index
    %c2_17 = arith.constant 2 : index
    %c0_18 = arith.constant 0 : index
    %c0_19 = arith.constant 0 : index
    %84 = vector.load %arg2[%c0_16, %c2_17, %c0_18, %c0_19] : memref<1x4x16x128xf32, #tpu.memory_space<vmem>>, vector<1x1x4x128xf32>
    %85 = vector.shape_cast %84 : vector<1x1x4x128xf32> to vector<4x128xf32>
    %c16 = arith.constant 16 : index
    %86 = memref.load %arg3[%c16] : memref<224xf32, #tpu.memory_space<smem>>
    %c17 = arith.constant 17 : index
    %87 = memref.load %arg3[%c17] : memref<224xf32, #tpu.memory_space<smem>>
    %c18 = arith.constant 18 : index
    %88 = memref.load %arg3[%c18] : memref<224xf32, #tpu.memory_space<smem>>
    %c19 = arith.constant 19 : index
    %89 = memref.load %arg3[%c19] : memref<224xf32, #tpu.memory_space<smem>>
    %c20 = arith.constant 20 : index
    %90 = memref.load %arg3[%c20] : memref<224xf32, #tpu.memory_space<smem>>
    %c21 = arith.constant 21 : index
    %91 = memref.load %arg3[%c21] : memref<224xf32, #tpu.memory_space<smem>>
    %c22 = arith.constant 22 : index
    %92 = memref.load %arg3[%c22] : memref<224xf32, #tpu.memory_space<smem>>
    %c23 = arith.constant 23 : index
    %93 = memref.load %arg3[%c23] : memref<224xf32, #tpu.memory_space<smem>>
    %94 = vector.broadcast %86 : f32 to vector<4x128xf32>
    %95 = arith.mulf %85, %94 : vector<4x128xf32>
    %96 = arith.addf %62, %95 : vector<4x128xf32>
    %97 = vector.broadcast %87 : f32 to vector<4x128xf32>
    %98 = arith.mulf %85, %97 : vector<4x128xf32>
    %99 = arith.addf %65, %98 : vector<4x128xf32>
    %100 = vector.broadcast %88 : f32 to vector<4x128xf32>
    %101 = arith.mulf %85, %100 : vector<4x128xf32>
    %102 = arith.addf %68, %101 : vector<4x128xf32>
    %103 = vector.broadcast %89 : f32 to vector<4x128xf32>
    %104 = arith.mulf %85, %103 : vector<4x128xf32>
    %105 = arith.addf %71, %104 : vector<4x128xf32>
    %106 = vector.broadcast %90 : f32 to vector<4x128xf32>
    %107 = arith.mulf %85, %106 : vector<4x128xf32>
    %108 = arith.addf %74, %107 : vector<4x128xf32>
    %109 = vector.broadcast %91 : f32 to vector<4x128xf32>
    %110 = arith.mulf %85, %109 : vector<4x128xf32>
    %111 = arith.addf %77, %110 : vector<4x128xf32>
    %112 = vector.broadcast %92 : f32 to vector<4x128xf32>
    %113 = arith.mulf %85, %112 : vector<4x128xf32>
    %114 = arith.addf %80, %113 : vector<4x128xf32>
    %115 = vector.broadcast %93 : f32 to vector<4x128xf32>
    %116 = arith.mulf %85, %115 : vector<4x128xf32>
    %117 = arith.addf %83, %116 : vector<4x128xf32>
    %c0_20 = arith.constant 0 : index
    %c3_21 = arith.constant 3 : index
    %c0_22 = arith.constant 0 : index
    %c0_23 = arith.constant 0 : index
    %118 = vector.load %arg2[%c0_20, %c3_21, %c0_22, %c0_23] : memref<1x4x16x128xf32, #tpu.memory_space<vmem>>, vector<1x1x4x128xf32>
    %119 = vector.shape_cast %118 : vector<1x1x4x128xf32> to vector<4x128xf32>
    %c24 = arith.constant 24 : index
    %120 = memref.load %arg3[%c24] : memref<224xf32, #tpu.memory_space<smem>>
    %c25 = arith.constant 25 : index
    %121 = memref.load %arg3[%c25] : memref<224xf32, #tpu.memory_space<smem>>
    %c26 = arith.constant 26 : index
    %122 = memref.load %arg3[%c26] : memref<224xf32, #tpu.memory_space<smem>>
    %c27 = arith.constant 27 : index
    %123 = memref.load %arg3[%c27] : memref<224xf32, #tpu.memory_space<smem>>
    %c28 = arith.constant 28 : index
    %124 = memref.load %arg3[%c28] : memref<224xf32, #tpu.memory_space<smem>>
    %c29 = arith.constant 29 : index
    %125 = memref.load %arg3[%c29] : memref<224xf32, #tpu.memory_space<smem>>
    %c30 = arith.constant 30 : index
    %126 = memref.load %arg3[%c30] : memref<224xf32, #tpu.memory_space<smem>>
    %c31 = arith.constant 31 : index
    %127 = memref.load %arg3[%c31] : memref<224xf32, #tpu.memory_space<smem>>
    %128 = vector.broadcast %120 : f32 to vector<4x128xf32>
    %129 = arith.mulf %119, %128 : vector<4x128xf32>
    %130 = arith.addf %96, %129 : vector<4x128xf32>
    %131 = vector.broadcast %121 : f32 to vector<4x128xf32>
    %132 = arith.mulf %119, %131 : vector<4x128xf32>
    %133 = arith.addf %99, %132 : vector<4x128xf32>
    %134 = vector.broadcast %122 : f32 to vector<4x128xf32>
    %135 = arith.mulf %119, %134 : vector<4x128xf32>
    %136 = arith.addf %102, %135 : vector<4x128xf32>
    %137 = vector.broadcast %123 : f32 to vector<4x128xf32>
    %138 = arith.mulf %119, %137 : vector<4x128xf32>
    %139 = arith.addf %105, %138 : vector<4x128xf32>
    %140 = vector.broadcast %124 : f32 to vector<4x128xf32>
    %141 = arith.mulf %119, %140 : vector<4x128xf32>
    %142 = arith.addf %108, %141 : vector<4x128xf32>
    %143 = vector.broadcast %125 : f32 to vector<4x128xf32>
    %144 = arith.mulf %119, %143 : vector<4x128xf32>
    %145 = arith.addf %111, %144 : vector<4x128xf32>
    %146 = vector.broadcast %126 : f32 to vector<4x128xf32>
    %147 = arith.mulf %119, %146 : vector<4x128xf32>
    %148 = arith.addf %114, %147 : vector<4x128xf32>
    %149 = vector.broadcast %127 : f32 to vector<4x128xf32>
    %150 = arith.mulf %119, %149 : vector<4x128xf32>
    %151 = arith.addf %117, %150 : vector<4x128xf32>
    %c0_24 = arith.constant 0 : index
    %c0_25 = arith.constant 0 : index
    %c2_26 = arith.constant 2 : index
    %c0_27 = arith.constant 0 : index
    %152 = vector.load %arg2[%c0_24, %c0_25, %c2_26, %c0_27] : memref<1x4x16x128xf32, #tpu.memory_space<vmem>>, vector<1x1x4x128xf32>
    %153 = vector.shape_cast %152 : vector<1x1x4x128xf32> to vector<4x128xf32>
    %c32 = arith.constant 32 : index
    %154 = memref.load %arg3[%c32] : memref<224xf32, #tpu.memory_space<smem>>
    %c33 = arith.constant 33 : index
    %155 = memref.load %arg3[%c33] : memref<224xf32, #tpu.memory_space<smem>>
    %c34 = arith.constant 34 : index
    %156 = memref.load %arg3[%c34] : memref<224xf32, #tpu.memory_space<smem>>
    %c35 = arith.constant 35 : index
    %157 = memref.load %arg3[%c35] : memref<224xf32, #tpu.memory_space<smem>>
    %c36 = arith.constant 36 : index
    %158 = memref.load %arg3[%c36] : memref<224xf32, #tpu.memory_space<smem>>
    %c37 = arith.constant 37 : index
    %159 = memref.load %arg3[%c37] : memref<224xf32, #tpu.memory_space<smem>>
    %c38 = arith.constant 38 : index
    %160 = memref.load %arg3[%c38] : memref<224xf32, #tpu.memory_space<smem>>
    %c39 = arith.constant 39 : index
    %161 = memref.load %arg3[%c39] : memref<224xf32, #tpu.memory_space<smem>>
    %162 = vector.broadcast %154 : f32 to vector<4x128xf32>
    %163 = arith.mulf %153, %162 : vector<4x128xf32>
    %164 = arith.addf %130, %163 : vector<4x128xf32>
    %165 = vector.broadcast %155 : f32 to vector<4x128xf32>
    %166 = arith.mulf %153, %165 : vector<4x128xf32>
    %167 = arith.addf %133, %166 : vector<4x128xf32>
    %168 = vector.broadcast %156 : f32 to vector<4x128xf32>
    %169 = arith.mulf %153, %168 : vector<4x128xf32>
    %170 = arith.addf %136, %169 : vector<4x128xf32>
    %171 = vector.broadcast %157 : f32 to vector<4x128xf32>
    %172 = arith.mulf %153, %171 : vector<4x128xf32>
    %173 = arith.addf %139, %172 : vector<4x128xf32>
    %174 = vector.broadcast %158 : f32 to vector<4x128xf32>
    %175 = arith.mulf %153, %174 : vector<4x128xf32>
    %176 = arith.addf %142, %175 : vector<4x128xf32>
    %177 = vector.broadcast %159 : f32 to vector<4x128xf32>
    %178 = arith.mulf %153, %177 : vector<4x128xf32>
    %179 = arith.addf %145, %178 : vector<4x128xf32>
    %180 = vector.broadcast %160 : f32 to vector<4x128xf32>
    %181 = arith.mulf %153, %180 : vector<4x128xf32>
    %182 = arith.addf %148, %181 : vector<4x128xf32>
    %183 = vector.broadcast %161 : f32 to vector<4x128xf32>
    %184 = arith.mulf %153, %183 : vector<4x128xf32>
    %185 = arith.addf %151, %184 : vector<4x128xf32>
    %c0_28 = arith.constant 0 : index
    %c1_29 = arith.constant 1 : index
    %c2_30 = arith.constant 2 : index
    %c0_31 = arith.constant 0 : index
    %186 = vector.load %arg2[%c0_28, %c1_29, %c2_30, %c0_31] : memref<1x4x16x128xf32, #tpu.memory_space<vmem>>, vector<1x1x4x128xf32>
    %187 = vector.shape_cast %186 : vector<1x1x4x128xf32> to vector<4x128xf32>
    %c40 = arith.constant 40 : index
    %188 = memref.load %arg3[%c40] : memref<224xf32, #tpu.memory_space<smem>>
    %c41 = arith.constant 41 : index
    %189 = memref.load %arg3[%c41] : memref<224xf32, #tpu.memory_space<smem>>
    %c42 = arith.constant 42 : index
    %190 = memref.load %arg3[%c42] : memref<224xf32, #tpu.memory_space<smem>>
    %c43 = arith.constant 43 : index
    %191 = memref.load %arg3[%c43] : memref<224xf32, #tpu.memory_space<smem>>
    %c44 = arith.constant 44 : index
    %192 = memref.load %arg3[%c44] : memref<224xf32, #tpu.memory_space<smem>>
    %c45 = arith.constant 45 : index
    %193 = memref.load %arg3[%c45] : memref<224xf32, #tpu.memory_space<smem>>
    %c46 = arith.constant 46 : index
    %194 = memref.load %arg3[%c46] : memref<224xf32, #tpu.memory_space<smem>>
    %c47 = arith.constant 47 : index
    %195 = memref.load %arg3[%c47] : memref<224xf32, #tpu.memory_space<smem>>
    %196 = vector.broadcast %188 : f32 to vector<4x128xf32>
    %197 = arith.mulf %187, %196 : vector<4x128xf32>
    %198 = arith.addf %164, %197 : vector<4x128xf32>
    %199 = vector.broadcast %189 : f32 to vector<4x128xf32>
    %200 = arith.mulf %187, %199 : vector<4x128xf32>
    %201 = arith.addf %167, %200 : vector<4x128xf32>
    %202 = vector.broadcast %190 : f32 to vector<4x128xf32>
    %203 = arith.mulf %187, %202 : vector<4x128xf32>
    %204 = arith.addf %170, %203 : vector<4x128xf32>
    %205 = vector.broadcast %191 : f32 to vector<4x128xf32>
    %206 = arith.mulf %187, %205 : vector<4x128xf32>
    %207 = arith.addf %173, %206 : vector<4x128xf32>
    %208 = vector.broadcast %192 : f32 to vector<4x128xf32>
    %209 = arith.mulf %187, %208 : vector<4x128xf32>
    %210 = arith.addf %176, %209 : vector<4x128xf32>
    %211 = vector.broadcast %193 : f32 to vector<4x128xf32>
    %212 = arith.mulf %187, %211 : vector<4x128xf32>
    %213 = arith.addf %179, %212 : vector<4x128xf32>
    %214 = vector.broadcast %194 : f32 to vector<4x128xf32>
    %215 = arith.mulf %187, %214 : vector<4x128xf32>
    %216 = arith.addf %182, %215 : vector<4x128xf32>
    %217 = vector.broadcast %195 : f32 to vector<4x128xf32>
    %218 = arith.mulf %187, %217 : vector<4x128xf32>
    %219 = arith.addf %185, %218 : vector<4x128xf32>
    %c0_32 = arith.constant 0 : index
    %c2_33 = arith.constant 2 : index
    %c2_34 = arith.constant 2 : index
    %c0_35 = arith.constant 0 : index
    %220 = vector.load %arg2[%c0_32, %c2_33, %c2_34, %c0_35] : memref<1x4x16x128xf32, #tpu.memory_space<vmem>>, vector<1x1x4x128xf32>
    %221 = vector.shape_cast %220 : vector<1x1x4x128xf32> to vector<4x128xf32>
    %c48 = arith.constant 48 : index
    %222 = memref.load %arg3[%c48] : memref<224xf32, #tpu.memory_space<smem>>
    %c49 = arith.constant 49 : index
    %223 = memref.load %arg3[%c49] : memref<224xf32, #tpu.memory_space<smem>>
    %c50 = arith.constant 50 : index
    %224 = memref.load %arg3[%c50] : memref<224xf32, #tpu.memory_space<smem>>
    %c51 = arith.constant 51 : index
    %225 = memref.load %arg3[%c51] : memref<224xf32, #tpu.memory_space<smem>>
    %c52 = arith.constant 52 : index
    %226 = memref.load %arg3[%c52] : memref<224xf32, #tpu.memory_space<smem>>
    %c53 = arith.constant 53 : index
    %227 = memref.load %arg3[%c53] : memref<224xf32, #tpu.memory_space<smem>>
    %c54 = arith.constant 54 : index
    %228 = memref.load %arg3[%c54] : memref<224xf32, #tpu.memory_space<smem>>
    %c55 = arith.constant 55 : index
    %229 = memref.load %arg3[%c55] : memref<224xf32, #tpu.memory_space<smem>>
    %230 = vector.broadcast %222 : f32 to vector<4x128xf32>
    %231 = arith.mulf %221, %230 : vector<4x128xf32>
    %232 = arith.addf %198, %231 : vector<4x128xf32>
    %233 = vector.broadcast %223 : f32 to vector<4x128xf32>
    %234 = arith.mulf %221, %233 : vector<4x128xf32>
    %235 = arith.addf %201, %234 : vector<4x128xf32>
    %236 = vector.broadcast %224 : f32 to vector<4x128xf32>
    %237 = arith.mulf %221, %236 : vector<4x128xf32>
    %238 = arith.addf %204, %237 : vector<4x128xf32>
    %239 = vector.broadcast %225 : f32 to vector<4x128xf32>
    %240 = arith.mulf %221, %239 : vector<4x128xf32>
    %241 = arith.addf %207, %240 : vector<4x128xf32>
    %242 = vector.broadcast %226 : f32 to vector<4x128xf32>
    %243 = arith.mulf %221, %242 : vector<4x128xf32>
    %244 = arith.addf %210, %243 : vector<4x128xf32>
    %245 = vector.broadcast %227 : f32 to vector<4x128xf32>
    %246 = arith.mulf %221, %245 : vector<4x128xf32>
    %247 = arith.addf %213, %246 : vector<4x128xf32>
    %248 = vector.broadcast %228 : f32 to vector<4x128xf32>
    %249 = arith.mulf %221, %248 : vector<4x128xf32>
    %250 = arith.addf %216, %249 : vector<4x128xf32>
    %251 = vector.broadcast %229 : f32 to vector<4x128xf32>
    %252 = arith.mulf %221, %251 : vector<4x128xf32>
    %253 = arith.addf %219, %252 : vector<4x128xf32>
    %c0_36 = arith.constant 0 : index
    %c3_37 = arith.constant 3 : index
    %c2_38 = arith.constant 2 : index
    %c0_39 = arith.constant 0 : index
    %254 = vector.load %arg2[%c0_36, %c3_37, %c2_38, %c0_39] : memref<1x4x16x128xf32, #tpu.memory_space<vmem>>, vector<1x1x4x128xf32>
    %255 = vector.shape_cast %254 : vector<1x1x4x128xf32> to vector<4x128xf32>
    %c56 = arith.constant 56 : index
    %256 = memref.load %arg3[%c56] : memref<224xf32, #tpu.memory_space<smem>>
    %c57 = arith.constant 57 : index
    %257 = memref.load %arg3[%c57] : memref<224xf32, #tpu.memory_space<smem>>
    %c58 = arith.constant 58 : index
    %258 = memref.load %arg3[%c58] : memref<224xf32, #tpu.memory_space<smem>>
    %c59 = arith.constant 59 : index
    %259 = memref.load %arg3[%c59] : memref<224xf32, #tpu.memory_space<smem>>
    %c60 = arith.constant 60 : index
    %260 = memref.load %arg3[%c60] : memref<224xf32, #tpu.memory_space<smem>>
    %c61 = arith.constant 61 : index
    %261 = memref.load %arg3[%c61] : memref<224xf32, #tpu.memory_space<smem>>
    %c62 = arith.constant 62 : index
    %262 = memref.load %arg3[%c62] : memref<224xf32, #tpu.memory_space<smem>>
    %c63 = arith.constant 63 : index
    %263 = memref.load %arg3[%c63] : memref<224xf32, #tpu.memory_space<smem>>
    %264 = vector.broadcast %256 : f32 to vector<4x128xf32>
    %265 = arith.mulf %255, %264 : vector<4x128xf32>
    %266 = arith.addf %232, %265 : vector<4x128xf32>
    %267 = vector.broadcast %257 : f32 to vector<4x128xf32>
    %268 = arith.mulf %255, %267 : vector<4x128xf32>
    %269 = arith.addf %235, %268 : vector<4x128xf32>
    %270 = vector.broadcast %258 : f32 to vector<4x128xf32>
    %271 = arith.mulf %255, %270 : vector<4x128xf32>
    %272 = arith.addf %238, %271 : vector<4x128xf32>
    %273 = vector.broadcast %259 : f32 to vector<4x128xf32>
    %274 = arith.mulf %255, %273 : vector<4x128xf32>
    %275 = arith.addf %241, %274 : vector<4x128xf32>
    %276 = vector.broadcast %260 : f32 to vector<4x128xf32>
    %277 = arith.mulf %255, %276 : vector<4x128xf32>
    %278 = arith.addf %244, %277 : vector<4x128xf32>
    %279 = vector.broadcast %261 : f32 to vector<4x128xf32>
    %280 = arith.mulf %255, %279 : vector<4x128xf32>
    %281 = arith.addf %247, %280 : vector<4x128xf32>
    %282 = vector.broadcast %262 : f32 to vector<4x128xf32>
    %283 = arith.mulf %255, %282 : vector<4x128xf32>
    %284 = arith.addf %250, %283 : vector<4x128xf32>
    %285 = vector.broadcast %263 : f32 to vector<4x128xf32>
    %286 = arith.mulf %255, %285 : vector<4x128xf32>
    %287 = arith.addf %253, %286 : vector<4x128xf32>
    %c0_40 = arith.constant 0 : index
    %c0_41 = arith.constant 0 : index
    %c4_42 = arith.constant 4 : index
    %c0_43 = arith.constant 0 : index
    %288 = vector.load %arg2[%c0_40, %c0_41, %c4_42, %c0_43] : memref<1x4x16x128xf32, #tpu.memory_space<vmem>>, vector<1x1x4x128xf32>
    %289 = vector.shape_cast %288 : vector<1x1x4x128xf32> to vector<4x128xf32>
    %c64 = arith.constant 64 : index
    %290 = memref.load %arg3[%c64] : memref<224xf32, #tpu.memory_space<smem>>
    %c65 = arith.constant 65 : index
    %291 = memref.load %arg3[%c65] : memref<224xf32, #tpu.memory_space<smem>>
    %c66 = arith.constant 66 : index
    %292 = memref.load %arg3[%c66] : memref<224xf32, #tpu.memory_space<smem>>
    %c67 = arith.constant 67 : index
    %293 = memref.load %arg3[%c67] : memref<224xf32, #tpu.memory_space<smem>>
    %c68 = arith.constant 68 : index
    %294 = memref.load %arg3[%c68] : memref<224xf32, #tpu.memory_space<smem>>
    %c69 = arith.constant 69 : index
    %295 = memref.load %arg3[%c69] : memref<224xf32, #tpu.memory_space<smem>>
    %c70 = arith.constant 70 : index
    %296 = memref.load %arg3[%c70] : memref<224xf32, #tpu.memory_space<smem>>
    %c71 = arith.constant 71 : index
    %297 = memref.load %arg3[%c71] : memref<224xf32, #tpu.memory_space<smem>>
    %298 = vector.broadcast %290 : f32 to vector<4x128xf32>
    %299 = arith.mulf %289, %298 : vector<4x128xf32>
    %300 = arith.addf %266, %299 : vector<4x128xf32>
    %301 = vector.broadcast %291 : f32 to vector<4x128xf32>
    %302 = arith.mulf %289, %301 : vector<4x128xf32>
    %303 = arith.addf %269, %302 : vector<4x128xf32>
    %304 = vector.broadcast %292 : f32 to vector<4x128xf32>
    %305 = arith.mulf %289, %304 : vector<4x128xf32>
    %306 = arith.addf %272, %305 : vector<4x128xf32>
    %307 = vector.broadcast %293 : f32 to vector<4x128xf32>
    %308 = arith.mulf %289, %307 : vector<4x128xf32>
    %309 = arith.addf %275, %308 : vector<4x128xf32>
    %310 = vector.broadcast %294 : f32 to vector<4x128xf32>
    %311 = arith.mulf %289, %310 : vector<4x128xf32>
    %312 = arith.addf %278, %311 : vector<4x128xf32>
    %313 = vector.broadcast %295 : f32 to vector<4x128xf32>
    %314 = arith.mulf %289, %313 : vector<4x128xf32>
    %315 = arith.addf %281, %314 : vector<4x128xf32>
    %316 = vector.broadcast %296 : f32 to vector<4x128xf32>
    %317 = arith.mulf %289, %316 : vector<4x128xf32>
    %318 = arith.addf %284, %317 : vector<4x128xf32>
    %319 = vector.broadcast %297 : f32 to vector<4x128xf32>
    %320 = arith.mulf %289, %319 : vector<4x128xf32>
    %321 = arith.addf %287, %320 : vector<4x128xf32>
    %c0_44 = arith.constant 0 : index
    %c1_45 = arith.constant 1 : index
    %c4_46 = arith.constant 4 : index
    %c0_47 = arith.constant 0 : index
    %322 = vector.load %arg2[%c0_44, %c1_45, %c4_46, %c0_47] : memref<1x4x16x128xf32, #tpu.memory_space<vmem>>, vector<1x1x4x128xf32>
    %323 = vector.shape_cast %322 : vector<1x1x4x128xf32> to vector<4x128xf32>
    %c72 = arith.constant 72 : index
    %324 = memref.load %arg3[%c72] : memref<224xf32, #tpu.memory_space<smem>>
    %c73 = arith.constant 73 : index
    %325 = memref.load %arg3[%c73] : memref<224xf32, #tpu.memory_space<smem>>
    %c74 = arith.constant 74 : index
    %326 = memref.load %arg3[%c74] : memref<224xf32, #tpu.memory_space<smem>>
    %c75 = arith.constant 75 : index
    %327 = memref.load %arg3[%c75] : memref<224xf32, #tpu.memory_space<smem>>
    %c76 = arith.constant 76 : index
    %328 = memref.load %arg3[%c76] : memref<224xf32, #tpu.memory_space<smem>>
    %c77 = arith.constant 77 : index
    %329 = memref.load %arg3[%c77] : memref<224xf32, #tpu.memory_space<smem>>
    %c78 = arith.constant 78 : index
    %330 = memref.load %arg3[%c78] : memref<224xf32, #tpu.memory_space<smem>>
    %c79 = arith.constant 79 : index
    %331 = memref.load %arg3[%c79] : memref<224xf32, #tpu.memory_space<smem>>
    %332 = vector.broadcast %324 : f32 to vector<4x128xf32>
    %333 = arith.mulf %323, %332 : vector<4x128xf32>
    %334 = arith.addf %300, %333 : vector<4x128xf32>
    %335 = vector.broadcast %325 : f32 to vector<4x128xf32>
    %336 = arith.mulf %323, %335 : vector<4x128xf32>
    %337 = arith.addf %303, %336 : vector<4x128xf32>
    %338 = vector.broadcast %326 : f32 to vector<4x128xf32>
    %339 = arith.mulf %323, %338 : vector<4x128xf32>
    %340 = arith.addf %306, %339 : vector<4x128xf32>
    %341 = vector.broadcast %327 : f32 to vector<4x128xf32>
    %342 = arith.mulf %323, %341 : vector<4x128xf32>
    %343 = arith.addf %309, %342 : vector<4x128xf32>
    %344 = vector.broadcast %328 : f32 to vector<4x128xf32>
    %345 = arith.mulf %323, %344 : vector<4x128xf32>
    %346 = arith.addf %312, %345 : vector<4x128xf32>
    %347 = vector.broadcast %329 : f32 to vector<4x128xf32>
    %348 = arith.mulf %323, %347 : vector<4x128xf32>
    %349 = arith.addf %315, %348 : vector<4x128xf32>
    %350 = vector.broadcast %330 : f32 to vector<4x128xf32>
    %351 = arith.mulf %323, %350 : vector<4x128xf32>
    %352 = arith.addf %318, %351 : vector<4x128xf32>
    %353 = vector.broadcast %331 : f32 to vector<4x128xf32>
    %354 = arith.mulf %323, %353 : vector<4x128xf32>
    %355 = arith.addf %321, %354 : vector<4x128xf32>
    %c0_48 = arith.constant 0 : index
    %c2_49 = arith.constant 2 : index
    %c4_50 = arith.constant 4 : index
    %c0_51 = arith.constant 0 : index
    %356 = vector.load %arg2[%c0_48, %c2_49, %c4_50, %c0_51] : memref<1x4x16x128xf32, #tpu.memory_space<vmem>>, vector<1x1x4x128xf32>
    %357 = vector.shape_cast %356 : vector<1x1x4x128xf32> to vector<4x128xf32>
    %c80 = arith.constant 80 : index
    %358 = memref.load %arg3[%c80] : memref<224xf32, #tpu.memory_space<smem>>
    %c81 = arith.constant 81 : index
    %359 = memref.load %arg3[%c81] : memref<224xf32, #tpu.memory_space<smem>>
    %c82 = arith.constant 82 : index
    %360 = memref.load %arg3[%c82] : memref<224xf32, #tpu.memory_space<smem>>
    %c83 = arith.constant 83 : index
    %361 = memref.load %arg3[%c83] : memref<224xf32, #tpu.memory_space<smem>>
    %c84 = arith.constant 84 : index
    %362 = memref.load %arg3[%c84] : memref<224xf32, #tpu.memory_space<smem>>
    %c85 = arith.constant 85 : index
    %363 = memref.load %arg3[%c85] : memref<224xf32, #tpu.memory_space<smem>>
    %c86 = arith.constant 86 : index
    %364 = memref.load %arg3[%c86] : memref<224xf32, #tpu.memory_space<smem>>
    %c87 = arith.constant 87 : index
    %365 = memref.load %arg3[%c87] : memref<224xf32, #tpu.memory_space<smem>>
    %366 = vector.broadcast %358 : f32 to vector<4x128xf32>
    %367 = arith.mulf %357, %366 : vector<4x128xf32>
    %368 = arith.addf %334, %367 : vector<4x128xf32>
    %369 = vector.broadcast %359 : f32 to vector<4x128xf32>
    %370 = arith.mulf %357, %369 : vector<4x128xf32>
    %371 = arith.addf %337, %370 : vector<4x128xf32>
    %372 = vector.broadcast %360 : f32 to vector<4x128xf32>
    %373 = arith.mulf %357, %372 : vector<4x128xf32>
    %374 = arith.addf %340, %373 : vector<4x128xf32>
    %375 = vector.broadcast %361 : f32 to vector<4x128xf32>
    %376 = arith.mulf %357, %375 : vector<4x128xf32>
    %377 = arith.addf %343, %376 : vector<4x128xf32>
    %378 = vector.broadcast %362 : f32 to vector<4x128xf32>
    %379 = arith.mulf %357, %378 : vector<4x128xf32>
    %380 = arith.addf %346, %379 : vector<4x128xf32>
    %381 = vector.broadcast %363 : f32 to vector<4x128xf32>
    %382 = arith.mulf %357, %381 : vector<4x128xf32>
    %383 = arith.addf %349, %382 : vector<4x128xf32>
    %384 = vector.broadcast %364 : f32 to vector<4x128xf32>
    %385 = arith.mulf %357, %384 : vector<4x128xf32>
    %386 = arith.addf %352, %385 : vector<4x128xf32>
    %387 = vector.broadcast %365 : f32 to vector<4x128xf32>
    %388 = arith.mulf %357, %387 : vector<4x128xf32>
    %389 = arith.addf %355, %388 : vector<4x128xf32>
    %c0_52 = arith.constant 0 : index
    %c3_53 = arith.constant 3 : index
    %c4_54 = arith.constant 4 : index
    %c0_55 = arith.constant 0 : index
    %390 = vector.load %arg2[%c0_52, %c3_53, %c4_54, %c0_55] : memref<1x4x16x128xf32, #tpu.memory_space<vmem>>, vector<1x1x4x128xf32>
    %391 = vector.shape_cast %390 : vector<1x1x4x128xf32> to vector<4x128xf32>
    %c88 = arith.constant 88 : index
    %392 = memref.load %arg3[%c88] : memref<224xf32, #tpu.memory_space<smem>>
    %c89 = arith.constant 89 : index
    %393 = memref.load %arg3[%c89] : memref<224xf32, #tpu.memory_space<smem>>
    %c90 = arith.constant 90 : index
    %394 = memref.load %arg3[%c90] : memref<224xf32, #tpu.memory_space<smem>>
    %c91 = arith.constant 91 : index
    %395 = memref.load %arg3[%c91] : memref<224xf32, #tpu.memory_space<smem>>
    %c92 = arith.constant 92 : index
    %396 = memref.load %arg3[%c92] : memref<224xf32, #tpu.memory_space<smem>>
    %c93 = arith.constant 93 : index
    %397 = memref.load %arg3[%c93] : memref<224xf32, #tpu.memory_space<smem>>
    %c94 = arith.constant 94 : index
    %398 = memref.load %arg3[%c94] : memref<224xf32, #tpu.memory_space<smem>>
    %c95 = arith.constant 95 : index
    %399 = memref.load %arg3[%c95] : memref<224xf32, #tpu.memory_space<smem>>
    %400 = vector.broadcast %392 : f32 to vector<4x128xf32>
    %401 = arith.mulf %391, %400 : vector<4x128xf32>
    %402 = arith.addf %368, %401 : vector<4x128xf32>
    %403 = vector.broadcast %393 : f32 to vector<4x128xf32>
    %404 = arith.mulf %391, %403 : vector<4x128xf32>
    %405 = arith.addf %371, %404 : vector<4x128xf32>
    %406 = vector.broadcast %394 : f32 to vector<4x128xf32>
    %407 = arith.mulf %391, %406 : vector<4x128xf32>
    %408 = arith.addf %374, %407 : vector<4x128xf32>
    %409 = vector.broadcast %395 : f32 to vector<4x128xf32>
    %410 = arith.mulf %391, %409 : vector<4x128xf32>
    %411 = arith.addf %377, %410 : vector<4x128xf32>
    %412 = vector.broadcast %396 : f32 to vector<4x128xf32>
    %413 = arith.mulf %391, %412 : vector<4x128xf32>
    %414 = arith.addf %380, %413 : vector<4x128xf32>
    %415 = vector.broadcast %397 : f32 to vector<4x128xf32>
    %416 = arith.mulf %391, %415 : vector<4x128xf32>
    %417 = arith.addf %383, %416 : vector<4x128xf32>
    %418 = vector.broadcast %398 : f32 to vector<4x128xf32>
    %419 = arith.mulf %391, %418 : vector<4x128xf32>
    %420 = arith.addf %386, %419 : vector<4x128xf32>
    %421 = vector.broadcast %399 : f32 to vector<4x128xf32>
    %422 = arith.mulf %391, %421 : vector<4x128xf32>
    %423 = arith.addf %389, %422 : vector<4x128xf32>
    %c0_56 = arith.constant 0 : index
    %c0_57 = arith.constant 0 : index
    %c6_58 = arith.constant 6 : index
    %c0_59 = arith.constant 0 : index
    %424 = vector.load %arg2[%c0_56, %c0_57, %c6_58, %c0_59] : memref<1x4x16x128xf32, #tpu.memory_space<vmem>>, vector<1x1x4x128xf32>
    %425 = vector.shape_cast %424 : vector<1x1x4x128xf32> to vector<4x128xf32>
    %c96 = arith.constant 96 : index
    %426 = memref.load %arg3[%c96] : memref<224xf32, #tpu.memory_space<smem>>
    %c97 = arith.constant 97 : index
    %427 = memref.load %arg3[%c97] : memref<224xf32, #tpu.memory_space<smem>>
    %c98 = arith.constant 98 : index
    %428 = memref.load %arg3[%c98] : memref<224xf32, #tpu.memory_space<smem>>
    %c99 = arith.constant 99 : index
    %429 = memref.load %arg3[%c99] : memref<224xf32, #tpu.memory_space<smem>>
    %c100 = arith.constant 100 : index
    %430 = memref.load %arg3[%c100] : memref<224xf32, #tpu.memory_space<smem>>
    %c101 = arith.constant 101 : index
    %431 = memref.load %arg3[%c101] : memref<224xf32, #tpu.memory_space<smem>>
    %c102 = arith.constant 102 : index
    %432 = memref.load %arg3[%c102] : memref<224xf32, #tpu.memory_space<smem>>
    %c103 = arith.constant 103 : index
    %433 = memref.load %arg3[%c103] : memref<224xf32, #tpu.memory_space<smem>>
    %434 = vector.broadcast %426 : f32 to vector<4x128xf32>
    %435 = arith.mulf %425, %434 : vector<4x128xf32>
    %436 = arith.addf %402, %435 : vector<4x128xf32>
    %437 = vector.broadcast %427 : f32 to vector<4x128xf32>
    %438 = arith.mulf %425, %437 : vector<4x128xf32>
    %439 = arith.addf %405, %438 : vector<4x128xf32>
    %440 = vector.broadcast %428 : f32 to vector<4x128xf32>
    %441 = arith.mulf %425, %440 : vector<4x128xf32>
    %442 = arith.addf %408, %441 : vector<4x128xf32>
    %443 = vector.broadcast %429 : f32 to vector<4x128xf32>
    %444 = arith.mulf %425, %443 : vector<4x128xf32>
    %445 = arith.addf %411, %444 : vector<4x128xf32>
    %446 = vector.broadcast %430 : f32 to vector<4x128xf32>
    %447 = arith.mulf %425, %446 : vector<4x128xf32>
    %448 = arith.addf %414, %447 : vector<4x128xf32>
    %449 = vector.broadcast %431 : f32 to vector<4x128xf32>
    %450 = arith.mulf %425, %449 : vector<4x128xf32>
    %451 = arith.addf %417, %450 : vector<4x128xf32>
    %452 = vector.broadcast %432 : f32 to vector<4x128xf32>
    %453 = arith.mulf %425, %452 : vector<4x128xf32>
    %454 = arith.addf %420, %453 : vector<4x128xf32>
    %455 = vector.broadcast %433 : f32 to vector<4x128xf32>
    %456 = arith.mulf %425, %455 : vector<4x128xf32>
    %457 = arith.addf %423, %456 : vector<4x128xf32>
    %c0_60 = arith.constant 0 : index
    %c1_61 = arith.constant 1 : index
    %c6_62 = arith.constant 6 : index
    %c0_63 = arith.constant 0 : index
    %458 = vector.load %arg2[%c0_60, %c1_61, %c6_62, %c0_63] : memref<1x4x16x128xf32, #tpu.memory_space<vmem>>, vector<1x1x4x128xf32>
    %459 = vector.shape_cast %458 : vector<1x1x4x128xf32> to vector<4x128xf32>
    %c104 = arith.constant 104 : index
    %460 = memref.load %arg3[%c104] : memref<224xf32, #tpu.memory_space<smem>>
    %c105 = arith.constant 105 : index
    %461 = memref.load %arg3[%c105] : memref<224xf32, #tpu.memory_space<smem>>
    %c106 = arith.constant 106 : index
    %462 = memref.load %arg3[%c106] : memref<224xf32, #tpu.memory_space<smem>>
    %c107 = arith.constant 107 : index
    %463 = memref.load %arg3[%c107] : memref<224xf32, #tpu.memory_space<smem>>
    %c108 = arith.constant 108 : index
    %464 = memref.load %arg3[%c108] : memref<224xf32, #tpu.memory_space<smem>>
    %c109 = arith.constant 109 : index
    %465 = memref.load %arg3[%c109] : memref<224xf32, #tpu.memory_space<smem>>
    %c110 = arith.constant 110 : index
    %466 = memref.load %arg3[%c110] : memref<224xf32, #tpu.memory_space<smem>>
    %c111 = arith.constant 111 : index
    %467 = memref.load %arg3[%c111] : memref<224xf32, #tpu.memory_space<smem>>
    %468 = vector.broadcast %460 : f32 to vector<4x128xf32>
    %469 = arith.mulf %459, %468 : vector<4x128xf32>
    %470 = arith.addf %436, %469 : vector<4x128xf32>
    %471 = vector.broadcast %461 : f32 to vector<4x128xf32>
    %472 = arith.mulf %459, %471 : vector<4x128xf32>
    %473 = arith.addf %439, %472 : vector<4x128xf32>
    %474 = vector.broadcast %462 : f32 to vector<4x128xf32>
    %475 = arith.mulf %459, %474 : vector<4x128xf32>
    %476 = arith.addf %442, %475 : vector<4x128xf32>
    %477 = vector.broadcast %463 : f32 to vector<4x128xf32>
    %478 = arith.mulf %459, %477 : vector<4x128xf32>
    %479 = arith.addf %445, %478 : vector<4x128xf32>
    %480 = vector.broadcast %464 : f32 to vector<4x128xf32>
    %481 = arith.mulf %459, %480 : vector<4x128xf32>
    %482 = arith.addf %448, %481 : vector<4x128xf32>
    %483 = vector.broadcast %465 : f32 to vector<4x128xf32>
    %484 = arith.mulf %459, %483 : vector<4x128xf32>
    %485 = arith.addf %451, %484 : vector<4x128xf32>
    %486 = vector.broadcast %466 : f32 to vector<4x128xf32>
    %487 = arith.mulf %459, %486 : vector<4x128xf32>
    %488 = arith.addf %454, %487 : vector<4x128xf32>
    %489 = vector.broadcast %467 : f32 to vector<4x128xf32>
    %490 = arith.mulf %459, %489 : vector<4x128xf32>
    %491 = arith.addf %457, %490 : vector<4x128xf32>
    %c0_64 = arith.constant 0 : index
    %c2_65 = arith.constant 2 : index
    %c6_66 = arith.constant 6 : index
    %c0_67 = arith.constant 0 : index
    %492 = vector.load %arg2[%c0_64, %c2_65, %c6_66, %c0_67] : memref<1x4x16x128xf32, #tpu.memory_space<vmem>>, vector<1x1x4x128xf32>
    %493 = vector.shape_cast %492 : vector<1x1x4x128xf32> to vector<4x128xf32>
    %c112 = arith.constant 112 : index
    %494 = memref.load %arg3[%c112] : memref<224xf32, #tpu.memory_space<smem>>
    %c113 = arith.constant 113 : index
    %495 = memref.load %arg3[%c113] : memref<224xf32, #tpu.memory_space<smem>>
    %c114 = arith.constant 114 : index
    %496 = memref.load %arg3[%c114] : memref<224xf32, #tpu.memory_space<smem>>
    %c115 = arith.constant 115 : index
    %497 = memref.load %arg3[%c115] : memref<224xf32, #tpu.memory_space<smem>>
    %c116 = arith.constant 116 : index
    %498 = memref.load %arg3[%c116] : memref<224xf32, #tpu.memory_space<smem>>
    %c117 = arith.constant 117 : index
    %499 = memref.load %arg3[%c117] : memref<224xf32, #tpu.memory_space<smem>>
    %c118 = arith.constant 118 : index
    %500 = memref.load %arg3[%c118] : memref<224xf32, #tpu.memory_space<smem>>
    %c119 = arith.constant 119 : index
    %501 = memref.load %arg3[%c119] : memref<224xf32, #tpu.memory_space<smem>>
    %502 = vector.broadcast %494 : f32 to vector<4x128xf32>
    %503 = arith.mulf %493, %502 : vector<4x128xf32>
    %504 = arith.addf %470, %503 : vector<4x128xf32>
    %505 = vector.broadcast %495 : f32 to vector<4x128xf32>
    %506 = arith.mulf %493, %505 : vector<4x128xf32>
    %507 = arith.addf %473, %506 : vector<4x128xf32>
    %508 = vector.broadcast %496 : f32 to vector<4x128xf32>
    %509 = arith.mulf %493, %508 : vector<4x128xf32>
    %510 = arith.addf %476, %509 : vector<4x128xf32>
    %511 = vector.broadcast %497 : f32 to vector<4x128xf32>
    %512 = arith.mulf %493, %511 : vector<4x128xf32>
    %513 = arith.addf %479, %512 : vector<4x128xf32>
    %514 = vector.broadcast %498 : f32 to vector<4x128xf32>
    %515 = arith.mulf %493, %514 : vector<4x128xf32>
    %516 = arith.addf %482, %515 : vector<4x128xf32>
    %517 = vector.broadcast %499 : f32 to vector<4x128xf32>
    %518 = arith.mulf %493, %517 : vector<4x128xf32>
    %519 = arith.addf %485, %518 : vector<4x128xf32>
    %520 = vector.broadcast %500 : f32 to vector<4x128xf32>
    %521 = arith.mulf %493, %520 : vector<4x128xf32>
    %522 = arith.addf %488, %521 : vector<4x128xf32>
    %523 = vector.broadcast %501 : f32 to vector<4x128xf32>
    %524 = arith.mulf %493, %523 : vector<4x128xf32>
    %525 = arith.addf %491, %524 : vector<4x128xf32>
    %c0_68 = arith.constant 0 : index
    %c3_69 = arith.constant 3 : index
    %c6_70 = arith.constant 6 : index
    %c0_71 = arith.constant 0 : index
    %526 = vector.load %arg2[%c0_68, %c3_69, %c6_70, %c0_71] : memref<1x4x16x128xf32, #tpu.memory_space<vmem>>, vector<1x1x4x128xf32>
    %527 = vector.shape_cast %526 : vector<1x1x4x128xf32> to vector<4x128xf32>
    %c120 = arith.constant 120 : index
    %528 = memref.load %arg3[%c120] : memref<224xf32, #tpu.memory_space<smem>>
    %c121 = arith.constant 121 : index
    %529 = memref.load %arg3[%c121] : memref<224xf32, #tpu.memory_space<smem>>
    %c122 = arith.constant 122 : index
    %530 = memref.load %arg3[%c122] : memref<224xf32, #tpu.memory_space<smem>>
    %c123 = arith.constant 123 : index
    %531 = memref.load %arg3[%c123] : memref<224xf32, #tpu.memory_space<smem>>
    %c124 = arith.constant 124 : index
    %532 = memref.load %arg3[%c124] : memref<224xf32, #tpu.memory_space<smem>>
    %c125 = arith.constant 125 : index
    %533 = memref.load %arg3[%c125] : memref<224xf32, #tpu.memory_space<smem>>
    %c126 = arith.constant 126 : index
    %534 = memref.load %arg3[%c126] : memref<224xf32, #tpu.memory_space<smem>>
    %c127 = arith.constant 127 : index
    %535 = memref.load %arg3[%c127] : memref<224xf32, #tpu.memory_space<smem>>
    %536 = vector.broadcast %528 : f32 to vector<4x128xf32>
    %537 = arith.mulf %527, %536 : vector<4x128xf32>
    %538 = arith.addf %504, %537 : vector<4x128xf32>
    %539 = vector.broadcast %529 : f32 to vector<4x128xf32>
    %540 = arith.mulf %527, %539 : vector<4x128xf32>
    %541 = arith.addf %507, %540 : vector<4x128xf32>
    %542 = vector.broadcast %530 : f32 to vector<4x128xf32>
    %543 = arith.mulf %527, %542 : vector<4x128xf32>
    %544 = arith.addf %510, %543 : vector<4x128xf32>
    %545 = vector.broadcast %531 : f32 to vector<4x128xf32>
    %546 = arith.mulf %527, %545 : vector<4x128xf32>
    %547 = arith.addf %513, %546 : vector<4x128xf32>
    %548 = vector.broadcast %532 : f32 to vector<4x128xf32>
    %549 = arith.mulf %527, %548 : vector<4x128xf32>
    %550 = arith.addf %516, %549 : vector<4x128xf32>
    %551 = vector.broadcast %533 : f32 to vector<4x128xf32>
    %552 = arith.mulf %527, %551 : vector<4x128xf32>
    %553 = arith.addf %519, %552 : vector<4x128xf32>
    %554 = vector.broadcast %534 : f32 to vector<4x128xf32>
    %555 = arith.mulf %527, %554 : vector<4x128xf32>
    %556 = arith.addf %522, %555 : vector<4x128xf32>
    %557 = vector.broadcast %535 : f32 to vector<4x128xf32>
    %558 = arith.mulf %527, %557 : vector<4x128xf32>
    %559 = arith.addf %525, %558 : vector<4x128xf32>
    %c0_72 = arith.constant 0 : index
    %c0_73 = arith.constant 0 : index
    %c8_74 = arith.constant 8 : index
    %c0_75 = arith.constant 0 : index
    %560 = vector.load %arg2[%c0_72, %c0_73, %c8_74, %c0_75] : memref<1x4x16x128xf32, #tpu.memory_space<vmem>>, vector<1x1x4x128xf32>
    %561 = vector.shape_cast %560 : vector<1x1x4x128xf32> to vector<4x128xf32>
    %c128 = arith.constant 128 : index
    %562 = memref.load %arg3[%c128] : memref<224xf32, #tpu.memory_space<smem>>
    %c129 = arith.constant 129 : index
    %563 = memref.load %arg3[%c129] : memref<224xf32, #tpu.memory_space<smem>>
    %c130 = arith.constant 130 : index
    %564 = memref.load %arg3[%c130] : memref<224xf32, #tpu.memory_space<smem>>
    %c131 = arith.constant 131 : index
    %565 = memref.load %arg3[%c131] : memref<224xf32, #tpu.memory_space<smem>>
    %c132 = arith.constant 132 : index
    %566 = memref.load %arg3[%c132] : memref<224xf32, #tpu.memory_space<smem>>
    %c133 = arith.constant 133 : index
    %567 = memref.load %arg3[%c133] : memref<224xf32, #tpu.memory_space<smem>>
    %c134 = arith.constant 134 : index
    %568 = memref.load %arg3[%c134] : memref<224xf32, #tpu.memory_space<smem>>
    %c135 = arith.constant 135 : index
    %569 = memref.load %arg3[%c135] : memref<224xf32, #tpu.memory_space<smem>>
    %570 = vector.broadcast %562 : f32 to vector<4x128xf32>
    %571 = arith.mulf %561, %570 : vector<4x128xf32>
    %572 = arith.addf %538, %571 : vector<4x128xf32>
    %573 = vector.broadcast %563 : f32 to vector<4x128xf32>
    %574 = arith.mulf %561, %573 : vector<4x128xf32>
    %575 = arith.addf %541, %574 : vector<4x128xf32>
    %576 = vector.broadcast %564 : f32 to vector<4x128xf32>
    %577 = arith.mulf %561, %576 : vector<4x128xf32>
    %578 = arith.addf %544, %577 : vector<4x128xf32>
    %579 = vector.broadcast %565 : f32 to vector<4x128xf32>
    %580 = arith.mulf %561, %579 : vector<4x128xf32>
    %581 = arith.addf %547, %580 : vector<4x128xf32>
    %582 = vector.broadcast %566 : f32 to vector<4x128xf32>
    %583 = arith.mulf %561, %582 : vector<4x128xf32>
    %584 = arith.addf %550, %583 : vector<4x128xf32>
    %585 = vector.broadcast %567 : f32 to vector<4x128xf32>
    %586 = arith.mulf %561, %585 : vector<4x128xf32>
    %587 = arith.addf %553, %586 : vector<4x128xf32>
    %588 = vector.broadcast %568 : f32 to vector<4x128xf32>
    %589 = arith.mulf %561, %588 : vector<4x128xf32>
    %590 = arith.addf %556, %589 : vector<4x128xf32>
    %591 = vector.broadcast %569 : f32 to vector<4x128xf32>
    %592 = arith.mulf %561, %591 : vector<4x128xf32>
    %593 = arith.addf %559, %592 : vector<4x128xf32>
    %c0_76 = arith.constant 0 : index
    %c1_77 = arith.constant 1 : index
    %c8_78 = arith.constant 8 : index
    %c0_79 = arith.constant 0 : index
    %594 = vector.load %arg2[%c0_76, %c1_77, %c8_78, %c0_79] : memref<1x4x16x128xf32, #tpu.memory_space<vmem>>, vector<1x1x4x128xf32>
    %595 = vector.shape_cast %594 : vector<1x1x4x128xf32> to vector<4x128xf32>
    %c136 = arith.constant 136 : index
    %596 = memref.load %arg3[%c136] : memref<224xf32, #tpu.memory_space<smem>>
    %c137 = arith.constant 137 : index
    %597 = memref.load %arg3[%c137] : memref<224xf32, #tpu.memory_space<smem>>
    %c138 = arith.constant 138 : index
    %598 = memref.load %arg3[%c138] : memref<224xf32, #tpu.memory_space<smem>>
    %c139 = arith.constant 139 : index
    %599 = memref.load %arg3[%c139] : memref<224xf32, #tpu.memory_space<smem>>
    %c140 = arith.constant 140 : index
    %600 = memref.load %arg3[%c140] : memref<224xf32, #tpu.memory_space<smem>>
    %c141 = arith.constant 141 : index
    %601 = memref.load %arg3[%c141] : memref<224xf32, #tpu.memory_space<smem>>
    %c142 = arith.constant 142 : index
    %602 = memref.load %arg3[%c142] : memref<224xf32, #tpu.memory_space<smem>>
    %c143 = arith.constant 143 : index
    %603 = memref.load %arg3[%c143] : memref<224xf32, #tpu.memory_space<smem>>
    %604 = vector.broadcast %596 : f32 to vector<4x128xf32>
    %605 = arith.mulf %595, %604 : vector<4x128xf32>
    %606 = arith.addf %572, %605 : vector<4x128xf32>
    %607 = vector.broadcast %597 : f32 to vector<4x128xf32>
    %608 = arith.mulf %595, %607 : vector<4x128xf32>
    %609 = arith.addf %575, %608 : vector<4x128xf32>
    %610 = vector.broadcast %598 : f32 to vector<4x128xf32>
    %611 = arith.mulf %595, %610 : vector<4x128xf32>
    %612 = arith.addf %578, %611 : vector<4x128xf32>
    %613 = vector.broadcast %599 : f32 to vector<4x128xf32>
    %614 = arith.mulf %595, %613 : vector<4x128xf32>
    %615 = arith.addf %581, %614 : vector<4x128xf32>
    %616 = vector.broadcast %600 : f32 to vector<4x128xf32>
    %617 = arith.mulf %595, %616 : vector<4x128xf32>
    %618 = arith.addf %584, %617 : vector<4x128xf32>
    %619 = vector.broadcast %601 : f32 to vector<4x128xf32>
    %620 = arith.mulf %595, %619 : vector<4x128xf32>
    %621 = arith.addf %587, %620 : vector<4x128xf32>
    %622 = vector.broadcast %602 : f32 to vector<4x128xf32>
    %623 = arith.mulf %595, %622 : vector<4x128xf32>
    %624 = arith.addf %590, %623 : vector<4x128xf32>
    %625 = vector.broadcast %603 : f32 to vector<4x128xf32>
    %626 = arith.mulf %595, %625 : vector<4x128xf32>
    %627 = arith.addf %593, %626 : vector<4x128xf32>
    %c0_80 = arith.constant 0 : index
    %c2_81 = arith.constant 2 : index
    %c8_82 = arith.constant 8 : index
    %c0_83 = arith.constant 0 : index
    %628 = vector.load %arg2[%c0_80, %c2_81, %c8_82, %c0_83] : memref<1x4x16x128xf32, #tpu.memory_space<vmem>>, vector<1x1x4x128xf32>
    %629 = vector.shape_cast %628 : vector<1x1x4x128xf32> to vector<4x128xf32>
    %c144 = arith.constant 144 : index
    %630 = memref.load %arg3[%c144] : memref<224xf32, #tpu.memory_space<smem>>
    %c145 = arith.constant 145 : index
    %631 = memref.load %arg3[%c145] : memref<224xf32, #tpu.memory_space<smem>>
    %c146 = arith.constant 146 : index
    %632 = memref.load %arg3[%c146] : memref<224xf32, #tpu.memory_space<smem>>
    %c147 = arith.constant 147 : index
    %633 = memref.load %arg3[%c147] : memref<224xf32, #tpu.memory_space<smem>>
    %c148 = arith.constant 148 : index
    %634 = memref.load %arg3[%c148] : memref<224xf32, #tpu.memory_space<smem>>
    %c149 = arith.constant 149 : index
    %635 = memref.load %arg3[%c149] : memref<224xf32, #tpu.memory_space<smem>>
    %c150 = arith.constant 150 : index
    %636 = memref.load %arg3[%c150] : memref<224xf32, #tpu.memory_space<smem>>
    %c151 = arith.constant 151 : index
    %637 = memref.load %arg3[%c151] : memref<224xf32, #tpu.memory_space<smem>>
    %638 = vector.broadcast %630 : f32 to vector<4x128xf32>
    %639 = arith.mulf %629, %638 : vector<4x128xf32>
    %640 = arith.addf %606, %639 : vector<4x128xf32>
    %641 = vector.broadcast %631 : f32 to vector<4x128xf32>
    %642 = arith.mulf %629, %641 : vector<4x128xf32>
    %643 = arith.addf %609, %642 : vector<4x128xf32>
    %644 = vector.broadcast %632 : f32 to vector<4x128xf32>
    %645 = arith.mulf %629, %644 : vector<4x128xf32>
    %646 = arith.addf %612, %645 : vector<4x128xf32>
    %647 = vector.broadcast %633 : f32 to vector<4x128xf32>
    %648 = arith.mulf %629, %647 : vector<4x128xf32>
    %649 = arith.addf %615, %648 : vector<4x128xf32>
    %650 = vector.broadcast %634 : f32 to vector<4x128xf32>
    %651 = arith.mulf %629, %650 : vector<4x128xf32>
    %652 = arith.addf %618, %651 : vector<4x128xf32>
    %653 = vector.broadcast %635 : f32 to vector<4x128xf32>
    %654 = arith.mulf %629, %653 : vector<4x128xf32>
    %655 = arith.addf %621, %654 : vector<4x128xf32>
    %656 = vector.broadcast %636 : f32 to vector<4x128xf32>
    %657 = arith.mulf %629, %656 : vector<4x128xf32>
    %658 = arith.addf %624, %657 : vector<4x128xf32>
    %659 = vector.broadcast %637 : f32 to vector<4x128xf32>
    %660 = arith.mulf %629, %659 : vector<4x128xf32>
    %661 = arith.addf %627, %660 : vector<4x128xf32>
    %c0_84 = arith.constant 0 : index
    %c3_85 = arith.constant 3 : index
    %c8_86 = arith.constant 8 : index
    %c0_87 = arith.constant 0 : index
    %662 = vector.load %arg2[%c0_84, %c3_85, %c8_86, %c0_87] : memref<1x4x16x128xf32, #tpu.memory_space<vmem>>, vector<1x1x4x128xf32>
    %663 = vector.shape_cast %662 : vector<1x1x4x128xf32> to vector<4x128xf32>
    %c152 = arith.constant 152 : index
    %664 = memref.load %arg3[%c152] : memref<224xf32, #tpu.memory_space<smem>>
    %c153 = arith.constant 153 : index
    %665 = memref.load %arg3[%c153] : memref<224xf32, #tpu.memory_space<smem>>
    %c154 = arith.constant 154 : index
    %666 = memref.load %arg3[%c154] : memref<224xf32, #tpu.memory_space<smem>>
    %c155 = arith.constant 155 : index
    %667 = memref.load %arg3[%c155] : memref<224xf32, #tpu.memory_space<smem>>
    %c156 = arith.constant 156 : index
    %668 = memref.load %arg3[%c156] : memref<224xf32, #tpu.memory_space<smem>>
    %c157 = arith.constant 157 : index
    %669 = memref.load %arg3[%c157] : memref<224xf32, #tpu.memory_space<smem>>
    %c158 = arith.constant 158 : index
    %670 = memref.load %arg3[%c158] : memref<224xf32, #tpu.memory_space<smem>>
    %c159 = arith.constant 159 : index
    %671 = memref.load %arg3[%c159] : memref<224xf32, #tpu.memory_space<smem>>
    %672 = vector.broadcast %664 : f32 to vector<4x128xf32>
    %673 = arith.mulf %663, %672 : vector<4x128xf32>
    %674 = arith.addf %640, %673 : vector<4x128xf32>
    %675 = vector.broadcast %665 : f32 to vector<4x128xf32>
    %676 = arith.mulf %663, %675 : vector<4x128xf32>
    %677 = arith.addf %643, %676 : vector<4x128xf32>
    %678 = vector.broadcast %666 : f32 to vector<4x128xf32>
    %679 = arith.mulf %663, %678 : vector<4x128xf32>
    %680 = arith.addf %646, %679 : vector<4x128xf32>
    %681 = vector.broadcast %667 : f32 to vector<4x128xf32>
    %682 = arith.mulf %663, %681 : vector<4x128xf32>
    %683 = arith.addf %649, %682 : vector<4x128xf32>
    %684 = vector.broadcast %668 : f32 to vector<4x128xf32>
    %685 = arith.mulf %663, %684 : vector<4x128xf32>
    %686 = arith.addf %652, %685 : vector<4x128xf32>
    %687 = vector.broadcast %669 : f32 to vector<4x128xf32>
    %688 = arith.mulf %663, %687 : vector<4x128xf32>
    %689 = arith.addf %655, %688 : vector<4x128xf32>
    %690 = vector.broadcast %670 : f32 to vector<4x128xf32>
    %691 = arith.mulf %663, %690 : vector<4x128xf32>
    %692 = arith.addf %658, %691 : vector<4x128xf32>
    %693 = vector.broadcast %671 : f32 to vector<4x128xf32>
    %694 = arith.mulf %663, %693 : vector<4x128xf32>
    %695 = arith.addf %661, %694 : vector<4x128xf32>
    %c0_88 = arith.constant 0 : index
    %c0_89 = arith.constant 0 : index
    %c10_90 = arith.constant 10 : index
    %c0_91 = arith.constant 0 : index
    %696 = vector.load %arg2[%c0_88, %c0_89, %c10_90, %c0_91] : memref<1x4x16x128xf32, #tpu.memory_space<vmem>>, vector<1x1x4x128xf32>
    %697 = vector.shape_cast %696 : vector<1x1x4x128xf32> to vector<4x128xf32>
    %c160 = arith.constant 160 : index
    %698 = memref.load %arg3[%c160] : memref<224xf32, #tpu.memory_space<smem>>
    %c161 = arith.constant 161 : index
    %699 = memref.load %arg3[%c161] : memref<224xf32, #tpu.memory_space<smem>>
    %c162 = arith.constant 162 : index
    %700 = memref.load %arg3[%c162] : memref<224xf32, #tpu.memory_space<smem>>
    %c163 = arith.constant 163 : index
    %701 = memref.load %arg3[%c163] : memref<224xf32, #tpu.memory_space<smem>>
    %c164 = arith.constant 164 : index
    %702 = memref.load %arg3[%c164] : memref<224xf32, #tpu.memory_space<smem>>
    %c165 = arith.constant 165 : index
    %703 = memref.load %arg3[%c165] : memref<224xf32, #tpu.memory_space<smem>>
    %c166 = arith.constant 166 : index
    %704 = memref.load %arg3[%c166] : memref<224xf32, #tpu.memory_space<smem>>
    %c167 = arith.constant 167 : index
    %705 = memref.load %arg3[%c167] : memref<224xf32, #tpu.memory_space<smem>>
    %706 = vector.broadcast %698 : f32 to vector<4x128xf32>
    %707 = arith.mulf %697, %706 : vector<4x128xf32>
    %708 = arith.addf %674, %707 : vector<4x128xf32>
    %709 = vector.broadcast %699 : f32 to vector<4x128xf32>
    %710 = arith.mulf %697, %709 : vector<4x128xf32>
    %711 = arith.addf %677, %710 : vector<4x128xf32>
    %712 = vector.broadcast %700 : f32 to vector<4x128xf32>
    %713 = arith.mulf %697, %712 : vector<4x128xf32>
    %714 = arith.addf %680, %713 : vector<4x128xf32>
    %715 = vector.broadcast %701 : f32 to vector<4x128xf32>
    %716 = arith.mulf %697, %715 : vector<4x128xf32>
    %717 = arith.addf %683, %716 : vector<4x128xf32>
    %718 = vector.broadcast %702 : f32 to vector<4x128xf32>
    %719 = arith.mulf %697, %718 : vector<4x128xf32>
    %720 = arith.addf %686, %719 : vector<4x128xf32>
    %721 = vector.broadcast %703 : f32 to vector<4x128xf32>
    %722 = arith.mulf %697, %721 : vector<4x128xf32>
    %723 = arith.addf %689, %722 : vector<4x128xf32>
    %724 = vector.broadcast %704 : f32 to vector<4x128xf32>
    %725 = arith.mulf %697, %724 : vector<4x128xf32>
    %726 = arith.addf %692, %725 : vector<4x128xf32>
    %727 = vector.broadcast %705 : f32 to vector<4x128xf32>
    %728 = arith.mulf %697, %727 : vector<4x128xf32>
    %729 = arith.addf %695, %728 : vector<4x128xf32>
    %c0_92 = arith.constant 0 : index
    %c1_93 = arith.constant 1 : index
    %c10_94 = arith.constant 10 : index
    %c0_95 = arith.constant 0 : index
    %730 = vector.load %arg2[%c0_92, %c1_93, %c10_94, %c0_95] : memref<1x4x16x128xf32, #tpu.memory_space<vmem>>, vector<1x1x4x128xf32>
    %731 = vector.shape_cast %730 : vector<1x1x4x128xf32> to vector<4x128xf32>
    %c168 = arith.constant 168 : index
    %732 = memref.load %arg3[%c168] : memref<224xf32, #tpu.memory_space<smem>>
    %c169 = arith.constant 169 : index
    %733 = memref.load %arg3[%c169] : memref<224xf32, #tpu.memory_space<smem>>
    %c170 = arith.constant 170 : index
    %734 = memref.load %arg3[%c170] : memref<224xf32, #tpu.memory_space<smem>>
    %c171 = arith.constant 171 : index
    %735 = memref.load %arg3[%c171] : memref<224xf32, #tpu.memory_space<smem>>
    %c172 = arith.constant 172 : index
    %736 = memref.load %arg3[%c172] : memref<224xf32, #tpu.memory_space<smem>>
    %c173 = arith.constant 173 : index
    %737 = memref.load %arg3[%c173] : memref<224xf32, #tpu.memory_space<smem>>
    %c174 = arith.constant 174 : index
    %738 = memref.load %arg3[%c174] : memref<224xf32, #tpu.memory_space<smem>>
    %c175 = arith.constant 175 : index
    %739 = memref.load %arg3[%c175] : memref<224xf32, #tpu.memory_space<smem>>
    %740 = vector.broadcast %732 : f32 to vector<4x128xf32>
    %741 = arith.mulf %731, %740 : vector<4x128xf32>
    %742 = arith.addf %708, %741 : vector<4x128xf32>
    %743 = vector.broadcast %733 : f32 to vector<4x128xf32>
    %744 = arith.mulf %731, %743 : vector<4x128xf32>
    %745 = arith.addf %711, %744 : vector<4x128xf32>
    %746 = vector.broadcast %734 : f32 to vector<4x128xf32>
    %747 = arith.mulf %731, %746 : vector<4x128xf32>
    %748 = arith.addf %714, %747 : vector<4x128xf32>
    %749 = vector.broadcast %735 : f32 to vector<4x128xf32>
    %750 = arith.mulf %731, %749 : vector<4x128xf32>
    %751 = arith.addf %717, %750 : vector<4x128xf32>
    %752 = vector.broadcast %736 : f32 to vector<4x128xf32>
    %753 = arith.mulf %731, %752 : vector<4x128xf32>
    %754 = arith.addf %720, %753 : vector<4x128xf32>
    %755 = vector.broadcast %737 : f32 to vector<4x128xf32>
    %756 = arith.mulf %731, %755 : vector<4x128xf32>
    %757 = arith.addf %723, %756 : vector<4x128xf32>
    %758 = vector.broadcast %738 : f32 to vector<4x128xf32>
    %759 = arith.mulf %731, %758 : vector<4x128xf32>
    %760 = arith.addf %726, %759 : vector<4x128xf32>
    %761 = vector.broadcast %739 : f32 to vector<4x128xf32>
    %762 = arith.mulf %731, %761 : vector<4x128xf32>
    %763 = arith.addf %729, %762 : vector<4x128xf32>
    %c0_96 = arith.constant 0 : index
    %c2_97 = arith.constant 2 : index
    %c10_98 = arith.constant 10 : index
    %c0_99 = arith.constant 0 : index
    %764 = vector.load %arg2[%c0_96, %c2_97, %c10_98, %c0_99] : memref<1x4x16x128xf32, #tpu.memory_space<vmem>>, vector<1x1x4x128xf32>
    %765 = vector.shape_cast %764 : vector<1x1x4x128xf32> to vector<4x128xf32>
    %c176 = arith.constant 176 : index
    %766 = memref.load %arg3[%c176] : memref<224xf32, #tpu.memory_space<smem>>
    %c177 = arith.constant 177 : index
    %767 = memref.load %arg3[%c177] : memref<224xf32, #tpu.memory_space<smem>>
    %c178 = arith.constant 178 : index
    %768 = memref.load %arg3[%c178] : memref<224xf32, #tpu.memory_space<smem>>
    %c179 = arith.constant 179 : index
    %769 = memref.load %arg3[%c179] : memref<224xf32, #tpu.memory_space<smem>>
    %c180 = arith.constant 180 : index
    %770 = memref.load %arg3[%c180] : memref<224xf32, #tpu.memory_space<smem>>
    %c181 = arith.constant 181 : index
    %771 = memref.load %arg3[%c181] : memref<224xf32, #tpu.memory_space<smem>>
    %c182 = arith.constant 182 : index
    %772 = memref.load %arg3[%c182] : memref<224xf32, #tpu.memory_space<smem>>
    %c183 = arith.constant 183 : index
    %773 = memref.load %arg3[%c183] : memref<224xf32, #tpu.memory_space<smem>>
    %774 = vector.broadcast %766 : f32 to vector<4x128xf32>
    %775 = arith.mulf %765, %774 : vector<4x128xf32>
    %776 = arith.addf %742, %775 : vector<4x128xf32>
    %777 = vector.broadcast %767 : f32 to vector<4x128xf32>
    %778 = arith.mulf %765, %777 : vector<4x128xf32>
    %779 = arith.addf %745, %778 : vector<4x128xf32>
    %780 = vector.broadcast %768 : f32 to vector<4x128xf32>
    %781 = arith.mulf %765, %780 : vector<4x128xf32>
    %782 = arith.addf %748, %781 : vector<4x128xf32>
    %783 = vector.broadcast %769 : f32 to vector<4x128xf32>
    %784 = arith.mulf %765, %783 : vector<4x128xf32>
    %785 = arith.addf %751, %784 : vector<4x128xf32>
    %786 = vector.broadcast %770 : f32 to vector<4x128xf32>
    %787 = arith.mulf %765, %786 : vector<4x128xf32>
    %788 = arith.addf %754, %787 : vector<4x128xf32>
    %789 = vector.broadcast %771 : f32 to vector<4x128xf32>
    %790 = arith.mulf %765, %789 : vector<4x128xf32>
    %791 = arith.addf %757, %790 : vector<4x128xf32>
    %792 = vector.broadcast %772 : f32 to vector<4x128xf32>
    %793 = arith.mulf %765, %792 : vector<4x128xf32>
    %794 = arith.addf %760, %793 : vector<4x128xf32>
    %795 = vector.broadcast %773 : f32 to vector<4x128xf32>
    %796 = arith.mulf %765, %795 : vector<4x128xf32>
    %797 = arith.addf %763, %796 : vector<4x128xf32>
    %c0_100 = arith.constant 0 : index
    %c3_101 = arith.constant 3 : index
    %c10_102 = arith.constant 10 : index
    %c0_103 = arith.constant 0 : index
    %798 = vector.load %arg2[%c0_100, %c3_101, %c10_102, %c0_103] : memref<1x4x16x128xf32, #tpu.memory_space<vmem>>, vector<1x1x4x128xf32>
    %799 = vector.shape_cast %798 : vector<1x1x4x128xf32> to vector<4x128xf32>
    %c184 = arith.constant 184 : index
    %800 = memref.load %arg3[%c184] : memref<224xf32, #tpu.memory_space<smem>>
    %c185 = arith.constant 185 : index
    %801 = memref.load %arg3[%c185] : memref<224xf32, #tpu.memory_space<smem>>
    %c186 = arith.constant 186 : index
    %802 = memref.load %arg3[%c186] : memref<224xf32, #tpu.memory_space<smem>>
    %c187 = arith.constant 187 : index
    %803 = memref.load %arg3[%c187] : memref<224xf32, #tpu.memory_space<smem>>
    %c188 = arith.constant 188 : index
    %804 = memref.load %arg3[%c188] : memref<224xf32, #tpu.memory_space<smem>>
    %c189 = arith.constant 189 : index
    %805 = memref.load %arg3[%c189] : memref<224xf32, #tpu.memory_space<smem>>
    %c190 = arith.constant 190 : index
    %806 = memref.load %arg3[%c190] : memref<224xf32, #tpu.memory_space<smem>>
    %c191 = arith.constant 191 : index
    %807 = memref.load %arg3[%c191] : memref<224xf32, #tpu.memory_space<smem>>
    %808 = vector.broadcast %800 : f32 to vector<4x128xf32>
    %809 = arith.mulf %799, %808 : vector<4x128xf32>
    %810 = arith.addf %776, %809 : vector<4x128xf32>
    %811 = vector.broadcast %801 : f32 to vector<4x128xf32>
    %812 = arith.mulf %799, %811 : vector<4x128xf32>
    %813 = arith.addf %779, %812 : vector<4x128xf32>
    %814 = vector.broadcast %802 : f32 to vector<4x128xf32>
    %815 = arith.mulf %799, %814 : vector<4x128xf32>
    %816 = arith.addf %782, %815 : vector<4x128xf32>
    %817 = vector.broadcast %803 : f32 to vector<4x128xf32>
    %818 = arith.mulf %799, %817 : vector<4x128xf32>
    %819 = arith.addf %785, %818 : vector<4x128xf32>
    %820 = vector.broadcast %804 : f32 to vector<4x128xf32>
    %821 = arith.mulf %799, %820 : vector<4x128xf32>
    %822 = arith.addf %788, %821 : vector<4x128xf32>
    %823 = vector.broadcast %805 : f32 to vector<4x128xf32>
    %824 = arith.mulf %799, %823 : vector<4x128xf32>
    %825 = arith.addf %791, %824 : vector<4x128xf32>
    %826 = vector.broadcast %806 : f32 to vector<4x128xf32>
    %827 = arith.mulf %799, %826 : vector<4x128xf32>
    %828 = arith.addf %794, %827 : vector<4x128xf32>
    %829 = vector.broadcast %807 : f32 to vector<4x128xf32>
    %830 = arith.mulf %799, %829 : vector<4x128xf32>
    %831 = arith.addf %797, %830 : vector<4x128xf32>
    %c0_104 = arith.constant 0 : index
    %c0_105 = arith.constant 0 : index
    %c12_106 = arith.constant 12 : index
    %c0_107 = arith.constant 0 : index
    %832 = vector.load %arg2[%c0_104, %c0_105, %c12_106, %c0_107] : memref<1x4x16x128xf32, #tpu.memory_space<vmem>>, vector<1x1x4x128xf32>
    %833 = vector.shape_cast %832 : vector<1x1x4x128xf32> to vector<4x128xf32>
    %c192 = arith.constant 192 : index
    %834 = memref.load %arg3[%c192] : memref<224xf32, #tpu.memory_space<smem>>
    %c193 = arith.constant 193 : index
    %835 = memref.load %arg3[%c193] : memref<224xf32, #tpu.memory_space<smem>>
    %c194 = arith.constant 194 : index
    %836 = memref.load %arg3[%c194] : memref<224xf32, #tpu.memory_space<smem>>
    %c195 = arith.constant 195 : index
    %837 = memref.load %arg3[%c195] : memref<224xf32, #tpu.memory_space<smem>>
    %c196 = arith.constant 196 : index
    %838 = memref.load %arg3[%c196] : memref<224xf32, #tpu.memory_space<smem>>
    %c197 = arith.constant 197 : index
    %839 = memref.load %arg3[%c197] : memref<224xf32, #tpu.memory_space<smem>>
    %c198 = arith.constant 198 : index
    %840 = memref.load %arg3[%c198] : memref<224xf32, #tpu.memory_space<smem>>
    %c199 = arith.constant 199 : index
    %841 = memref.load %arg3[%c199] : memref<224xf32, #tpu.memory_space<smem>>
    %842 = vector.broadcast %834 : f32 to vector<4x128xf32>
    %843 = arith.mulf %833, %842 : vector<4x128xf32>
    %844 = arith.addf %810, %843 : vector<4x128xf32>
    %845 = vector.broadcast %835 : f32 to vector<4x128xf32>
    %846 = arith.mulf %833, %845 : vector<4x128xf32>
    %847 = arith.addf %813, %846 : vector<4x128xf32>
    %848 = vector.broadcast %836 : f32 to vector<4x128xf32>
    %849 = arith.mulf %833, %848 : vector<4x128xf32>
    %850 = arith.addf %816, %849 : vector<4x128xf32>
    %851 = vector.broadcast %837 : f32 to vector<4x128xf32>
    %852 = arith.mulf %833, %851 : vector<4x128xf32>
    %853 = arith.addf %819, %852 : vector<4x128xf32>
    %854 = vector.broadcast %838 : f32 to vector<4x128xf32>
    %855 = arith.mulf %833, %854 : vector<4x128xf32>
    %856 = arith.addf %822, %855 : vector<4x128xf32>
    %857 = vector.broadcast %839 : f32 to vector<4x128xf32>
    %858 = arith.mulf %833, %857 : vector<4x128xf32>
    %859 = arith.addf %825, %858 : vector<4x128xf32>
    %860 = vector.broadcast %840 : f32 to vector<4x128xf32>
    %861 = arith.mulf %833, %860 : vector<4x128xf32>
    %862 = arith.addf %828, %861 : vector<4x128xf32>
    %863 = vector.broadcast %841 : f32 to vector<4x128xf32>
    %864 = arith.mulf %833, %863 : vector<4x128xf32>
    %865 = arith.addf %831, %864 : vector<4x128xf32>
    %c0_108 = arith.constant 0 : index
    %c1_109 = arith.constant 1 : index
    %c12_110 = arith.constant 12 : index
    %c0_111 = arith.constant 0 : index
    %866 = vector.load %arg2[%c0_108, %c1_109, %c12_110, %c0_111] : memref<1x4x16x128xf32, #tpu.memory_space<vmem>>, vector<1x1x4x128xf32>
    %867 = vector.shape_cast %866 : vector<1x1x4x128xf32> to vector<4x128xf32>
    %c200 = arith.constant 200 : index
    %868 = memref.load %arg3[%c200] : memref<224xf32, #tpu.memory_space<smem>>
    %c201 = arith.constant 201 : index
    %869 = memref.load %arg3[%c201] : memref<224xf32, #tpu.memory_space<smem>>
    %c202 = arith.constant 202 : index
    %870 = memref.load %arg3[%c202] : memref<224xf32, #tpu.memory_space<smem>>
    %c203 = arith.constant 203 : index
    %871 = memref.load %arg3[%c203] : memref<224xf32, #tpu.memory_space<smem>>
    %c204 = arith.constant 204 : index
    %872 = memref.load %arg3[%c204] : memref<224xf32, #tpu.memory_space<smem>>
    %c205 = arith.constant 205 : index
    %873 = memref.load %arg3[%c205] : memref<224xf32, #tpu.memory_space<smem>>
    %c206 = arith.constant 206 : index
    %874 = memref.load %arg3[%c206] : memref<224xf32, #tpu.memory_space<smem>>
    %c207 = arith.constant 207 : index
    %875 = memref.load %arg3[%c207] : memref<224xf32, #tpu.memory_space<smem>>
    %876 = vector.broadcast %868 : f32 to vector<4x128xf32>
    %877 = arith.mulf %867, %876 : vector<4x128xf32>
    %878 = arith.addf %844, %877 : vector<4x128xf32>
    %879 = vector.broadcast %869 : f32 to vector<4x128xf32>
    %880 = arith.mulf %867, %879 : vector<4x128xf32>
    %881 = arith.addf %847, %880 : vector<4x128xf32>
    %882 = vector.broadcast %870 : f32 to vector<4x128xf32>
    %883 = arith.mulf %867, %882 : vector<4x128xf32>
    %884 = arith.addf %850, %883 : vector<4x128xf32>
    %885 = vector.broadcast %871 : f32 to vector<4x128xf32>
    %886 = arith.mulf %867, %885 : vector<4x128xf32>
    %887 = arith.addf %853, %886 : vector<4x128xf32>
    %888 = vector.broadcast %872 : f32 to vector<4x128xf32>
    %889 = arith.mulf %867, %888 : vector<4x128xf32>
    %890 = arith.addf %856, %889 : vector<4x128xf32>
    %891 = vector.broadcast %873 : f32 to vector<4x128xf32>
    %892 = arith.mulf %867, %891 : vector<4x128xf32>
    %893 = arith.addf %859, %892 : vector<4x128xf32>
    %894 = vector.broadcast %874 : f32 to vector<4x128xf32>
    %895 = arith.mulf %867, %894 : vector<4x128xf32>
    %896 = arith.addf %862, %895 : vector<4x128xf32>
    %897 = vector.broadcast %875 : f32 to vector<4x128xf32>
    %898 = arith.mulf %867, %897 : vector<4x128xf32>
    %899 = arith.addf %865, %898 : vector<4x128xf32>
    %c0_112 = arith.constant 0 : index
    %c2_113 = arith.constant 2 : index
    %c12_114 = arith.constant 12 : index
    %c0_115 = arith.constant 0 : index
    %900 = vector.load %arg2[%c0_112, %c2_113, %c12_114, %c0_115] : memref<1x4x16x128xf32, #tpu.memory_space<vmem>>, vector<1x1x4x128xf32>
    %901 = vector.shape_cast %900 : vector<1x1x4x128xf32> to vector<4x128xf32>
    %c208 = arith.constant 208 : index
    %902 = memref.load %arg3[%c208] : memref<224xf32, #tpu.memory_space<smem>>
    %c209 = arith.constant 209 : index
    %903 = memref.load %arg3[%c209] : memref<224xf32, #tpu.memory_space<smem>>
    %c210 = arith.constant 210 : index
    %904 = memref.load %arg3[%c210] : memref<224xf32, #tpu.memory_space<smem>>
    %c211 = arith.constant 211 : index
    %905 = memref.load %arg3[%c211] : memref<224xf32, #tpu.memory_space<smem>>
    %c212 = arith.constant 212 : index
    %906 = memref.load %arg3[%c212] : memref<224xf32, #tpu.memory_space<smem>>
    %c213 = arith.constant 213 : index
    %907 = memref.load %arg3[%c213] : memref<224xf32, #tpu.memory_space<smem>>
    %c214 = arith.constant 214 : index
    %908 = memref.load %arg3[%c214] : memref<224xf32, #tpu.memory_space<smem>>
    %c215 = arith.constant 215 : index
    %909 = memref.load %arg3[%c215] : memref<224xf32, #tpu.memory_space<smem>>
    %910 = vector.broadcast %902 : f32 to vector<4x128xf32>
    %911 = arith.mulf %901, %910 : vector<4x128xf32>
    %912 = arith.addf %878, %911 : vector<4x128xf32>
    %913 = vector.broadcast %903 : f32 to vector<4x128xf32>
    %914 = arith.mulf %901, %913 : vector<4x128xf32>
    %915 = arith.addf %881, %914 : vector<4x128xf32>
    %916 = vector.broadcast %904 : f32 to vector<4x128xf32>
    %917 = arith.mulf %901, %916 : vector<4x128xf32>
    %918 = arith.addf %884, %917 : vector<4x128xf32>
    %919 = vector.broadcast %905 : f32 to vector<4x128xf32>
    %920 = arith.mulf %901, %919 : vector<4x128xf32>
    %921 = arith.addf %887, %920 : vector<4x128xf32>
    %922 = vector.broadcast %906 : f32 to vector<4x128xf32>
    %923 = arith.mulf %901, %922 : vector<4x128xf32>
    %924 = arith.addf %890, %923 : vector<4x128xf32>
    %925 = vector.broadcast %907 : f32 to vector<4x128xf32>
    %926 = arith.mulf %901, %925 : vector<4x128xf32>
    %927 = arith.addf %893, %926 : vector<4x128xf32>
    %928 = vector.broadcast %908 : f32 to vector<4x128xf32>
    %929 = arith.mulf %901, %928 : vector<4x128xf32>
    %930 = arith.addf %896, %929 : vector<4x128xf32>
    %931 = vector.broadcast %909 : f32 to vector<4x128xf32>
    %932 = arith.mulf %901, %931 : vector<4x128xf32>
    %933 = arith.addf %899, %932 : vector<4x128xf32>
    %c0_116 = arith.constant 0 : index
    %c3_117 = arith.constant 3 : index
    %c12_118 = arith.constant 12 : index
    %c0_119 = arith.constant 0 : index
    %934 = vector.load %arg2[%c0_116, %c3_117, %c12_118, %c0_119] : memref<1x4x16x128xf32, #tpu.memory_space<vmem>>, vector<1x1x4x128xf32>
    %935 = vector.shape_cast %934 : vector<1x1x4x128xf32> to vector<4x128xf32>
    %c216 = arith.constant 216 : index
    %936 = memref.load %arg3[%c216] : memref<224xf32, #tpu.memory_space<smem>>
    %c217 = arith.constant 217 : index
    %937 = memref.load %arg3[%c217] : memref<224xf32, #tpu.memory_space<smem>>
    %c218 = arith.constant 218 : index
    %938 = memref.load %arg3[%c218] : memref<224xf32, #tpu.memory_space<smem>>
    %c219 = arith.constant 219 : index
    %939 = memref.load %arg3[%c219] : memref<224xf32, #tpu.memory_space<smem>>
    %c220 = arith.constant 220 : index
    %940 = memref.load %arg3[%c220] : memref<224xf32, #tpu.memory_space<smem>>
    %c221 = arith.constant 221 : index
    %941 = memref.load %arg3[%c221] : memref<224xf32, #tpu.memory_space<smem>>
    %c222 = arith.constant 222 : index
    %942 = memref.load %arg3[%c222] : memref<224xf32, #tpu.memory_space<smem>>
    %c223 = arith.constant 223 : index
    %943 = memref.load %arg3[%c223] : memref<224xf32, #tpu.memory_space<smem>>
    %944 = vector.broadcast %936 : f32 to vector<4x128xf32>
    %945 = arith.mulf %935, %944 : vector<4x128xf32>
    %946 = arith.addf %912, %945 : vector<4x128xf32>
    %947 = vector.broadcast %937 : f32 to vector<4x128xf32>
    %948 = arith.mulf %935, %947 : vector<4x128xf32>
    %949 = arith.addf %915, %948 : vector<4x128xf32>
    %950 = vector.broadcast %938 : f32 to vector<4x128xf32>
    %951 = arith.mulf %935, %950 : vector<4x128xf32>
    %952 = arith.addf %918, %951 : vector<4x128xf32>
    %953 = vector.broadcast %939 : f32 to vector<4x128xf32>
    %954 = arith.mulf %935, %953 : vector<4x128xf32>
    %955 = arith.addf %921, %954 : vector<4x128xf32>
    %956 = vector.broadcast %940 : f32 to vector<4x128xf32>
    %957 = arith.mulf %935, %956 : vector<4x128xf32>
    %958 = arith.addf %924, %957 : vector<4x128xf32>
    %959 = vector.broadcast %941 : f32 to vector<4x128xf32>
    %960 = arith.mulf %935, %959 : vector<4x128xf32>
    %961 = arith.addf %927, %960 : vector<4x128xf32>
    %962 = vector.broadcast %942 : f32 to vector<4x128xf32>
    %963 = arith.mulf %935, %962 : vector<4x128xf32>
    %964 = arith.addf %930, %963 : vector<4x128xf32>
    %965 = vector.broadcast %943 : f32 to vector<4x128xf32>
    %966 = arith.mulf %935, %965 : vector<4x128xf32>
    %967 = arith.addf %933, %966 : vector<4x128xf32>
    %c0_120 = arith.constant 0 : index
    %c0_121 = arith.constant 0 : index
    %c0_122 = arith.constant 0 : index
    %c0_123 = arith.constant 0 : index
    %968 = vector.load %arg5[%c0_120, %c0_121, %c0_122, %c0_123] : memref<1x8x4x128xf32, #tpu.memory_space<vmem>>, vector<1x1x4x128xf32>
    %969 = vector.shape_cast %968 : vector<1x1x4x128xf32> to vector<4x128xf32>
    %970 = vector.shape_cast %946 : vector<4x128xf32> to vector<1x1x4x128xf32>
    tpu.vector_store %arg5[%c0_120, %c0_121, %c0_122, %c0_123], %970 {strides = array<i32>} : memref<1x8x4x128xf32, #tpu.memory_space<vmem>>, vector<1x1x4x128xf32>,
    %c0_124 = arith.constant 0 : index
    %c1_125 = arith.constant 1 : index
    %c0_126 = arith.constant 0 : index
    %c0_127 = arith.constant 0 : index
    %971 = vector.load %arg5[%c0_124, %c1_125, %c0_126, %c0_127] : memref<1x8x4x128xf32, #tpu.memory_space<vmem>>, vector<1x1x4x128xf32>
    %972 = vector.shape_cast %971 : vector<1x1x4x128xf32> to vector<4x128xf32>
    %973 = vector.shape_cast %949 : vector<4x128xf32> to vector<1x1x4x128xf32>
    tpu.vector_store %arg5[%c0_124, %c1_125, %c0_126, %c0_127], %973 {strides = array<i32>} : memref<1x8x4x128xf32, #tpu.memory_space<vmem>>, vector<1x1x4x128xf32>,
    %c0_128 = arith.constant 0 : index
    %c2_129 = arith.constant 2 : index
    %c0_130 = arith.constant 0 : index
    %c0_131 = arith.constant 0 : index
    %974 = vector.load %arg5[%c0_128, %c2_129, %c0_130, %c0_131] : memref<1x8x4x128xf32, #tpu.memory_space<vmem>>, vector<1x1x4x128xf32>
    %975 = vector.shape_cast %974 : vector<1x1x4x128xf32> to vector<4x128xf32>
    %976 = vector.shape_cast %952 : vector<4x128xf32> to vector<1x1x4x128xf32>
    tpu.vector_store %arg5[%c0_128, %c2_129, %c0_130, %c0_131], %976 {strides = array<i32>} : memref<1x8x4x128xf32, #tpu.memory_space<vmem>>, vector<1x1x4x128xf32>,
    %c0_132 = arith.constant 0 : index
    %c3_133 = arith.constant 3 : index
    %c0_134 = arith.constant 0 : index
    %c0_135 = arith.constant 0 : index
    %977 = vector.load %arg5[%c0_132, %c3_133, %c0_134, %c0_135] : memref<1x8x4x128xf32, #tpu.memory_space<vmem>>, vector<1x1x4x128xf32>
    %978 = vector.shape_cast %977 : vector<1x1x4x128xf32> to vector<4x128xf32>
    %979 = vector.shape_cast %955 : vector<4x128xf32> to vector<1x1x4x128xf32>
    tpu.vector_store %arg5[%c0_132, %c3_133, %c0_134, %c0_135], %979 {strides = array<i32>} : memref<1x8x4x128xf32, #tpu.memory_space<vmem>>, vector<1x1x4x128xf32>,
    %c0_136 = arith.constant 0 : index
    %c4_137 = arith.constant 4 : index
    %c0_138 = arith.constant 0 : index
    %c0_139 = arith.constant 0 : index
    %980 = vector.load %arg5[%c0_136, %c4_137, %c0_138, %c0_139] : memref<1x8x4x128xf32, #tpu.memory_space<vmem>>, vector<1x1x4x128xf32>
    %981 = vector.shape_cast %980 : vector<1x1x4x128xf32> to vector<4x128xf32>
    %982 = vector.shape_cast %958 : vector<4x128xf32> to vector<1x1x4x128xf32>
    tpu.vector_store %arg5[%c0_136, %c4_137, %c0_138, %c0_139], %982 {strides = array<i32>} : memref<1x8x4x128xf32, #tpu.memory_space<vmem>>, vector<1x1x4x128xf32>,
    %c0_140 = arith.constant 0 : index
    %c5_141 = arith.constant 5 : index
    %c0_142 = arith.constant 0 : index
    %c0_143 = arith.constant 0 : index
    %983 = vector.load %arg5[%c0_140, %c5_141, %c0_142, %c0_143] : memref<1x8x4x128xf32, #tpu.memory_space<vmem>>, vector<1x1x4x128xf32>
    %984 = vector.shape_cast %983 : vector<1x1x4x128xf32> to vector<4x128xf32>
    %985 = vector.shape_cast %961 : vector<4x128xf32> to vector<1x1x4x128xf32>
    tpu.vector_store %arg5[%c0_140, %c5_141, %c0_142, %c0_143], %985 {strides = array<i32>} : memref<1x8x4x128xf32, #tpu.memory_space<vmem>>, vector<1x1x4x128xf32>,
    %c0_144 = arith.constant 0 : index
    %c6_145 = arith.constant 6 : index
    %c0_146 = arith.constant 0 : index
    %c0_147 = arith.constant 0 : index
    %986 = vector.load %arg5[%c0_144, %c6_145, %c0_146, %c0_147] : memref<1x8x4x128xf32, #tpu.memory_space<vmem>>, vector<1x1x4x128xf32>
    %987 = vector.shape_cast %986 : vector<1x1x4x128xf32> to vector<4x128xf32>
    %988 = vector.shape_cast %964 : vector<4x128xf32> to vector<1x1x4x128xf32>
    tpu.vector_store %arg5[%c0_144, %c6_145, %c0_146, %c0_147], %988 {strides = array<i32>} : memref<1x8x4x128xf32, #tpu.memory_space<vmem>>, vector<1x1x4x128xf32>,
    %c0_148 = arith.constant 0 : index
    %c7_149 = arith.constant 7 : index
    %c0_150 = arith.constant 0 : index
    %c0_151 = arith.constant 0 : index
    %989 = vector.load %arg5[%c0_148, %c7_149, %c0_150, %c0_151] : memref<1x8x4x128xf32, #tpu.memory_space<vmem>>, vector<1x1x4x128xf32>
    %990 = vector.shape_cast %989 : vector<1x1x4x128xf32> to vector<4x128xf32>
    %991 = vector.shape_cast %967 : vector<4x128xf32> to vector<1x1x4x128xf32>
    tpu.vector_store %arg5[%c0_148, %c7_149, %c0_150, %c0_151], %991 {strides = array<i32>} : memref<1x8x4x128xf32, #tpu.memory_space<vmem>>, vector<1x1x4x128xf32>,
    return
  }
  func.func @transform_0(%arg0: i32, %arg1: i32) -> (i32, i32, i32, i32) {
    %c0_i32 = arith.constant 0 : i32
    %c0_i32_0 = arith.constant 0 : i32
    %c0_i32_1 = arith.constant 0 : i32
    return %arg0, %c0_i32, %c0_i32_0, %arg1 : i32, i32, i32, i32
  }
  func.func @transform_1(%arg0: i32, %arg1: i32) -> i32 {
    %c0_i32 = arith.constant 0 : i32
    %c0_i32_0 = arith.constant 0 : i32
    return %c0_i32 : i32
  }
  func.func @transform_2(%arg0: i32, %arg1: i32) -> i32 {
    %c0_i32 = arith.constant 0 : i32
    %c0_i32_0 = arith.constant 0 : i32
    return %c0_i32 : i32
  }
  func.func @transform_3(%arg0: i32, %arg1: i32) -> (i32, i32, i32, i32) {
    %c0_i32 = arith.constant 0 : i32
    %c0_i32_0 = arith.constant 0 : i32
    %c0_i32_1 = arith.constant 0 : i32
    return %arg0, %c0_i32, %c0_i32_0, %arg1 : i32, i32, i32, i32
  }
}

</mosaic_0001>

<bundles_post_ra>
// kernel: tpu_custom_call.1
= control target key start
LH: loop header
LB: loop body
LE: loop exit
PB: predicated region body
PF: predicated region fallthrough
CT: control target
= control target key end

     0   :  { %s2791_s0 = inlined_call_operand.hbm [shape: f32[2,4,16,128], index: 0, kind: input, shape index: {}]   ;;  %s2792_s1 = inlined_call_operand.vmem [shape: f32[224], index: 1, kind: input, shape index: {}]   ;;  %s2793_s2 = inlined_call_operand.vmem [shape: f32[8], index: 2, kind: input, shape index: {}]   ;;  %s2794_s3 = inlined_call_operand.hbm [shape: f32[2,8,4,128], index: 3, kind: output, shape index: {}]  }
   0x1   :  { %2803 = sst [smem:[#allocation16_spill]] %s2791_s0 }
   0x2   :  { %2804 = sst [smem:[#allocation17_spill]] %s2792_s1 }
   0x3   :  { %2805 = sst [smem:[#allocation18_spill]] %s2793_s2 }
   0x4   :  { %8 = vsyncpa [#allocation3], 0 }
   0x5   :  { %10 = vsyncpa [#allocation3 + $0x1], 0 }
   0x6   :  { %11 = vsyncpa [#allocation5], 0 }
   0x7   :  { %12 = vsyncpa [#allocation8], 0 }
   0x8   :  { %13 = vsyncpa [#allocation4], 0 }
   0x9   :  { %15 = vsyncpa [#allocation4 + $0x1], 0  ;;  %s1859_s12 = smov 0   ;;  %s1861_s13 = smov 0  }
   0xa   :  { %s1863_s14 = smov 0   ;;  %s1865_s15 = smov 0  }
   0xb   :  { %s1867_s16 = smov 0   ;;  %s1869_s17 = smov 0  }
   0xc LB: > { %2806 = sst [smem:[#allocation14_spill]] %s1825_s16  ;;  %s1313_s18 = sadd.s32 4294967295, %s1829_s17   ;;  %s1829_s17 = sphi %s1869_s17, %s21_s17   ;;  %s1825_s16 = sphi %s1867_s16, %s2827_s16   ;;  %s1821_s15 = sphi %s1865_s15, %s2826_s15   ;;  %s1817_s14 = sphi %s1863_s14, %s2830_s14   ;;  %s1813_s13 = sphi %s1861_s13, %s2829_s13   ;;  %s1809_s12 = sphi %s1859_s12, %s2828_s12  }
   0xd   : > { %s1314_s19 = sadd.s32 4294967294, %s1829_s17   ;;  %s42_s20 = sadd.s32 1, %s1817_s14 }
   0xe   : > { %p49_p0 = scmp.ne.s32.totalorder %s1817_s14, %s1813_s13  ;;  %p50_p1 = scmp.eq.s32.totalorder %s1829_s17, 0 }
   0xf   : > { %p55_p2 = scmp.ne.s32.totalorder %s1813_s13, %s1809_s12  ;;  %p1897_p3 = scmp.eq.s32.totalorder %s1313_s18, 0 }
  0x10   : > { %p123_p4 = scmp.eq.s32.totalorder %s1313_s18, 1  ;;  %p1901_p5 = por %p50_p1, %p49_p0 }
  0x11   : > { %s2807_s21 = scalar_select %p1897_p3, 1, 0 }
  0x12   : > { %p129_p6 = scmp.eq.s32.totalorder %s1314_s19, 1  ;;  %p1907_p7 = por %p1897_p3, %p55_p2 }
  0x13   : > { %p1911_p8 = por %p123_p4, %p49_p0  ;;  %p1315_p10 = scmp.ge.s32.totalorder %s1829_s17, 1 }
  0x14   : > { %s2809_s23 = scalar_select %p1907_p7, 1, 0 }
  0x15   : > { %s2810_s24 = scalar_select %p1911_p8, 1, 0 }
  0x16   : > { %p1915_p9 = por %p129_p6, %p55_p2  ;;  %p136_p11 = scmp.lt.s32.totalorder %s1829_s17, 3 }
  0x17   : > { %s2812_s1 = sld [smem:[#allocation17_spill]]  ;;  %p1621_p0 = scmp.lt.s32.totalorder %s1829_s17, 2 }
  0x18   : > { %s2811_s25 = scalar_select %p1915_p9, 1, 0 }
  0x19   : > { %p1924_p12 = pnand %p1315_p10, %p136_p11  ;;  %s2814_s2 = sld [smem:[#allocation18_spill]] }
  0x1a   : > { %p1937_p2 = pnand %p1621_p0, %p1901_p5 }
  0x1b   : > { %s2813_s29 = scalar_select %p1924_p12, 1, 0 }
  0x1c   : > { %p1604_p1 = pneg %p1924_p12 }
  0x1d   : > { %s149_s28 = sshll.u32 %s2812_s1, 4  ;;  %s150_s28 = int_to_ptr.vmem [resolvable:$true] %s149_s28 }
  0x1e   : > { %s2815_s6 = scalar_select %p1937_p2, 1, 0 }
  0x1f   : > { %s160_s5 = sshll.u32 %s2814_s2, 4  ;;  %p1943_p4 = pnand %p1604_p1, %p1897_p3  ;;  %s161_s5 = int_to_ptr.vmem [resolvable:$true] %s160_s5 }
  0x20   : > { %s1679_s8 = scalar_lea.vmem %s150_s28, 32  ;;  %p1687_p9 = scmp.lt.s32.totalorder %s150_s28, %s150_s28 }
  0x21   : > { %p1680_p6 = scmp.ne.s32.totalorder %s150_s28, %s1679_s8  ;;  %p1681_p10 = pneg %p1943_p4 }
  0x22   : > { %p1688_p8 = scmp.lt.s32.totalorder %s1679_s8, %s1679_s8 }
  0x23   : > { %p1682_p11 = pnand %p1681_p10, %p1680_p6 }
  0x24   : > { %p1689_p7 = por %p1688_p8, %p1687_p9 }
  0x25   : > { %p1683_p13 = pneg %p1682_p11 }
  0x27   : > { %p1690_p5 = pnand %p1689_p7, %p1683_p13 }
  0x29   : > { %1693 = shalt.err (!%p1690_p5)
}
  0x2a   : > { %s1831_s9 = smov [#allocation6]   ;;  %s1694_s10 = scalar_lea.vmem %s161_s5, 16 }
  0x2b   : > { %1607 = dma.vmem_to_smem (!%p1943_p4), %s150_s28, 32, %s1831_s9, [#allocation5]  }
  0x2c   : > { %p1695_p0 = scmp.ne.s32.totalorder %s161_s5, %s1694_s10  ;;  %p1702_p12 = scmp.lt.s32.totalorder %s161_s5, %s161_s5 }
  0x2d   : > { %p1703_p2 = scmp.lt.s32.totalorder %s1694_s10, %s1694_s10 }
  0x2e   : > { %p1697_p1 = pnand %p1695_p0, %p1681_p10 }
  0x2f   : > { %p1704_p6 = por %p1703_p2, %p1702_p12 }
  0x30   : > { %p1698_p3 = pneg %p1697_p1 }
  0x32   : > { %p1705_p11 = pnand %p1704_p6, %p1698_p3 }
  0x34   : > { %1708 = shalt.err (!%p1705_p11)
}
  0x35   : > { %s1832_s11 = smov [#allocation7]   ;;  %s33_s18 = sadd.s32 1, %s1825_s16 }
  0x36   : > { %1610 = dma.vmem_to_smem (!%p1943_p4), %s161_s5, 16, %s1832_s11, [#allocation8]  }
  0x37   : > { %s171_s19 = sand.u32 1, %s1817_s14   ;;  %p35_p7 = scmp.ge.s32.totalorder %s33_s18, 2 }
  0x38   : > { %s1319_s22 = sshll.u32 %s171_s19, 6  ;;  %s1590_s26 = sshll.u32 %s1825_s16, 10 }
  0x39   : > { %s2832_s18 = smov (%p35_p7, %s33_s18), 0  ;;  %s2818_s0 = sld [smem:[#allocation16_spill]] }
  0x3a   : > { %2817 = sst [smem:[#allocation15_spill]] %s2832_s18  ;;  %s37_s4 = ssub.s32 %s1825_s16, %s2832_s18 }
  0x3b   : > { %s175_s5 = scalar_lea.vmem [#allocation2], %s1319_s22  ;;  %p40_p3 = scmp.eq.s32.totalorder %s37_s4, 0 }
  0x3c   : > { %s183_s7 = sshll.u32 %s175_s5, 4  ;;  %s1972_s9 = scalar_lea.sflag [#allocation3], %s171_s19  ;;  %s1965_s7 = int_to_ptr.vmem [resolvable:$true] %s183_s7 }
  0x3d   : > { %s1970_s8 = scalar_select %p40_p3, %s1817_s14, %s42_s20  }
  0x3e   : > { %p2819_p9 = scmp.ne.s32.totalorder %s2815_s6, 0 }
  0x3f   : > { %s1961_s30 = scalar_lea.hbm %s2818_s0, %s1590_s26  ;;  %s1714_s22 = scalar_lea.hbm %s2818_s0, 2048 }
  0x40   : > { %s1709_s10 = scalar_lea.hbm %s1961_s30, 1024  ;;  %p1711_p12 = pneg %p2819_p9 }
  0x41   : > { %p1710_p8 = scmp.ne.s32.totalorder %s1961_s30, %s1709_s10  ;;  %p1715_p4 = scmp.lt.u32.totalorder %s1961_s30, %s2818_s0 }
  0x42   : > { %p1716_p10 = scmp.lt.u32.totalorder %s1714_s22, %s1709_s10  ;;  %p1718_p0 = scmp.lt.u32.totalorder %s1709_s10, %s1961_s30 }
  0x43   : > { %p1712_p13 = pnand %p1711_p12, %p1710_p8 }
  0x44   : > { %p1717_p5 = por %p1716_p10, %p1715_p4 }
  0x45   : > { %p1713_p2 = pneg %p1712_p13 }
  0x46   : > { %p1719_p1 = por %p1718_p0, %p1717_p5 }
  0x48   : > { %p1720_p6 = pnand %p1719_p1, %p1713_p2 }
  0x4a   : > { %1723 = shalt.err (!%p1720_p6)
}
  0x4b   : > { %s1724_s20 = scalar_lea.vmem %s1965_s7, 1024  ;;  %s1833_s19 = smov [#allocation2]  }
  0x4c   : > { %p1725_p11 = scmp.ne.s32.totalorder %s1965_s7, %s1724_s20  ;;  %s1729_s4 = sshll.u32 %s1833_s19, 4  ;;  %s1730_s4 = int_to_ptr.vmem [resolvable:$false] %s1729_s4 }
  0x4d   : > { %s1731_s5 = scalar_lea.vmem %s1730_s4, 2048  ;;  %p1732_p8 = scmp.lt.s32.totalorder %s1965_s7, %s1730_s4 }
  0x4e   : > { %p1727_p7 = pnand %p1725_p11, %p1711_p12  ;;  %p1733_p13 = scmp.lt.s32.totalorder %s1731_s5, %s1724_s20 }
  0x50   : > { %p1728_p3 = pneg %p1727_p7  ;;  %p1734_p4 = por %p1733_p13, %p1732_p8 }
  0x52   : > { %p1735_p10 = pnand %p1734_p4, %p1728_p3 }
  0x54   : > { %1738 = shalt.err (!%p1735_p10)
}
  0x55   : > { %s1834_s10 = smov 128   ;;  %s1835_s11 = smov 8  }
  0x56   : > { %1614 = dma.hbm_to_vmem [thread:$0]  (!%p2819_p9), %s1961_s30, 1024, %s1965_s7, %s1972_s9, %s1834_s10, %s1834_s10, %s1835_s11  }
  0x57   : > { %p2820_p12 = scmp.ne.s32.totalorder %s2813_s29, 0 }
  0x58   : > { %s2003_s26 = sand.u32 (!%p2820_p12), 1, %s1813_s13   ;;  %p2821_p2 = scmp.ne.s32.totalorder (!%p2820_p12), %s2809_s23, 0 }
  0x59   : > { %195 = sbr.rel (%p2820_p12) target bundleno = 300 (0x12c), region = 32  ;;  %s1323_s22 = sshll.u32 (!%p2820_p12), %s2003_s26, 6 }
  0x5a   : > { %s198_s27 = scalar_lea.sflag (!%p2820_p12), [#allocation3], %s2003_s26  ;;  %s2007_s28 = scalar_lea.vmem (!%p2820_p12), [#allocation2], %s1323_s22 }
  0x60   : > { %1792 = dma.done.wait (%p2821_p2), %s198_s27, 1024  }
  0x61   : > { %1794 = vsyncadd (%p2821_p2), %s198_s27, 4294966272  ;;  %p2822_p9 = scmp.ne.s32.totalorder %s2807_s21, 0 }
  0x63   : > { %1796 = dma.done.wait (%p2822_p9), [#allocation5], 32  }
  0x64   : > { %1798 = vsyncadd (%p2822_p9), [#allocation5], 4294967264 }
  0x65   : > { %1800 = dma.done.wait (%p2822_p9), [#allocation8], 16  }
  0x66   : > { %1802 = vsyncadd (%p2822_p9), [#allocation8], 4294967280 }
  0x67   : > { %214 = sfence }
  0x68   : > { %s2021_s29 = sld [smem:[#allocation7]]  ;;  %s2023_s6 = sld [smem:[#allocation7 + $0x1]]  ;;  %v249_v2 = vld [vmem:[%s2007_s28] sm:$0xf]  ;;  %v1341_v27 = vld [vmem:[%s2007_s28 + $0x10] sm:$0xf] }
  0x69   : > { %s2025_s23 = sld [smem:[#allocation7 + $0x2]]  ;;  %s2027_s30 = sld [smem:[#allocation7 + $0x3]]  ;;  %v1350_v52 = vld [vmem:[%s2007_s28 + $0x20] sm:$0xf] }
  0x6a   : > { %s2029_s7 = sld [smem:[#allocation7 + $0x4]]  ;;  %s2031_s9 = sld [smem:[#allocation7 + $0x5]] }
  0x6b   : > { %s2033_s20 = sld [smem:[#allocation7 + $0x6]]  ;;  %s2035_s21 = sld [smem:[#allocation7 + $0x7]] }
  0x6c   : > { %s250_s19 = sld [smem:[#allocation6]]  ;;  %s1334_s4 = sld [smem:[#allocation6 + $0x1]] }
  0x6d   : > { %s1335_s5 = sld [smem:[#allocation6 + $0x2]]  ;;  %s1336_s10 = sld [smem:[#allocation6 + $0x3]] }
  0x6e   : > { %s2037_s11 = sld [smem:[#allocation6 + $0x4]]  ;;  %s2039_s22 = sld [smem:[#allocation6 + $0x5]]  ;;  %v234_v0 = vstv %s2021_s29  ;;  %v236_v1 = vstv %s2023_s6 }
  0x6f   : > { %s2041_s27 = sld [smem:[#allocation6 + $0x6]]  ;;  %s2043_s0 = sld [smem:[#allocation6 + $0x7]]  ;;  %v238_v3 = vstv %s2025_s23  ;;  %v240_v4 = vstv %s2027_s30 }
  0x70   : > { %s2048_s1 = sld [smem:[#allocation6 + $0x8]]  ;;  %s2050_s2 = sld [smem:[#allocation6 + $0x9]]  ;;  %v242_v5 = vstv %s2029_s7  ;;  %v244_v6 = vstv %s2031_s9 }
  0x71   : > { %s2056_s18 = sld [smem:[#allocation6 + $0xa]]  ;;  %s2058_s16 = sld [smem:[#allocation6 + $0xb]]  ;;  %v246_v7 = vstv %s2033_s20  ;;  %v248_v8 = vstv %s2035_s21 }
  0x72   : > { %v258_v9 = vstv %s250_s19  ;;  %v261_v10 = vstv %s1334_s4  ;;  %s2062_s29 = sld [smem:[#allocation6 + $0xc]]  ;;  %s2064_s6 = sld [smem:[#allocation6 + $0xd]] }
  0x73   : > { %v259_v11 = vmul.f32 %v258_v9, %v249_v2  ;;  %v262_v12 = vmul.f32 %v261_v10, %v249_v2  ;;  %v264_v13 = vstv %s1335_s5  ;;  %v267_v14 = vstv %s1336_s10  ;;  %s2068_s23 = sld [smem:[#allocation6 + $0xe]]  ;;  %s2070_s30 = sld [smem:[#allocation6 + $0xf]] }
  0x74   : > { %v265_v15 = vmul.f32 %v264_v13, %v249_v2  ;;  %v268_v16 = vmul.f32 %v267_v14, %v249_v2  ;;  %v270_v17 = vstv %s2037_s11  ;;  %v273_v18 = vstv %s2039_s22  ;;  %s2072_s7 = sld [smem:[#allocation6 + $0x10]]  ;;  %s2074_s9 = sld [smem:[#allocation6 + $0x11]]  ;;  %v1359_v13 = vld [vmem:[%s2007_s28 + $0x30] sm:$0xf] }
  0x75   : > { %v260_v19 = vadd.f32 %v259_v11, %v234_v0  ;;  %v263_v20 = vadd.f32 %v262_v12, %v236_v1  ;;  %v271_v21 = vmul.f32 %v270_v17, %v249_v2  ;;  %v274_v22 = vmul.f32 %v273_v18, %v249_v2  ;;  %s2079_s20 = sld [smem:[#allocation6 + $0x12]]  ;;  %s2081_s21 = sld [smem:[#allocation6 + $0x13]] }
  0x76   : > { %v266_v23 = vadd.f32 %v265_v15, %v238_v3  ;;  %v269_v24 = vadd.f32 %v268_v16, %v240_v4  ;;  %v276_v25 = vstv %s2041_s27  ;;  %v279_v26 = vstv %s2043_s0  ;;  %s2087_s19 = sld [smem:[#allocation6 + $0x14]]  ;;  %s2089_s4 = sld [smem:[#allocation6 + $0x15]] }
  0x77   : > { %v272_v28 = vadd.f32 %v271_v21, %v242_v5  ;;  %v275_v29 = vadd.f32 %v274_v22, %v244_v6  ;;  %v277_v30 = vmul.f32 %v276_v25, %v249_v2  ;;  %v280_v31 = vmul.f32 %v279_v26, %v249_v2  ;;  %s2093_s0 = sld [smem:[#allocation6 + $0x16]]  ;;  %s2106_s5 = sld [smem:[#allocation6 + $0x1b]] }
  0x78   : > { %v292_v32 = vstv %s2048_s1  ;;  %v295_v33 = vstv %s2050_s2  ;;  %v298_v34 = vstv %s2056_s18  ;;  %v301_v35 = vstv %s2058_s16  ;;  %s2095_s1 = sld [smem:[#allocation6 + $0x17]]  ;;  %s2097_s2 = sld [smem:[#allocation6 + $0x18]] }
  0x79   : > { %v278_v36 = vadd.f32 %v277_v30, %v246_v7  ;;  %v281_v37 = vadd.f32 %v280_v31, %v248_v8  ;;  %v293_v38 = vmul.f32 %v1341_v27, %v292_v32  ;;  %v296_v39 = vmul.f32 %v1341_v27, %v295_v33  ;;  %s2099_s16 = sld [smem:[#allocation6 + $0x19]]  ;;  %s2104_s18 = sld [smem:[#allocation6 + $0x1a]] }
  0x7a   : > { %v299_v40 = vmul.f32 %v1341_v27, %v298_v34  ;;  %v302_v41 = vmul.f32 %v1341_v27, %v301_v35  ;;  %v304_v42 = vstv %s2062_s29  ;;  %v307_v43 = vstv %s2064_s6  ;;  %s2112_s10 = sld [smem:[#allocation6 + $0x1c]]  ;;  %s2114_s11 = sld [smem:[#allocation6 + $0x1d]] }
  0x7b   : > { %v294_v44 = vadd.f32 %v293_v38, %v260_v19  ;;  %v297_v45 = vadd.f32 %v296_v39, %v263_v20  ;;  %v305_v46 = vmul.f32 %v1341_v27, %v304_v42  ;;  %v308_v47 = vmul.f32 %v1341_v27, %v307_v43  ;;  %s2118_s22 = sld [smem:[#allocation6 + $0x1e]]  ;;  %s2120_s27 = sld [smem:[#allocation6 + $0x1f]]  ;;  %v384_v38 = vld [vmem:[%s2007_s28 + $0x2] sm:$0xf] }
  0x7c   : > { %v300_v48 = vadd.f32 %v299_v40, %v266_v23  ;;  %v303_v49 = vadd.f32 %v302_v41, %v269_v24  ;;  %v310_v50 = vstv %s2068_s23  ;;  %v313_v51 = vstv %s2070_s30  ;;  %s2122_s29 = sld [smem:[#allocation6 + $0x20]]  ;;  %s2124_s6 = sld [smem:[#allocation6 + $0x21]] }
  0x7d   : > { %v306_v53 = vadd.f32 %v305_v46, %v272_v28  ;;  %v309_v54 = vadd.f32 %v308_v47, %v275_v29  ;;  %v311_v55 = vmul.f32 %v1341_v27, %v310_v50  ;;  %v314_v56 = vmul.f32 %v1341_v27, %v313_v51  ;;  %s2129_s23 = sld [smem:[#allocation6 + $0x22]]  ;;  %s2131_s30 = sld [smem:[#allocation6 + $0x23]] }
  0x7e   : > { %v326_v57 = vstv %s2072_s7  ;;  %v329_v58 = vstv %s2074_s9  ;;  %v332_v59 = vstv %s2079_s20  ;;  %v335_v60 = vstv %s2081_s21  ;;  %s2137_s7 = sld [smem:[#allocation6 + $0x24]]  ;;  %s2139_s9 = sld [smem:[#allocation6 + $0x25]] }
  0x7f   : > { %v312_v61 = vadd.f32 %v311_v55, %v278_v36  ;;  %v315_v62 = vadd.f32 %v314_v56, %v281_v37  ;;  %v327_v63 = vmul.f32 %v1350_v52, %v326_v57  ;;  %v330_v0 = vmul.f32 %v1350_v52, %v329_v58  ;;  %s2143_s20 = sld [smem:[#allocation6 + $0x26]]  ;;  %s2145_s21 = sld [smem:[#allocation6 + $0x27]] }
  0x80   : > { %v333_v1 = vmul.f32 %v1350_v52, %v332_v59  ;;  %v336_v2 = vmul.f32 %v1350_v52, %v335_v60  ;;  %v338_v3 = vstv %s2087_s19  ;;  %v341_v4 = vstv %s2089_s4  ;;  %s2147_s19 = sld [smem:[#allocation6 + $0x28]]  ;;  %s2149_s4 = sld [smem:[#allocation6 + $0x29]] }
  0x81   : > { %v328_v5 = vadd.f32 %v327_v63, %v294_v44  ;;  %v331_v6 = vadd.f32 %v330_v0, %v297_v45  ;;  %v339_v7 = vmul.f32 %v1350_v52, %v338_v3  ;;  %v342_v8 = vmul.f32 %v1350_v52, %v341_v4  ;;  %v1376_v63 = vld [vmem:[%s2007_s28 + $0x12] sm:$0xf]  ;;  %p2823_p0 = scmp.ne.s32.totalorder %s2810_s24, 0 }
  0x82   : > { %v334_v9 = vadd.f32 %v333_v1, %v300_v48  ;;  %v337_v10 = vadd.f32 %v336_v2, %v303_v49  ;;  %v344_v11 = vstv %s2093_s0  ;;  %v347_v12 = vstv %s2095_s1  ;;  %s2154_s0 = sld [smem:[#allocation6 + $0x2a]]  ;;  %s2156_s1 = sld [smem:[#allocation6 + $0x2b]] }
  0x83   : > { %v340_v14 = vadd.f32 %v339_v7, %v306_v53  ;;  %v343_v15 = vadd.f32 %v342_v8, %v309_v54  ;;  %v345_v16 = vmul.f32 %v1350_v52, %v344_v11  ;;  %v348_v17 = vmul.f32 %v1350_v52, %v347_v12 }
  0x84   : > { %v360_v18 = vstv %s2097_s2  ;;  %v363_v19 = vstv %s2099_s16  ;;  %v366_v20 = vstv %s2104_s18  ;;  %v369_v21 = vstv %s2106_s5  ;;  %s2162_s2 = sld [smem:[#allocation6 + $0x2c]]  ;;  %s2164_s16 = sld [smem:[#allocation6 + $0x2d]] }
  0x85   : > { %v346_v22 = vadd.f32 %v345_v16, %v312_v61  ;;  %v349_v23 = vadd.f32 %v348_v17, %v315_v62  ;;  %v361_v24 = vmul.f32 %v1359_v13, %v360_v18  ;;  %v364_v25 = vmul.f32 %v1359_v13, %v363_v19  ;;  %s2168_s18 = sld [smem:[#allocation6 + $0x2e]]  ;;  %s2170_s5 = sld [smem:[#allocation6 + $0x2f]] }
  0x86   : > { %v367_v26 = vmul.f32 %v1359_v13, %v366_v20  ;;  %v370_v27 = vmul.f32 %v1359_v13, %v369_v21  ;;  %v372_v28 = vstv %s2112_s10  ;;  %v375_v29 = vstv %s2114_s11  ;;  %s2172_s10 = sld [smem:[#allocation6 + $0x30]]  ;;  %s2174_s11 = sld [smem:[#allocation6 + $0x31]] }
  0x87   : > { %v362_v30 = vadd.f32 %v361_v24, %v328_v5  ;;  %v365_v31 = vadd.f32 %v364_v25, %v331_v6  ;;  %v373_v32 = vmul.f32 %v1359_v13, %v372_v28  ;;  %v376_v33 = vmul.f32 %v1359_v13, %v375_v29  ;;  %v1385_v24 = vld [vmem:[%s2007_s28 + $0x22] sm:$0xf] }
  0x88   : > { %v368_v34 = vadd.f32 %v367_v26, %v334_v9  ;;  %v371_v35 = vadd.f32 %v370_v27, %v337_v10  ;;  %v378_v36 = vstv %s2118_s22  ;;  %v381_v37 = vstv %s2120_s27  ;;  %s2179_s22 = sld [smem:[#allocation6 + $0x32]]  ;;  %s2181_s27 = sld [smem:[#allocation6 + $0x33]] }
  0x89   : > { %v374_v39 = vadd.f32 %v373_v32, %v340_v14  ;;  %v377_v40 = vadd.f32 %v376_v33, %v343_v15  ;;  %v379_v41 = vmul.f32 %v1359_v13, %v378_v36  ;;  %v382_v42 = vmul.f32 %v1359_v13, %v381_v37 }
  0x8a   : > { %v393_v43 = vstv %s2122_s29  ;;  %v396_v44 = vstv %s2124_s6  ;;  %v399_v45 = vstv %s2129_s23  ;;  %v402_v46 = vstv %s2131_s30  ;;  %s2187_s29 = sld [smem:[#allocation6 + $0x34]]  ;;  %s2189_s6 = sld [smem:[#allocation6 + $0x35]] }
  0x8b   : > { %v380_v47 = vadd.f32 %v379_v41, %v346_v22  ;;  %v383_v48 = vadd.f32 %v382_v42, %v349_v23  ;;  %v394_v49 = vmul.f32 %v393_v43, %v384_v38  ;;  %v397_v50 = vmul.f32 %v396_v44, %v384_v38  ;;  %s2193_s23 = sld [smem:[#allocation6 + $0x36]]  ;;  %s2195_s30 = sld [smem:[#allocation6 + $0x37]] }
  0x8c   : > { %v400_v51 = vmul.f32 %v399_v45, %v384_v38  ;;  %v403_v52 = vmul.f32 %v402_v46, %v384_v38  ;;  %v405_v53 = vstv %s2137_s7  ;;  %v408_v54 = vstv %s2139_s9  ;;  %s2197_s7 = sld [smem:[#allocation6 + $0x38]]  ;;  %s2199_s9 = sld [smem:[#allocation6 + $0x39]] }
  0x8d   : > { %v395_v55 = vadd.f32 %v394_v49, %v362_v30  ;;  %v398_v56 = vadd.f32 %v397_v50, %v365_v31  ;;  %v406_v57 = vmul.f32 %v405_v53, %v384_v38  ;;  %v409_v58 = vmul.f32 %v408_v54, %v384_v38  ;;  %v1394_v49 = vld [vmem:[%s2007_s28 + $0x32] sm:$0xf] }
  0x8e   : > { %v401_v59 = vadd.f32 %v400_v51, %v368_v34  ;;  %v404_v60 = vadd.f32 %v403_v52, %v371_v35  ;;  %v411_v61 = vstv %s2143_s20  ;;  %v414_v62 = vstv %s2145_s21  ;;  %s2204_s20 = sld [smem:[#allocation6 + $0x3a]]  ;;  %s2206_s21 = sld [smem:[#allocation6 + $0x3b]] }
  0x8f   : > { %v407_v0 = vadd.f32 %v406_v57, %v374_v39  ;;  %v410_v1 = vadd.f32 %v409_v58, %v377_v40  ;;  %v412_v2 = vmul.f32 %v411_v61, %v384_v38  ;;  %v415_v3 = vmul.f32 %v414_v62, %v384_v38 }
  0x90   : > { %v426_v4 = vstv %s2147_s19  ;;  %v429_v5 = vstv %s2149_s4  ;;  %v432_v6 = vstv %s2154_s0  ;;  %v435_v7 = vstv %s2156_s1  ;;  %s2212_s19 = sld [smem:[#allocation6 + $0x3c]]  ;;  %s2214_s4 = sld [smem:[#allocation6 + $0x3d]] }
  0x91   : > { %v413_v8 = vadd.f32 %v412_v2, %v380_v47  ;;  %v416_v9 = vadd.f32 %v415_v3, %v383_v48  ;;  %v427_v10 = vmul.f32 %v1376_v63, %v426_v4  ;;  %v430_v11 = vmul.f32 %v1376_v63, %v429_v5  ;;  %s2218_s0 = sld [smem:[#allocation6 + $0x3e]]  ;;  %s2220_s1 = sld [smem:[#allocation6 + $0x3f]] }
  0x92   : > { %v433_v12 = vmul.f32 %v1376_v63, %v432_v6  ;;  %v436_v13 = vmul.f32 %v1376_v63, %v435_v7  ;;  %v438_v14 = vstv %s2162_s2  ;;  %v441_v15 = vstv %s2164_s16  ;;  %s2222_s2 = sld [smem:[#allocation6 + $0x40]]  ;;  %s2224_s16 = sld [smem:[#allocation6 + $0x41]] }
  0x93   : > { %v428_v16 = vadd.f32 %v427_v10, %v395_v55  ;;  %v431_v17 = vadd.f32 %v430_v11, %v398_v56  ;;  %v439_v18 = vmul.f32 %v1376_v63, %v438_v14  ;;  %v442_v19 = vmul.f32 %v1376_v63, %v441_v15  ;;  %v516_v10 = vld [vmem:[%s2007_s28 + $0x4] sm:$0xf] }
  0x94   : > { %v434_v20 = vadd.f32 %v433_v12, %v401_v59  ;;  %v437_v21 = vadd.f32 %v436_v13, %v404_v60  ;;  %v444_v22 = vstv %s2168_s18  ;;  %v447_v23 = vstv %s2170_s5  ;;  %s2229_s18 = sld [smem:[#allocation6 + $0x42]]  ;;  %s2231_s5 = sld [smem:[#allocation6 + $0x43]] }
  0x95   : > { %v440_v25 = vadd.f32 %v439_v18, %v407_v0  ;;  %v443_v26 = vadd.f32 %v442_v19, %v410_v1  ;;  %v445_v27 = vmul.f32 %v1376_v63, %v444_v22  ;;  %v448_v28 = vmul.f32 %v1376_v63, %v447_v23 }
  0x96   : > { %v459_v29 = vstv %s2172_s10  ;;  %v462_v30 = vstv %s2174_s11  ;;  %v465_v31 = vstv %s2179_s22  ;;  %v468_v32 = vstv %s2181_s27  ;;  %s2237_s10 = sld [smem:[#allocation6 + $0x44]]  ;;  %s2239_s11 = sld [smem:[#allocation6 + $0x45]] }
  0x97   : > { %v446_v33 = vadd.f32 %v445_v27, %v413_v8  ;;  %v449_v34 = vadd.f32 %v448_v28, %v416_v9  ;;  %v460_v35 = vmul.f32 %v1385_v24, %v459_v29  ;;  %v463_v36 = vmul.f32 %v1385_v24, %v462_v30  ;;  %s2243_s22 = sld [smem:[#allocation6 + $0x46]]  ;;  %s2245_s27 = sld [smem:[#allocation6 + $0x47]] }
  0x98   : > { %v466_v37 = vmul.f32 %v1385_v24, %v465_v31  ;;  %v469_v38 = vmul.f32 %v1385_v24, %v468_v32  ;;  %v471_v39 = vstv %s2187_s29  ;;  %v474_v40 = vstv %s2189_s6  ;;  %s2247_s29 = sld [smem:[#allocation6 + $0x48]]  ;;  %s2249_s6 = sld [smem:[#allocation6 + $0x49]] }
  0x99   : > { %v461_v41 = vadd.f32 %v460_v35, %v428_v16  ;;  %v464_v42 = vadd.f32 %v463_v36, %v431_v17  ;;  %v472_v43 = vmul.f32 %v1385_v24, %v471_v39  ;;  %v475_v44 = vmul.f32 %v1385_v24, %v474_v40  ;;  %v1411_v35 = vld [vmem:[%s2007_s28 + $0x14] sm:$0xf] }
  0x9a   : > { %v467_v45 = vadd.f32 %v466_v37, %v434_v20  ;;  %v470_v46 = vadd.f32 %v469_v38, %v437_v21  ;;  %v477_v47 = vstv %s2193_s23  ;;  %v480_v48 = vstv %s2195_s30  ;;  %s2254_s23 = sld [smem:[#allocation6 + $0x4a]]  ;;  %s2256_s30 = sld [smem:[#allocation6 + $0x4b]] }
  0x9b   : > { %v473_v50 = vadd.f32 %v472_v43, %v440_v25  ;;  %v476_v51 = vadd.f32 %v475_v44, %v443_v26  ;;  %v478_v52 = vmul.f32 %v1385_v24, %v477_v47  ;;  %v481_v53 = vmul.f32 %v1385_v24, %v480_v48 }
  0x9c   : > { %v492_v54 = vstv %s2197_s7  ;;  %v495_v55 = vstv %s2199_s9  ;;  %v498_v56 = vstv %s2204_s20  ;;  %v501_v57 = vstv %s2206_s21  ;;  %s2262_s7 = sld [smem:[#allocation6 + $0x4c]]  ;;  %s2264_s9 = sld [smem:[#allocation6 + $0x4d]] }
  0x9d   : > { %v479_v58 = vadd.f32 %v478_v52, %v446_v33  ;;  %v482_v59 = vadd.f32 %v481_v53, %v449_v34  ;;  %v493_v60 = vmul.f32 %v1394_v49, %v492_v54  ;;  %v496_v61 = vmul.f32 %v1394_v49, %v495_v55  ;;  %s2268_s20 = sld [smem:[#allocation6 + $0x4e]]  ;;  %s2270_s21 = sld [smem:[#allocation6 + $0x4f]] }
  0x9e   : > { %v499_v62 = vmul.f32 %v1394_v49, %v498_v56  ;;  %v502_v63 = vmul.f32 %v1394_v49, %v501_v57  ;;  %v504_v0 = vstv %s2212_s19  ;;  %v507_v1 = vstv %s2214_s4  ;;  %s2272_s19 = sld [smem:[#allocation6 + $0x50]]  ;;  %s2274_s4 = sld [smem:[#allocation6 + $0x51]] }
  0x9f   : > { %v494_v2 = vadd.f32 %v493_v60, %v461_v41  ;;  %v497_v3 = vadd.f32 %v496_v61, %v464_v42  ;;  %v505_v4 = vmul.f32 %v1394_v49, %v504_v0  ;;  %v508_v5 = vmul.f32 %v1394_v49, %v507_v1  ;;  %v1420_v60 = vld [vmem:[%s2007_s28 + $0x24] sm:$0xf] }
  0xa0   : > { %v500_v6 = vadd.f32 %v499_v62, %v467_v45  ;;  %v503_v7 = vadd.f32 %v502_v63, %v470_v46  ;;  %v510_v8 = vstv %s2218_s0  ;;  %v513_v9 = vstv %s2220_s1  ;;  %s2279_s0 = sld [smem:[#allocation6 + $0x52]]  ;;  %s2281_s1 = sld [smem:[#allocation6 + $0x53]] }
  0xa1   : > { %v506_v11 = vadd.f32 %v505_v4, %v473_v50  ;;  %v509_v12 = vadd.f32 %v508_v5, %v476_v51  ;;  %v511_v13 = vmul.f32 %v1394_v49, %v510_v8  ;;  %v514_v14 = vmul.f32 %v1394_v49, %v513_v9 }
  0xa2   : > { %v525_v15 = vstv %s2222_s2  ;;  %v528_v16 = vstv %s2224_s16  ;;  %v531_v17 = vstv %s2229_s18  ;;  %v534_v18 = vstv %s2231_s5  ;;  %s2287_s2 = sld [smem:[#allocation6 + $0x54]]  ;;  %s2289_s16 = sld [smem:[#allocation6 + $0x55]] }
  0xa3   : > { %v512_v19 = vadd.f32 %v511_v13, %v479_v58  ;;  %v515_v20 = vadd.f32 %v514_v14, %v482_v59  ;;  %v526_v21 = vmul.f32 %v525_v15, %v516_v10  ;;  %v529_v22 = vmul.f32 %v528_v16, %v516_v10  ;;  %s2293_s18 = sld [smem:[#allocation6 + $0x56]]  ;;  %s2295_s5 = sld [smem:[#allocation6 + $0x57]] }
  0xa4   : > { %v532_v23 = vmul.f32 %v531_v17, %v516_v10  ;;  %v535_v24 = vmul.f32 %v534_v18, %v516_v10  ;;  %v537_v25 = vstv %s2237_s10  ;;  %v540_v26 = vstv %s2239_s11  ;;  %s2297_s10 = sld [smem:[#allocation6 + $0x58]]  ;;  %s2299_s11 = sld [smem:[#allocation6 + $0x59]] }
  0xa5   : > { %v527_v27 = vadd.f32 %v526_v21, %v494_v2  ;;  %v530_v28 = vadd.f32 %v529_v22, %v497_v3  ;;  %v538_v29 = vmul.f32 %v537_v25, %v516_v10  ;;  %v541_v30 = vmul.f32 %v540_v26, %v516_v10  ;;  %v1429_v21 = vld [vmem:[%s2007_s28 + $0x34] sm:$0xf] }
  0xa6   : > { %v533_v31 = vadd.f32 %v532_v23, %v500_v6  ;;  %v536_v32 = vadd.f32 %v535_v24, %v503_v7  ;;  %v543_v33 = vstv %s2243_s22  ;;  %v546_v34 = vstv %s2245_s27  ;;  %s2304_s22 = sld [smem:[#allocation6 + $0x5a]]  ;;  %s2306_s27 = sld [smem:[#allocation6 + $0x5b]] }
  0xa7   : > { %v539_v36 = vadd.f32 %v538_v29, %v506_v11  ;;  %v542_v37 = vadd.f32 %v541_v30, %v509_v12  ;;  %v544_v38 = vmul.f32 %v543_v33, %v516_v10  ;;  %v547_v39 = vmul.f32 %v546_v34, %v516_v10 }
  0xa8   : > { %v558_v40 = vstv %s2247_s29  ;;  %v561_v41 = vstv %s2249_s6  ;;  %v564_v42 = vstv %s2254_s23  ;;  %v567_v43 = vstv %s2256_s30  ;;  %s2312_s29 = sld [smem:[#allocation6 + $0x5c]]  ;;  %s2314_s6 = sld [smem:[#allocation6 + $0x5d]] }
  0xa9   : > { %v545_v44 = vadd.f32 %v544_v38, %v512_v19  ;;  %v548_v45 = vadd.f32 %v547_v39, %v515_v20  ;;  %v559_v46 = vmul.f32 %v1411_v35, %v558_v40  ;;  %v562_v47 = vmul.f32 %v1411_v35, %v561_v41  ;;  %s2318_s23 = sld [smem:[#allocation6 + $0x5e]]  ;;  %s2320_s30 = sld [smem:[#allocation6 + $0x5f]] }
  0xaa   : > { %v565_v48 = vmul.f32 %v1411_v35, %v564_v42  ;;  %v568_v49 = vmul.f32 %v1411_v35, %v567_v43  ;;  %v570_v50 = vstv %s2262_s7  ;;  %v573_v51 = vstv %s2264_s9  ;;  %s2322_s7 = sld [smem:[#allocation6 + $0x60]]  ;;  %s2324_s9 = sld [smem:[#allocation6 + $0x61]] }
  0xab   : > { %v560_v52 = vadd.f32 %v559_v46, %v527_v27  ;;  %v563_v53 = vadd.f32 %v562_v47, %v530_v28  ;;  %v571_v54 = vmul.f32 %v1411_v35, %v570_v50  ;;  %v574_v55 = vmul.f32 %v1411_v35, %v573_v51  ;;  %v648_v46 = vld [vmem:[%s2007_s28 + $0x6] sm:$0xf] }
  0xac   : > { %v566_v56 = vadd.f32 %v565_v48, %v533_v31  ;;  %v569_v57 = vadd.f32 %v568_v49, %v536_v32  ;;  %v576_v58 = vstv %s2268_s20  ;;  %v579_v59 = vstv %s2270_s21  ;;  %s2329_s20 = sld [smem:[#allocation6 + $0x62]]  ;;  %s2331_s21 = sld [smem:[#allocation6 + $0x63]] }
  0xad   : > { %v572_v61 = vadd.f32 %v571_v54, %v539_v36  ;;  %v575_v62 = vadd.f32 %v574_v55, %v542_v37  ;;  %v577_v63 = vmul.f32 %v1411_v35, %v576_v58  ;;  %v580_v0 = vmul.f32 %v1411_v35, %v579_v59 }
  0xae   : > { %v591_v1 = vstv %s2272_s19  ;;  %v594_v2 = vstv %s2274_s4  ;;  %v597_v3 = vstv %s2279_s0  ;;  %v600_v4 = vstv %s2281_s1  ;;  %s2337_s19 = sld [smem:[#allocation6 + $0x64]]  ;;  %s2339_s4 = sld [smem:[#allocation6 + $0x65]] }
  0xaf   : > { %v578_v5 = vadd.f32 %v577_v63, %v545_v44  ;;  %v581_v6 = vadd.f32 %v580_v0, %v548_v45  ;;  %v592_v7 = vmul.f32 %v1420_v60, %v591_v1  ;;  %v595_v8 = vmul.f32 %v1420_v60, %v594_v2  ;;  %s2343_s0 = sld [smem:[#allocation6 + $0x66]]  ;;  %s2345_s1 = sld [smem:[#allocation6 + $0x67]] }
  0xb0   : > { %v598_v9 = vmul.f32 %v1420_v60, %v597_v3  ;;  %v601_v10 = vmul.f32 %v1420_v60, %v600_v4  ;;  %v603_v11 = vstv %s2287_s2  ;;  %v606_v12 = vstv %s2289_s16  ;;  %s2347_s2 = sld [smem:[#allocation6 + $0x68]]  ;;  %s2349_s16 = sld [smem:[#allocation6 + $0x69]] }
  0xb1   : > { %v593_v13 = vadd.f32 %v592_v7, %v560_v52  ;;  %v596_v14 = vadd.f32 %v595_v8, %v563_v53  ;;  %v604_v15 = vmul.f32 %v1420_v60, %v603_v11  ;;  %v607_v16 = vmul.f32 %v1420_v60, %v606_v12  ;;  %v1446_v7 = vld [vmem:[%s2007_s28 + $0x16] sm:$0xf] }
  0xb2   : > { %v599_v17 = vadd.f32 %v598_v9, %v566_v56  ;;  %v602_v18 = vadd.f32 %v601_v10, %v569_v57  ;;  %v609_v19 = vstv %s2293_s18  ;;  %v612_v20 = vstv %s2295_s5  ;;  %s2354_s18 = sld [smem:[#allocation6 + $0x6a]]  ;;  %s2356_s5 = sld [smem:[#allocation6 + $0x6b]] }
  0xb3   : > { %v605_v22 = vadd.f32 %v604_v15, %v572_v61  ;;  %v608_v23 = vadd.f32 %v607_v16, %v575_v62  ;;  %v610_v24 = vmul.f32 %v1420_v60, %v609_v19  ;;  %v613_v25 = vmul.f32 %v1420_v60, %v612_v20 }
  0xb4   : > { %v624_v26 = vstv %s2297_s10  ;;  %v627_v27 = vstv %s2299_s11  ;;  %v630_v28 = vstv %s2304_s22  ;;  %v633_v29 = vstv %s2306_s27  ;;  %s2362_s10 = sld [smem:[#allocation6 + $0x6c]]  ;;  %s2364_s11 = sld [smem:[#allocation6 + $0x6d]] }
  0xb5   : > { %v611_v30 = vadd.f32 %v610_v24, %v578_v5  ;;  %v614_v31 = vadd.f32 %v613_v25, %v581_v6  ;;  %v625_v32 = vmul.f32 %v1429_v21, %v624_v26  ;;  %v628_v33 = vmul.f32 %v1429_v21, %v627_v27  ;;  %s2368_s22 = sld [smem:[#allocation6 + $0x6e]]  ;;  %s2370_s27 = sld [smem:[#allocation6 + $0x6f]] }
  0xb6   : > { %v631_v34 = vmul.f32 %v1429_v21, %v630_v28  ;;  %v634_v35 = vmul.f32 %v1429_v21, %v633_v29  ;;  %v636_v36 = vstv %s2312_s29  ;;  %v639_v37 = vstv %s2314_s6  ;;  %s2372_s29 = sld [smem:[#allocation6 + $0x70]]  ;;  %s2374_s6 = sld [smem:[#allocation6 + $0x71]] }
  0xb7   : > { %v626_v38 = vadd.f32 %v625_v32, %v593_v13  ;;  %v629_v39 = vadd.f32 %v628_v33, %v596_v14  ;;  %v637_v40 = vmul.f32 %v1429_v21, %v636_v36  ;;  %v640_v41 = vmul.f32 %v1429_v21, %v639_v37  ;;  %v1455_v32 = vld [vmem:[%s2007_s28 + $0x26] sm:$0xf] }
  0xb8   : > { %v632_v42 = vadd.f32 %v631_v34, %v599_v17  ;;  %v635_v43 = vadd.f32 %v634_v35, %v602_v18  ;;  %v642_v44 = vstv %s2318_s23  ;;  %v645_v45 = vstv %s2320_s30  ;;  %s2379_s23 = sld [smem:[#allocation6 + $0x72]]  ;;  %s2381_s30 = sld [smem:[#allocation6 + $0x73]] }
  0xb9   : > { %v638_v47 = vadd.f32 %v637_v40, %v605_v22  ;;  %v641_v48 = vadd.f32 %v640_v41, %v608_v23  ;;  %v643_v49 = vmul.f32 %v1429_v21, %v642_v44  ;;  %v646_v50 = vmul.f32 %v1429_v21, %v645_v45 }
  0xba   : > { %v657_v51 = vstv %s2322_s7  ;;  %v660_v52 = vstv %s2324_s9  ;;  %v663_v53 = vstv %s2329_s20  ;;  %v666_v54 = vstv %s2331_s21  ;;  %s2387_s7 = sld [smem:[#allocation6 + $0x74]]  ;;  %s2389_s9 = sld [smem:[#allocation6 + $0x75]] }
  0xbb   : > { %v644_v55 = vadd.f32 %v643_v49, %v611_v30  ;;  %v647_v56 = vadd.f32 %v646_v50, %v614_v31  ;;  %v658_v57 = vmul.f32 %v657_v51, %v648_v46  ;;  %v661_v58 = vmul.f32 %v660_v52, %v648_v46  ;;  %s2393_s20 = sld [smem:[#allocation6 + $0x76]]  ;;  %s2395_s21 = sld [smem:[#allocation6 + $0x77]] }
  0xbc   : > { %v664_v59 = vmul.f32 %v663_v53, %v648_v46  ;;  %v667_v60 = vmul.f32 %v666_v54, %v648_v46  ;;  %v669_v61 = vstv %s2337_s19  ;;  %v672_v62 = vstv %s2339_s4  ;;  %s2397_s19 = sld [smem:[#allocation6 + $0x78]]  ;;  %s2399_s4 = sld [smem:[#allocation6 + $0x79]] }
  0xbd   : > { %v659_v63 = vadd.f32 %v658_v57, %v626_v38  ;;  %v662_v0 = vadd.f32 %v661_v58, %v629_v39  ;;  %v670_v1 = vmul.f32 %v669_v61, %v648_v46  ;;  %v673_v2 = vmul.f32 %v672_v62, %v648_v46  ;;  %v1464_v57 = vld [vmem:[%s2007_s28 + $0x36] sm:$0xf] }
  0xbe   : > { %v665_v3 = vadd.f32 %v664_v59, %v632_v42  ;;  %v668_v4 = vadd.f32 %v667_v60, %v635_v43  ;;  %v675_v5 = vstv %s2343_s0  ;;  %v678_v6 = vstv %s2345_s1  ;;  %s2404_s0 = sld [smem:[#allocation6 + $0x7a]]  ;;  %s2406_s1 = sld [smem:[#allocation6 + $0x7b]] }
  0xbf   : > { %v671_v8 = vadd.f32 %v670_v1, %v638_v47  ;;  %v674_v9 = vadd.f32 %v673_v2, %v641_v48  ;;  %v676_v10 = vmul.f32 %v675_v5, %v648_v46  ;;  %v679_v11 = vmul.f32 %v678_v6, %v648_v46 }
  0xc0   : > { %v690_v12 = vstv %s2347_s2  ;;  %v693_v13 = vstv %s2349_s16  ;;  %v696_v14 = vstv %s2354_s18  ;;  %v699_v15 = vstv %s2356_s5  ;;  %s2412_s2 = sld [smem:[#allocation6 + $0x7c]]  ;;  %s2414_s16 = sld [smem:[#allocation6 + $0x7d]] }
  0xc1   : > { %v677_v16 = vadd.f32 %v676_v10, %v644_v55  ;;  %v680_v17 = vadd.f32 %v679_v11, %v647_v56  ;;  %v691_v18 = vmul.f32 %v1446_v7, %v690_v12  ;;  %v694_v19 = vmul.f32 %v1446_v7, %v693_v13  ;;  %s2418_s18 = sld [smem:[#allocation6 + $0x7e]]  ;;  %s2420_s5 = sld [smem:[#allocation6 + $0x7f]] }
  0xc2   : > { %v697_v20 = vmul.f32 %v1446_v7, %v696_v14  ;;  %v700_v21 = vmul.f32 %v1446_v7, %v699_v15  ;;  %v702_v22 = vstv %s2362_s10  ;;  %v705_v23 = vstv %s2364_s11  ;;  %s2422_s10 = sld [smem:[#allocation6 + $0x80]]  ;;  %s2424_s11 = sld [smem:[#allocation6 + $0x81]] }
  0xc3   : > { %v692_v24 = vadd.f32 %v691_v18, %v659_v63  ;;  %v695_v25 = vadd.f32 %v694_v19, %v662_v0  ;;  %v703_v26 = vmul.f32 %v1446_v7, %v702_v22  ;;  %v706_v27 = vmul.f32 %v1446_v7, %v705_v23  ;;  %v780_v18 = vld [vmem:[%s2007_s28 + $0x8] sm:$0xf] }
  0xc4   : > { %v698_v28 = vadd.f32 %v697_v20, %v665_v3  ;;  %v701_v29 = vadd.f32 %v700_v21, %v668_v4  ;;  %v708_v30 = vstv %s2368_s22  ;;  %v711_v31 = vstv %s2370_s27  ;;  %s2429_s22 = sld [smem:[#allocation6 + $0x82]]  ;;  %s2431_s27 = sld [smem:[#allocation6 + $0x83]] }
  0xc5   : > { %v704_v33 = vadd.f32 %v703_v26, %v671_v8  ;;  %v707_v34 = vadd.f32 %v706_v27, %v674_v9  ;;  %v709_v35 = vmul.f32 %v1446_v7, %v708_v30  ;;  %v712_v36 = vmul.f32 %v1446_v7, %v711_v31 }
  0xc6   : > { %v723_v37 = vstv %s2372_s29  ;;  %v726_v38 = vstv %s2374_s6  ;;  %v729_v39 = vstv %s2379_s23  ;;  %v732_v40 = vstv %s2381_s30  ;;  %s2437_s29 = sld [smem:[#allocation6 + $0x84]]  ;;  %s2439_s6 = sld [smem:[#allocation6 + $0x85]] }
  0xc7   : > { %v710_v41 = vadd.f32 %v709_v35, %v677_v16  ;;  %v713_v42 = vadd.f32 %v712_v36, %v680_v17  ;;  %v724_v43 = vmul.f32 %v1455_v32, %v723_v37  ;;  %v727_v44 = vmul.f32 %v1455_v32, %v726_v38  ;;  %s2443_s23 = sld [smem:[#allocation6 + $0x86]]  ;;  %s2445_s30 = sld [smem:[#allocation6 + $0x87]] }
  0xc8   : > { %v730_v45 = vmul.f32 %v1455_v32, %v729_v39  ;;  %v733_v46 = vmul.f32 %v1455_v32, %v732_v40  ;;  %v735_v47 = vstv %s2387_s7  ;;  %v738_v48 = vstv %s2389_s9  ;;  %s2447_s7 = sld [smem:[#allocation6 + $0x88]]  ;;  %s2449_s9 = sld [smem:[#allocation6 + $0x89]] }
  0xc9   : > { %v725_v49 = vadd.f32 %v724_v43, %v692_v24  ;;  %v728_v50 = vadd.f32 %v727_v44, %v695_v25  ;;  %v736_v51 = vmul.f32 %v1455_v32, %v735_v47  ;;  %v739_v52 = vmul.f32 %v1455_v32, %v738_v48  ;;  %v1481_v43 = vld [vmem:[%s2007_s28 + $0x18] sm:$0xf] }
  0xca   : > { %v731_v53 = vadd.f32 %v730_v45, %v698_v28  ;;  %v734_v54 = vadd.f32 %v733_v46, %v701_v29  ;;  %v741_v55 = vstv %s2393_s20  ;;  %v744_v56 = vstv %s2395_s21  ;;  %s2454_s20 = sld [smem:[#allocation6 + $0x8a]]  ;;  %s2456_s21 = sld [smem:[#allocation6 + $0x8b]] }
  0xcb   : > { %v737_v58 = vadd.f32 %v736_v51, %v704_v33  ;;  %v740_v59 = vadd.f32 %v739_v52, %v707_v34  ;;  %v742_v60 = vmul.f32 %v1455_v32, %v741_v55  ;;  %v745_v61 = vmul.f32 %v1455_v32, %v744_v56 }
  0xcc   : > { %v756_v62 = vstv %s2397_s19  ;;  %v759_v63 = vstv %s2399_s4  ;;  %v762_v0 = vstv %s2404_s0  ;;  %v765_v1 = vstv %s2406_s1  ;;  %s2462_s19 = sld [smem:[#allocation6 + $0x8c]]  ;;  %s2464_s4 = sld [smem:[#allocation6 + $0x8d]] }
  0xcd   : > { %v743_v2 = vadd.f32 %v742_v60, %v710_v41  ;;  %v746_v3 = vadd.f32 %v745_v61, %v713_v42  ;;  %v757_v4 = vmul.f32 %v1464_v57, %v756_v62  ;;  %v760_v5 = vmul.f32 %v1464_v57, %v759_v63  ;;  %s2468_s0 = sld [smem:[#allocation6 + $0x8e]]  ;;  %s2470_s1 = sld [smem:[#allocation6 + $0x8f]] }
  0xce   : > { %v763_v6 = vmul.f32 %v1464_v57, %v762_v0  ;;  %v766_v7 = vmul.f32 %v1464_v57, %v765_v1  ;;  %v768_v8 = vstv %s2412_s2  ;;  %v771_v9 = vstv %s2414_s16  ;;  %s2472_s2 = sld [smem:[#allocation6 + $0x90]]  ;;  %s2474_s16 = sld [smem:[#allocation6 + $0x91]] }
  0xcf   : > { %v758_v10 = vadd.f32 %v757_v4, %v725_v49  ;;  %v761_v11 = vadd.f32 %v760_v5, %v728_v50  ;;  %v769_v12 = vmul.f32 %v1464_v57, %v768_v8  ;;  %v772_v13 = vmul.f32 %v1464_v57, %v771_v9  ;;  %v1490_v4 = vld [vmem:[%s2007_s28 + $0x28] sm:$0xf] }
  0xd0   : > { %v764_v14 = vadd.f32 %v763_v6, %v731_v53  ;;  %v767_v15 = vadd.f32 %v766_v7, %v734_v54  ;;  %v774_v16 = vstv %s2418_s18  ;;  %v777_v17 = vstv %s2420_s5  ;;  %s2479_s18 = sld [smem:[#allocation6 + $0x92]]  ;;  %s2481_s5 = sld [smem:[#allocation6 + $0x93]] }
  0xd1   : > { %v770_v19 = vadd.f32 %v769_v12, %v737_v58  ;;  %v773_v20 = vadd.f32 %v772_v13, %v740_v59  ;;  %v775_v21 = vmul.f32 %v1464_v57, %v774_v16  ;;  %v778_v22 = vmul.f32 %v1464_v57, %v777_v17 }
  0xd2   : > { %v789_v23 = vstv %s2422_s10  ;;  %v792_v24 = vstv %s2424_s11  ;;  %v795_v25 = vstv %s2429_s22  ;;  %v798_v26 = vstv %s2431_s27  ;;  %s2487_s10 = sld [smem:[#allocation6 + $0x94]]  ;;  %s2489_s11 = sld [smem:[#allocation6 + $0x95]] }
  0xd3   : > { %v776_v27 = vadd.f32 %v775_v21, %v743_v2  ;;  %v779_v28 = vadd.f32 %v778_v22, %v746_v3  ;;  %v790_v29 = vmul.f32 %v789_v23, %v780_v18  ;;  %v793_v30 = vmul.f32 %v792_v24, %v780_v18  ;;  %s2493_s22 = sld [smem:[#allocation6 + $0x96]]  ;;  %s2495_s27 = sld [smem:[#allocation6 + $0x97]] }
  0xd4   : > { %v796_v31 = vmul.f32 %v795_v25, %v780_v18  ;;  %v799_v32 = vmul.f32 %v798_v26, %v780_v18  ;;  %v801_v33 = vstv %s2437_s29  ;;  %v804_v34 = vstv %s2439_s6  ;;  %s2497_s29 = sld [smem:[#allocation6 + $0x98]]  ;;  %s2499_s6 = sld [smem:[#allocation6 + $0x99]] }
  0xd5   : > { %v791_v35 = vadd.f32 %v790_v29, %v758_v10  ;;  %v794_v36 = vadd.f32 %v793_v30, %v761_v11  ;;  %v802_v37 = vmul.f32 %v801_v33, %v780_v18  ;;  %v805_v38 = vmul.f32 %v804_v34, %v780_v18  ;;  %v1499_v29 = vld [vmem:[%s2007_s28 + $0x38] sm:$0xf] }
  0xd6   : > { %v797_v39 = vadd.f32 %v796_v31, %v764_v14  ;;  %v800_v40 = vadd.f32 %v799_v32, %v767_v15  ;;  %v807_v41 = vstv %s2443_s23  ;;  %v810_v42 = vstv %s2445_s30  ;;  %s2504_s23 = sld [smem:[#allocation6 + $0x9a]]  ;;  %s2506_s30 = sld [smem:[#allocation6 + $0x9b]] }
  0xd7   : > { %v803_v44 = vadd.f32 %v802_v37, %v770_v19  ;;  %v806_v45 = vadd.f32 %v805_v38, %v773_v20  ;;  %v808_v46 = vmul.f32 %v807_v41, %v780_v18  ;;  %v811_v47 = vmul.f32 %v810_v42, %v780_v18 }
  0xd8   : > { %v822_v48 = vstv %s2447_s7  ;;  %v825_v49 = vstv %s2449_s9  ;;  %v828_v50 = vstv %s2454_s20  ;;  %v831_v51 = vstv %s2456_s21  ;;  %s2512_s7 = sld [smem:[#allocation6 + $0x9c]]  ;;  %s2514_s9 = sld [smem:[#allocation6 + $0x9d]] }
  0xd9   : > { %v809_v52 = vadd.f32 %v808_v46, %v776_v27  ;;  %v812_v53 = vadd.f32 %v811_v47, %v779_v28  ;;  %v823_v54 = vmul.f32 %v1481_v43, %v822_v48  ;;  %v826_v55 = vmul.f32 %v1481_v43, %v825_v49  ;;  %s2518_s20 = sld [smem:[#allocation6 + $0x9e]]  ;;  %s2520_s21 = sld [smem:[#allocation6 + $0x9f]] }
  0xda   : > { %v829_v56 = vmul.f32 %v1481_v43, %v828_v50  ;;  %v832_v57 = vmul.f32 %v1481_v43, %v831_v51  ;;  %v834_v58 = vstv %s2462_s19  ;;  %v837_v59 = vstv %s2464_s4  ;;  %s2522_s19 = sld [smem:[#allocation6 + $0xa0]]  ;;  %s2524_s4 = sld [smem:[#allocation6 + $0xa1]] }
  0xdb   : > { %v824_v60 = vadd.f32 %v823_v54, %v791_v35  ;;  %v827_v61 = vadd.f32 %v826_v55, %v794_v36  ;;  %v835_v62 = vmul.f32 %v1481_v43, %v834_v58  ;;  %v838_v63 = vmul.f32 %v1481_v43, %v837_v59  ;;  %v912_v54 = vld [vmem:[%s2007_s28 + $0xa] sm:$0xf] }
  0xdc   : > { %v830_v0 = vadd.f32 %v829_v56, %v797_v39  ;;  %v833_v1 = vadd.f32 %v832_v57, %v800_v40  ;;  %v840_v2 = vstv %s2468_s0  ;;  %v843_v3 = vstv %s2470_s1  ;;  %s2529_s0 = sld [smem:[#allocation6 + $0xa2]]  ;;  %s2531_s1 = sld [smem:[#allocation6 + $0xa3]] }
  0xdd   : > { %v836_v5 = vadd.f32 %v835_v62, %v803_v44  ;;  %v839_v6 = vadd.f32 %v838_v63, %v806_v45  ;;  %v841_v7 = vmul.f32 %v1481_v43, %v840_v2  ;;  %v844_v8 = vmul.f32 %v1481_v43, %v843_v3 }
  0xde   : > { %v855_v9 = vstv %s2472_s2  ;;  %v858_v10 = vstv %s2474_s16  ;;  %v861_v11 = vstv %s2479_s18  ;;  %v864_v12 = vstv %s2481_s5  ;;  %s2537_s2 = sld [smem:[#allocation6 + $0xa4]]  ;;  %s2539_s16 = sld [smem:[#allocation6 + $0xa5]] }
  0xdf   : > { %v842_v13 = vadd.f32 %v841_v7, %v809_v52  ;;  %v845_v14 = vadd.f32 %v844_v8, %v812_v53  ;;  %v856_v15 = vmul.f32 %v1490_v4, %v855_v9  ;;  %v859_v16 = vmul.f32 %v1490_v4, %v858_v10  ;;  %s2543_s18 = sld [smem:[#allocation6 + $0xa6]]  ;;  %s2545_s5 = sld [smem:[#allocation6 + $0xa7]] }
  0xe0   : > { %v862_v17 = vmul.f32 %v1490_v4, %v861_v11  ;;  %v865_v18 = vmul.f32 %v1490_v4, %v864_v12  ;;  %v867_v19 = vstv %s2487_s10  ;;  %v870_v20 = vstv %s2489_s11  ;;  %s2547_s10 = sld [smem:[#allocation6 + $0xa8]]  ;;  %s2549_s11 = sld [smem:[#allocation6 + $0xa9]] }
  0xe1   : > { %v857_v21 = vadd.f32 %v856_v15, %v824_v60  ;;  %v860_v22 = vadd.f32 %v859_v16, %v827_v61  ;;  %v868_v23 = vmul.f32 %v1490_v4, %v867_v19  ;;  %v871_v24 = vmul.f32 %v1490_v4, %v870_v20  ;;  %v1516_v15 = vld [vmem:[%s2007_s28 + $0x1a] sm:$0xf] }
  0xe2   : > { %v863_v25 = vadd.f32 %v862_v17, %v830_v0  ;;  %v866_v26 = vadd.f32 %v865_v18, %v833_v1  ;;  %v873_v27 = vstv %s2493_s22  ;;  %v876_v28 = vstv %s2495_s27  ;;  %s2554_s22 = sld [smem:[#allocation6 + $0xaa]]  ;;  %s2556_s27 = sld [smem:[#allocation6 + $0xab]] }
  0xe3   : > { %v869_v30 = vadd.f32 %v868_v23, %v836_v5  ;;  %v872_v31 = vadd.f32 %v871_v24, %v839_v6  ;;  %v874_v32 = vmul.f32 %v1490_v4, %v873_v27  ;;  %v877_v33 = vmul.f32 %v1490_v4, %v876_v28 }
  0xe4   : > { %v888_v34 = vstv %s2497_s29  ;;  %v891_v35 = vstv %s2499_s6  ;;  %v894_v36 = vstv %s2504_s23  ;;  %v897_v37 = vstv %s2506_s30  ;;  %s2562_s29 = sld [smem:[#allocation6 + $0xac]]  ;;  %s2564_s6 = sld [smem:[#allocation6 + $0xad]] }
  0xe5   : > { %v875_v38 = vadd.f32 %v874_v32, %v842_v13  ;;  %v878_v39 = vadd.f32 %v877_v33, %v845_v14  ;;  %v889_v40 = vmul.f32 %v1499_v29, %v888_v34  ;;  %v892_v41 = vmul.f32 %v1499_v29, %v891_v35  ;;  %s2568_s23 = sld [smem:[#allocation6 + $0xae]]  ;;  %s2570_s30 = sld [smem:[#allocation6 + $0xaf]] }
  0xe6   : > { %v895_v42 = vmul.f32 %v1499_v29, %v894_v36  ;;  %v898_v43 = vmul.f32 %v1499_v29, %v897_v37  ;;  %v900_v44 = vstv %s2512_s7  ;;  %v903_v45 = vstv %s2514_s9  ;;  %s2572_s7 = sld [smem:[#allocation6 + $0xb0]]  ;;  %s2574_s9 = sld [smem:[#allocation6 + $0xb1]] }
  0xe7   : > { %v890_v46 = vadd.f32 %v889_v40, %v857_v21  ;;  %v893_v47 = vadd.f32 %v892_v41, %v860_v22  ;;  %v901_v48 = vmul.f32 %v1499_v29, %v900_v44  ;;  %v904_v49 = vmul.f32 %v1499_v29, %v903_v45  ;;  %v1525_v40 = vld [vmem:[%s2007_s28 + $0x2a] sm:$0xf] }
  0xe8   : > { %v896_v50 = vadd.f32 %v895_v42, %v863_v25  ;;  %v899_v51 = vadd.f32 %v898_v43, %v866_v26  ;;  %v906_v52 = vstv %s2518_s20  ;;  %v909_v53 = vstv %s2520_s21  ;;  %s2579_s20 = sld [smem:[#allocation6 + $0xb2]]  ;;  %s2581_s21 = sld [smem:[#allocation6 + $0xb3]] }
  0xe9   : > { %v902_v55 = vadd.f32 %v901_v48, %v869_v30  ;;  %v905_v56 = vadd.f32 %v904_v49, %v872_v31  ;;  %v907_v57 = vmul.f32 %v1499_v29, %v906_v52  ;;  %v910_v58 = vmul.f32 %v1499_v29, %v909_v53 }
  0xea   : > { %v921_v59 = vstv %s2522_s19  ;;  %v924_v60 = vstv %s2524_s4  ;;  %v927_v61 = vstv %s2529_s0  ;;  %v930_v62 = vstv %s2531_s1  ;;  %s2587_s19 = sld [smem:[#allocation6 + $0xb4]]  ;;  %s2589_s4 = sld [smem:[#allocation6 + $0xb5]] }
  0xeb   : > { %v908_v63 = vadd.f32 %v907_v57, %v875_v38  ;;  %v911_v0 = vadd.f32 %v910_v58, %v878_v39  ;;  %v922_v1 = vmul.f32 %v921_v59, %v912_v54  ;;  %v925_v2 = vmul.f32 %v924_v60, %v912_v54  ;;  %s2593_s0 = sld [smem:[#allocation6 + $0xb6]]  ;;  %s2595_s1 = sld [smem:[#allocation6 + $0xb7]] }
  0xec   : > { %v928_v3 = vmul.f32 %v927_v61, %v912_v54  ;;  %v931_v4 = vmul.f32 %v930_v62, %v912_v54  ;;  %v933_v5 = vstv %s2537_s2  ;;  %v936_v6 = vstv %s2539_s16  ;;  %s2597_s2 = sld [smem:[#allocation6 + $0xb8]]  ;;  %s2599_s16 = sld [smem:[#allocation6 + $0xb9]] }
  0xed   : > { %v923_v7 = vadd.f32 %v922_v1, %v890_v46  ;;  %v926_v8 = vadd.f32 %v925_v2, %v893_v47  ;;  %v934_v9 = vmul.f32 %v933_v5, %v912_v54  ;;  %v937_v10 = vmul.f32 %v936_v6, %v912_v54  ;;  %v1534_v1 = vld [vmem:[%s2007_s28 + $0x3a] sm:$0xf] }
  0xee   : > { %v929_v11 = vadd.f32 %v928_v3, %v896_v50  ;;  %v932_v12 = vadd.f32 %v931_v4, %v899_v51  ;;  %v939_v13 = vstv %s2543_s18  ;;  %v942_v14 = vstv %s2545_s5  ;;  %s2604_s18 = sld [smem:[#allocation6 + $0xba]]  ;;  %s2606_s5 = sld [smem:[#allocation6 + $0xbb]] }
  0xef   : > { %v935_v16 = vadd.f32 %v934_v9, %v902_v55  ;;  %v938_v17 = vadd.f32 %v937_v10, %v905_v56  ;;  %v940_v18 = vmul.f32 %v939_v13, %v912_v54  ;;  %v943_v19 = vmul.f32 %v942_v14, %v912_v54 }
  0xf0   : > { %v954_v20 = vstv %s2547_s10  ;;  %v957_v21 = vstv %s2549_s11  ;;  %v960_v22 = vstv %s2554_s22  ;;  %v963_v23 = vstv %s2556_s27  ;;  %s2612_s10 = sld [smem:[#allocation6 + $0xbc]]  ;;  %s2614_s11 = sld [smem:[#allocation6 + $0xbd]] }
  0xf1   : > { %v941_v24 = vadd.f32 %v940_v18, %v908_v63  ;;  %v944_v25 = vadd.f32 %v943_v19, %v911_v0  ;;  %v955_v26 = vmul.f32 %v1516_v15, %v954_v20  ;;  %v958_v27 = vmul.f32 %v1516_v15, %v957_v21  ;;  %s2618_s22 = sld [smem:[#allocation6 + $0xbe]]  ;;  %s2620_s27 = sld [smem:[#allocation6 + $0xbf]] }
  0xf2   : > { %v961_v28 = vmul.f32 %v1516_v15, %v960_v22  ;;  %v964_v29 = vmul.f32 %v1516_v15, %v963_v23  ;;  %v966_v30 = vstv %s2562_s29  ;;  %v969_v31 = vstv %s2564_s6  ;;  %s2622_s29 = sld [smem:[#allocation6 + $0xc0]]  ;;  %s2624_s6 = sld [smem:[#allocation6 + $0xc1]] }
  0xf3   : > { %v956_v32 = vadd.f32 %v955_v26, %v923_v7  ;;  %v959_v33 = vadd.f32 %v958_v27, %v926_v8  ;;  %v967_v34 = vmul.f32 %v1516_v15, %v966_v30  ;;  %v970_v35 = vmul.f32 %v1516_v15, %v969_v31  ;;  %v1044_v26 = vld [vmem:[%s2007_s28 + $0xc] sm:$0xf] }
  0xf4   : > { %v962_v36 = vadd.f32 %v961_v28, %v929_v11  ;;  %v965_v37 = vadd.f32 %v964_v29, %v932_v12  ;;  %v972_v38 = vstv %s2568_s23  ;;  %v975_v39 = vstv %s2570_s30  ;;  %s2629_s23 = sld [smem:[#allocation6 + $0xc2]]  ;;  %s2631_s30 = sld [smem:[#allocation6 + $0xc3]] }
  0xf5   : > { %v968_v41 = vadd.f32 %v967_v34, %v935_v16  ;;  %v971_v42 = vadd.f32 %v970_v35, %v938_v17  ;;  %v973_v43 = vmul.f32 %v1516_v15, %v972_v38  ;;  %v976_v44 = vmul.f32 %v1516_v15, %v975_v39 }
  0xf6   : > { %v987_v45 = vstv %s2572_s7  ;;  %v990_v46 = vstv %s2574_s9  ;;  %v993_v47 = vstv %s2579_s20  ;;  %v996_v48 = vstv %s2581_s21  ;;  %s2637_s7 = sld [smem:[#allocation6 + $0xc4]]  ;;  %s2639_s9 = sld [smem:[#allocation6 + $0xc5]] }
  0xf7   : > { %v974_v49 = vadd.f32 %v973_v43, %v941_v24  ;;  %v977_v50 = vadd.f32 %v976_v44, %v944_v25  ;;  %v988_v51 = vmul.f32 %v1525_v40, %v987_v45  ;;  %v991_v52 = vmul.f32 %v1525_v40, %v990_v46  ;;  %s2643_s20 = sld [smem:[#allocation6 + $0xc6]]  ;;  %s2645_s21 = sld [smem:[#allocation6 + $0xc7]] }
  0xf8   : > { %v994_v53 = vmul.f32 %v1525_v40, %v993_v47  ;;  %v997_v54 = vmul.f32 %v1525_v40, %v996_v48  ;;  %v999_v55 = vstv %s2587_s19  ;;  %v1002_v56 = vstv %s2589_s4  ;;  %s2647_s19 = sld [smem:[#allocation6 + $0xc8]]  ;;  %s2649_s4 = sld [smem:[#allocation6 + $0xc9]] }
  0xf9   : > { %v989_v57 = vadd.f32 %v988_v51, %v956_v32  ;;  %v992_v58 = vadd.f32 %v991_v52, %v959_v33  ;;  %v1000_v59 = vmul.f32 %v1525_v40, %v999_v55  ;;  %v1003_v60 = vmul.f32 %v1525_v40, %v1002_v56  ;;  %v1551_v51 = vld [vmem:[%s2007_s28 + $0x1c] sm:$0xf] }
  0xfa   : > { %v995_v61 = vadd.f32 %v994_v53, %v962_v36  ;;  %v998_v62 = vadd.f32 %v997_v54, %v965_v37  ;;  %v1005_v63 = vstv %s2593_s0  ;;  %v1008_v0 = vstv %s2595_s1  ;;  %s2654_s0 = sld [smem:[#allocation6 + $0xca]]  ;;  %s2656_s1 = sld [smem:[#allocation6 + $0xcb]] }
  0xfb   : > { %v1001_v2 = vadd.f32 %v1000_v59, %v968_v41  ;;  %v1004_v3 = vadd.f32 %v1003_v60, %v971_v42  ;;  %v1006_v4 = vmul.f32 %v1525_v40, %v1005_v63  ;;  %v1009_v5 = vmul.f32 %v1525_v40, %v1008_v0 }
  0xfc   : > { %v1020_v6 = vstv %s2597_s2  ;;  %v1023_v7 = vstv %s2599_s16  ;;  %v1026_v8 = vstv %s2604_s18  ;;  %v1029_v9 = vstv %s2606_s5  ;;  %s2662_s2 = sld [smem:[#allocation6 + $0xcc]]  ;;  %s2664_s16 = sld [smem:[#allocation6 + $0xcd]] }
  0xfd   : > { %v1007_v10 = vadd.f32 %v1006_v4, %v974_v49  ;;  %v1010_v11 = vadd.f32 %v1009_v5, %v977_v50  ;;  %v1021_v12 = vmul.f32 %v1534_v1, %v1020_v6  ;;  %v1024_v13 = vmul.f32 %v1534_v1, %v1023_v7  ;;  %s2668_s18 = sld [smem:[#allocation6 + $0xce]]  ;;  %s2670_s5 = sld [smem:[#allocation6 + $0xcf]] }
  0xfe   : > { %v1027_v14 = vmul.f32 %v1534_v1, %v1026_v8  ;;  %v1030_v15 = vmul.f32 %v1534_v1, %v1029_v9  ;;  %v1032_v16 = vstv %s2612_s10  ;;  %v1035_v17 = vstv %s2614_s11  ;;  %s2672_s10 = sld [smem:[#allocation6 + $0xd0]]  ;;  %s2674_s11 = sld [smem:[#allocation6 + $0xd1]] }
  0xff   : > { %v1022_v18 = vadd.f32 %v1021_v12, %v989_v57  ;;  %v1025_v19 = vadd.f32 %v1024_v13, %v992_v58  ;;  %v1033_v20 = vmul.f32 %v1534_v1, %v1032_v16  ;;  %v1036_v21 = vmul.f32 %v1534_v1, %v1035_v17  ;;  %v1560_v12 = vld [vmem:[%s2007_s28 + $0x2c] sm:$0xf] }
 0x100   : > { %v1028_v22 = vadd.f32 %v1027_v14, %v995_v61  ;;  %v1031_v23 = vadd.f32 %v1030_v15, %v998_v62  ;;  %v1038_v24 = vstv %s2618_s22  ;;  %v1041_v25 = vstv %s2620_s27  ;;  %s2679_s22 = sld [smem:[#allocation6 + $0xd2]]  ;;  %s2681_s27 = sld [smem:[#allocation6 + $0xd3]] }
 0x101   : > { %v1034_v27 = vadd.f32 %v1033_v20, %v1001_v2  ;;  %v1037_v28 = vadd.f32 %v1036_v21, %v1004_v3  ;;  %v1039_v29 = vmul.f32 %v1534_v1, %v1038_v24  ;;  %v1042_v30 = vmul.f32 %v1534_v1, %v1041_v25 }
 0x102   : > { %v1053_v31 = vstv %s2622_s29  ;;  %v1056_v32 = vstv %s2624_s6  ;;  %v1059_v33 = vstv %s2629_s23  ;;  %v1062_v34 = vstv %s2631_s30  ;;  %s2687_s29 = sld [smem:[#allocation6 + $0xd4]]  ;;  %s2689_s6 = sld [smem:[#allocation6 + $0xd5]] }
 0x103   : > { %v1040_v35 = vadd.f32 %v1039_v29, %v1007_v10  ;;  %v1043_v36 = vadd.f32 %v1042_v30, %v1010_v11  ;;  %v1054_v37 = vmul.f32 %v1053_v31, %v1044_v26  ;;  %v1057_v38 = vmul.f32 %v1056_v32, %v1044_v26  ;;  %s2693_s23 = sld [smem:[#allocation6 + $0xd6]]  ;;  %s2695_s30 = sld [smem:[#allocation6 + $0xd7]] }
 0x104   : > { %v1060_v39 = vmul.f32 %v1059_v33, %v1044_v26  ;;  %v1063_v40 = vmul.f32 %v1062_v34, %v1044_v26  ;;  %v1065_v41 = vstv %s2637_s7  ;;  %v1068_v42 = vstv %s2639_s9  ;;  %s2697_s7 = sld [smem:[#allocation6 + $0xd8]]  ;;  %s2699_s9 = sld [smem:[#allocation6 + $0xd9]] }
 0x105   : > { %v1055_v43 = vadd.f32 %v1054_v37, %v1022_v18  ;;  %v1058_v44 = vadd.f32 %v1057_v38, %v1025_v19  ;;  %v1066_v45 = vmul.f32 %v1065_v41, %v1044_v26  ;;  %v1069_v46 = vmul.f32 %v1068_v42, %v1044_v26  ;;  %v1569_v37 = vld [vmem:[%s2007_s28 + $0x3c] sm:$0xf]  ;;  %s1591_s28 = sshll.u32 %s1821_s15, 9 }
 0x106   : > { %v1061_v47 = vadd.f32 %v1060_v39, %v1028_v22  ;;  %v1064_v48 = vadd.f32 %v1063_v40, %v1031_v23  ;;  %v1071_v49 = vstv %s2643_s20  ;;  %v1074_v50 = vstv %s2645_s21  ;;  %s2704_s20 = sld [smem:[#allocation6 + $0xda]]  ;;  %s2706_s21 = sld [smem:[#allocation6 + $0xdb]] }
 0x107   : > { %v1067_v52 = vadd.f32 %v1066_v45, %v1034_v27  ;;  %v1070_v53 = vadd.f32 %v1069_v46, %v1037_v28  ;;  %v1072_v54 = vmul.f32 %v1071_v49, %v1044_v26  ;;  %v1075_v55 = vmul.f32 %v1074_v50, %v1044_v26  ;;  %s2740_s15 = scalar_lea.hbm %s2794_s3, %s1591_s28 }
 0x108   : > { %v1086_v56 = vstv %s2647_s19  ;;  %v1089_v57 = vstv %s2649_s4  ;;  %v1092_v58 = vstv %s2654_s0  ;;  %v1095_v59 = vstv %s2656_s1  ;;  %s2712_s19 = sld [smem:[#allocation6 + $0xdc]]  ;;  %s2714_s4 = sld [smem:[#allocation6 + $0xdd]] }
 0x109   : > { %v1073_v60 = vadd.f32 %v1072_v54, %v1040_v35  ;;  %v1076_v61 = vadd.f32 %v1075_v55, %v1043_v36  ;;  %v1087_v62 = vmul.f32 %v1551_v51, %v1086_v56  ;;  %v1090_v63 = vmul.f32 %v1551_v51, %v1089_v57  ;;  %s2718_s0 = sld [smem:[#allocation6 + $0xde]]  ;;  %s2720_s1 = sld [smem:[#allocation6 + $0xdf]] }
 0x10a   : > { %v1093_v0 = vmul.f32 %v1551_v51, %v1092_v58  ;;  %v1096_v1 = vmul.f32 %v1551_v51, %v1095_v59  ;;  %v1098_v2 = vstv %s2662_s2  ;;  %v1101_v3 = vstv %s2664_s16  ;;  %s1326_s2 = sshll.u32 %s2003_s26, 5 }
 0x10b   : > { %v1088_v4 = vadd.f32 %v1087_v62, %v1055_v43  ;;  %v1091_v5 = vadd.f32 %v1090_v63, %v1058_v44  ;;  %v1099_v6 = vmul.f32 %v1551_v51, %v1098_v2  ;;  %v1102_v7 = vmul.f32 %v1551_v51, %v1101_v3  ;;  %s232_s16 = scalar_lea.vmem [#allocation9], %s1326_s2 }
 0x10c   : > { %v1094_v8 = vadd.f32 %v1093_v0, %v1061_v47  ;;  %v1097_v9 = vadd.f32 %v1096_v1, %v1064_v48  ;;  %v1104_v10 = vstv %s2668_s18  ;;  %v1107_v11 = vstv %s2670_s5  ;;  %s1206_s18 = sshll.u32 %s232_s16, 4  ;;  %s2742_s18 = int_to_ptr.vmem [resolvable:$true] %s1206_s18 }
 0x10d   : > { %v1100_v13 = vadd.f32 %v1099_v6, %v1067_v52  ;;  %v1103_v14 = vadd.f32 %v1102_v7, %v1070_v53  ;;  %v1105_v15 = vmul.f32 %v1551_v51, %v1104_v10  ;;  %v1108_v16 = vmul.f32 %v1551_v51, %v1107_v11 }
 0x10e   : > { %v1119_v17 = vstv %s2672_s10  ;;  %v1122_v18 = vstv %s2674_s11  ;;  %v1125_v19 = vstv %s2679_s22  ;;  %v1128_v20 = vstv %s2681_s27  ;;  %s1192_s11 = scalar_lea.sflag [#allocation4], %s2003_s26  ;;  %s1739_s22 = scalar_lea.vmem %s2742_s18, 512 }
 0x10f   : > { %v1106_v21 = vadd.f32 %v1105_v15, %v1073_v60  ;;  %v1109_v22 = vadd.f32 %v1108_v16, %v1076_v61  ;;  %v1120_v23 = vmul.f32 %v1560_v12, %v1119_v17  ;;  %v1123_v24 = vmul.f32 %v1560_v12, %v1122_v18  ;;  %p1740_p5 = scmp.ne.s32.totalorder %s2742_s18, %s1739_s22  ;;  %s1836_s27 = smov [#allocation9]  }
 0x110   : > { %v1126_v25 = vmul.f32 %v1560_v12, %v1125_v19  ;;  %v1129_v26 = vmul.f32 %v1560_v12, %v1128_v20  ;;  %v1131_v27 = vstv %s2687_s29  ;;  %v1134_v28 = vstv %s2689_s6  ;;  %s1743_s29 = sshll.u32 %s1836_s27, 4  ;;  %s1744_s29 = int_to_ptr.vmem [resolvable:$false] %s1743_s29 }
 0x111   : > { %v1121_v29 = vadd.f32 %v1120_v23, %v1088_v4  ;;  %v1124_v30 = vadd.f32 %v1123_v24, %v1091_v5  ;;  %v1132_v31 = vmul.f32 %v1560_v12, %v1131_v27  ;;  %v1135_v32 = vmul.f32 %v1560_v12, %v1134_v28  ;;  %p1741_p1 = pnand %p1740_p5, %p2823_p0  ;;  %s1745_s6 = scalar_lea.vmem %s1744_s29, 1024 }
 0x112   : > { %v1127_v33 = vadd.f32 %v1126_v25, %v1094_v8  ;;  %v1130_v34 = vadd.f32 %v1129_v26, %v1097_v9  ;;  %v1137_v35 = vstv %s2693_s23  ;;  %v1140_v36 = vstv %s2695_s30  ;;  %p1746_p11 = scmp.lt.s32.totalorder %s2742_s18, %s1744_s29  ;;  %p1747_p7 = scmp.lt.s32.totalorder %s1745_s6, %s1739_s22 }
 0x113   : > { %v1133_v38 = vadd.f32 %v1132_v31, %v1100_v13  ;;  %v1136_v39 = vadd.f32 %v1135_v32, %v1103_v14  ;;  %v1138_v40 = vmul.f32 %v1560_v12, %v1137_v35  ;;  %v1141_v41 = vmul.f32 %v1560_v12, %v1140_v36  ;;  %p1742_p6 = pneg %p1741_p1 }
 0x114   : > { %v1152_v42 = vstv %s2697_s7  ;;  %v1155_v43 = vstv %s2699_s9  ;;  %v1158_v44 = vstv %s2704_s20  ;;  %v1161_v45 = vstv %s2706_s21  ;;  %p1748_p3 = por %p1747_p7, %p1746_p11 }
 0x115   : > { %v1139_v46 = vadd.f32 %v1138_v40, %v1106_v21  ;;  %v1142_v47 = vadd.f32 %v1141_v41, %v1109_v22  ;;  %v1153_v48 = vmul.f32 %v1569_v37, %v1152_v42  ;;  %v1156_v49 = vmul.f32 %v1569_v37, %v1155_v43 }
 0x116   : > { %v1159_v50 = vmul.f32 %v1569_v37, %v1158_v44  ;;  %v1162_v51 = vmul.f32 %v1569_v37, %v1161_v45  ;;  %v1164_v52 = vstv %s2712_s19  ;;  %v1167_v53 = vstv %s2714_s4  ;;  %p1749_p8 = pnand %p1748_p3, %p1742_p6 }
 0x117   : > { %v1154_v54 = vadd.f32 %v1153_v48, %v1121_v29  ;;  %v1157_v55 = vadd.f32 %v1156_v49, %v1124_v30  ;;  %v1165_v56 = vmul.f32 %v1569_v37, %v1164_v52  ;;  %v1168_v57 = vmul.f32 %v1569_v37, %v1167_v53 }
 0x118   : > { %v1160_v58 = vadd.f32 %v1159_v50, %v1127_v33  ;;  %v1163_v59 = vadd.f32 %v1162_v51, %v1130_v34  ;;  %v1170_v60 = vstv %s2718_s0  ;;  %v1173_v61 = vstv %s2720_s1 }
 0x119   : > { %v1166_v62 = vadd.f32 %v1165_v56, %v1133_v38  ;;  %v1169_v63 = vadd.f32 %v1168_v57, %v1136_v39  ;;  %v1171_v0 = vmul.f32 %v1569_v37, %v1170_v60  ;;  %v1174_v1 = vmul.f32 %v1569_v37, %v1173_v61  ;;  %1176 = vst [vmem:[%s232_s16] sm:$0xf] %v1154_v54 }
 0x11a   : > { %1578 = vst [vmem:[%s232_s16 + $0x4] sm:$0xf] %v1157_v55  ;;  %1579 = vst [vmem:[%s232_s16 + $0x8] sm:$0xf] %v1160_v58 }
 0x11b   : > { %1580 = vst [vmem:[%s232_s16 + $0xc] sm:$0xf] %v1163_v59  ;;  %v1172_v2 = vadd.f32 %v1171_v0, %v1139_v46  ;;  %v1175_v3 = vadd.f32 %v1174_v1, %v1142_v47  ;;  %1581 = vst [vmem:[%s232_s16 + $0x10] sm:$0xf] %v1166_v62 }
 0x11c   : > { %1582 = vst [vmem:[%s232_s16 + $0x14] sm:$0xf] %v1169_v63 }
 0x11d   : > { %1583 = vst [vmem:[%s232_s16 + $0x18] sm:$0xf] %v1172_v2  ;;  %1584 = vst [vmem:[%s232_s16 + $0x1c] sm:$0xf] %v1175_v3 }
 0x11e   : > { %1752 = shalt.err (!%p1749_p8)
}
 0x11f   : > { %s1753_s23 = scalar_lea.hbm %s2740_s15, 512  ;;  %s1757_s9 = scalar_lea.hbm %s2794_s3, 1024 }
 0x120   : > { %p1754_p13 = scmp.ne.s32.totalorder %s2740_s15, %s1753_s23  ;;  %p1758_p12 = scmp.lt.u32.totalorder %s2740_s15, %s2794_s3 }
 0x121   : > { %p1759_p2 = scmp.lt.u32.totalorder %s1757_s9, %s1753_s23  ;;  %p1761_p5 = scmp.lt.u32.totalorder %s1753_s23, %s2740_s15 }
 0x122   : > { %p1755_p4 = pnand %p1754_p13, %p2823_p0 }
 0x123   : > { %p1760_p9 = por %p1759_p2, %p1758_p12 }
 0x124   : > { %p1756_p10 = pneg %p1755_p4 }
 0x125   : > { %p1762_p1 = por %p1761_p5, %p1760_p9 }
 0x127   : > { %p1763_p6 = pnand %p1762_p1, %p1756_p10 }
 0x129   : > { %1766 = shalt.err (!%p1763_p6)
}
 0x12a   : > { %s1837_s19 = smov 64   ;;  %s1838_s4 = smov 4  }
 0x12b   : > { %1602 = dma.vmem_to_hbm [thread:$0]  (%p2823_p0), %s2742_s18, 512, %s2740_s15, %s1192_s11, %s1837_s19, %s1837_s19, %s1838_s4  }
 0x12c PF: > { %s1221_s0 = sand.u32 1, %s1809_s12   ;;  %p2824_p11 = scmp.ne.s32.totalorder %s2811_s25, 0 }
 0x12d   : > { %p2825_p7 = scmp.ge.s32.totalorder %s1829_s17, 2  ;;  %s1222_s1 = scalar_lea.sflag [#allocation4], %s1221_s0 }
 0x12f   : > { %p1616_p3 = pnand %p2825_p7, %p2824_p11 }
 0x131   : > { %1804 = dma.done.wait (!%p1616_p3), %s1222_s1, 512  }
 0x132   : > { %1806 = vsyncadd (!%p1616_p3), %s1222_s1, 4294966784  ;;  %s21_s17 = sadd.s32 1, %s1829_s17   ;;  %s2826_s15 = sld [smem:[#allocation14_spill]] }
 0x133   : > { %p18_p8 = scmp.ge.s32.totalorder %s21_s17, 4   ;;  %s2827_s16 = sld [smem:[#allocation15_spill]] }
 0x134   : > { %s2828_s12 = smov %s1813_s13  ;;  %s2829_s13 = smov %s1817_s14 }
 0x135   : > { %s2830_s14 = smov %s1970_s8  ;;  %20 = sbr.rel (!%p18_p8) target bundleno = 12 (0xc), region = 96 }
 0x13c   :  { %1227 = vsyncpa [#allocation3], 1 }
 0x13d   :  { %1229 = vsyncpa [#allocation3 + $0x1], 1 }
 0x13e   :  { %1230 = vsyncpa [#allocation4], 1 }
 0x13f   :  { %1232 = vsyncpa [#allocation4 + $0x1], 1 }
 0x140   :  { %1233 = vsyncpa [#allocation5], 1 }
 0x141   :  { %1235 = vsyncpa [#allocation5 + $0x1], 1 }
 0x142   :  { %1236 = vsyncpa [#allocation8], 1 }

</bundles_post_ra>
